<compile_context>
chip_gen: v7x
topology: tpu7x:2x2x1
jax: 0.10.0
libtpu: 0.0.40
codegen_flags: <defaults>
</compile_context>

<pallas_src>
import numpy as np

import jax
import jax.numpy as jnp
from jax.experimental import pallas as pl
from jax.experimental.pallas import tpu as pltpu


# -----------------------------------------------------------------------------
# Fused Pallas kernel: all EGNN layers for one batch block.
# -----------------------------------------------------------------------------
def egnn_fused_kernel(feats_ref, coors_ref,
                      ew1a_s, ew1b_s, ew1t_s, ew2_s, cw1_s, nw1a_s, nw1b_s,
                      nw2_s, vec_s,
                      feats_out_ref, coors_out_ref):
    Bb, N, D = feats_ref.shape
    depth = ew1a_s.shape[0]
    MAIN = ew1a_s.shape[2]            # 128-lane main slab of the edge hidden
    TAIL = ew1t_s.shape[2] // 2       # leftover edge-hidden columns (2)
    m_dim = ew2_s.shape[2]
    hid_c = cw1_s.shape[2]            # 4 * m_dim
    hid_n = nw1a_s.shape[2]           # 2 * D
    rows = Bb * N

    def silu(t):
        return t * jax.nn.sigmoid(t)

    f = feats_ref[...].reshape(rows, D)        # node features, flat rows
    c = coors_ref[...]                         # (Bb, N, 3)

    for l in range(depth):                     # static unroll over layers
        V = vec_s[l]                           # (16, 128) packed small params
        w1c_m = V[0, :MAIN]                    # dist row of edge Linear-1, main
        eb1_m = V[1, :MAIN]
        eb2 = V[2, :m_dim]
        cb1 = V[5, :hid_c]
        cw2v = V[6, :hid_c]                    # coors Linear-2 weight column
        lng = V[7, :D]                         # LayerNorm gamma
        lnb = V[8, :D]                         # LayerNorm beta
        nb1 = V[9, :hid_n]
        nb2 = V[10, :D]
        w1c_t = V[11, 0:TAIL]                  # dist row, tail columns
        eb1_t = V[11, 4:4 + TAIL]
        cb2 = V[11, 8]

        # ---- relative coordinates / squared distances (exact difference form,
        #      built directly with j on sublanes, the layout the edge MLP uses)
        rel = c[:, :, None, :] - c[:, None, :, :]              # (Bb,N,N,3)
        dist = jnp.sum(rel * rel, axis=-1, keepdims=True)      # (Bb,N,N,1)

        # ---- edge MLP Linear-1, main 128 lanes: per-node matmuls + broadcasts
        a_m = jnp.dot(f, ew1a_s[l], preferred_element_type=jnp.float32)
        b_m = jnp.dot(f, ew1b_s[l], preferred_element_type=jnp.float32)
        h1m = silu(a_m.reshape(Bb, N, 1, MAIN)
                   + b_m.reshape(Bb, 1, N, MAIN)
                   + dist * w1c_m + eb1_m)                      # (Bb,N,N,MAIN)

        # Linear-2 over the main slab on the MXU (K = 128: single pass on all
        # TPU generations, incl. v5e's 128-deep MXU).
        zm = jnp.dot(h1m.reshape(Bb * N * N, MAIN), ew2_s[l],
                     preferred_element_type=jnp.float32)
        zm = zm.reshape(Bb, N, N, m_dim) + eb2

        # ---- 2 tail columns of the edge hidden: VPU broadcast-FMAs only ----
        ab_t = jnp.dot(f, ew1t_s[l], preferred_element_type=jnp.float32)
        h1t = silu(ab_t[:, :TAIL].reshape(Bb, N, 1, TAIL)
                   + ab_t[:, TAIL:].reshape(Bb, 1, N, TAIL)
                   + dist * w1c_t + eb1_t)                      # (Bb,N,N,TAIL)
        for t in range(TAIL):
            zm = zm + h1t[..., t:t + 1] * V[3 + t, :m_dim]      # rank-1 FMA

        m = silu(zm)                                            # (Bb,N,N,m_dim)

        # ---- coordinate update (coors_norm = Identity) ----
        ch = silu(jnp.dot(m.reshape(Bb * N * N, m_dim), cw1_s[l],
                          preferred_element_type=jnp.float32) + cb1)
        # 1-wide output column on VPU/XLU instead of a 1-column MXU matmul
        cwt = (jnp.sum(ch * cw2v, axis=-1, keepdims=True)
               + cb2).reshape(Bb, N, N, 1)
        c = jnp.sum(cwt * rel, axis=2) + c                      # sum_j w_ij (c_i - c_j)

        # ---- node update (m_pool = 'sum', node_norm = LayerNorm) ----
        m_i = jnp.sum(m, axis=2).reshape(rows, m_dim)
        mean = jnp.mean(f, axis=-1, keepdims=True)
        var = jnp.mean((f - mean) ** 2, axis=-1, keepdims=True)
        normed = (f - mean) * jax.lax.rsqrt(var + 1e-5) * lng + lnb
        nh = silu(jnp.dot(normed, nw1a_s[l], preferred_element_type=jnp.float32)
                  + jnp.dot(m_i, nw1b_s[l], preferred_element_type=jnp.float32)
                  + nb1)
        f = jnp.dot(nh, nw2_s[l], preferred_element_type=jnp.float32) + nb2 + f

    feats_out_ref[...] = f.reshape(Bb, N, D)
    coors_out_ref[...] = c


# -----------------------------------------------------------------------------
# Host-side packing (done ONCE at init, hoisted out of the forward path).
# -----------------------------------------------------------------------------
_MAT_KEYS = ("ew1a_m", "ew1b_m", "ew1t", "ew2_m", "cw1", "nw1a", "nw1b", "nw2")
_VLANES = 128


def pack_network_params(net_params):
    """Depth-stack the weight matrices (with the 128+tail split of the edge
    Linear layers) and pack every small bias/vector parameter into one
    (depth, 16, 128) slab.  Row layout documented in egnn_fused_kernel."""
    layers = net_params["layers"]
    D = layers[0]["nw2"].shape[1]
    m_dim = layers[0]["ew2"].shape[1]
    two_ei = layers[0]["eb1"].shape[-1]
    main = min(128, two_ei)
    tail = two_ei - main
    hid_c = layers[0]["cw1"].shape[1]
    hid_n = layers[0]["nw1a"].shape[1]

    assert 1 <= tail <= 2, "edge-hidden split expects 128 < 2*edge_input_dim <= 130"
    assert max(main, hid_c, hid_n, D, m_dim) <= _VLANES, \
        "vector parameters overflow the 128-lane slab"

    mats = {k: [] for k in _MAT_KEYS}
    vec_layers = []
    for lp in layers:
        ew1a = np.asarray(lp["ew1a"], np.float32)
        ew1b = np.asarray(lp["ew1b"], np.float32)
        ew1c = np.asarray(lp["ew1c"], np.float32)
        eb1 = np.asarray(lp["eb1"], np.float32)
        ew2 = np.asarray(lp["ew2"], np.float32)

        mats["ew1a_m"].append(ew1a[:, :main])
        mats["ew1b_m"].append(ew1b[:, :main])
        mats["ew1t"].append(np.concatenate([ew1a[:, main:], ew1b[:, main:]], axis=1))
        mats["ew2_m"].append(ew2[:main])
        mats["cw1"].append(np.asarray(lp["cw1"], np.float32))
        mats["nw1a"].append(np.asarray(lp["nw1a"], np.float32))
        mats["nw1b"].append(np.asarray(lp["nw1b"], np.float32))
        mats["nw2"].append(np.asarray(lp["nw2"], np.float32))

        slab = np.zeros((16, _VLANES), np.float32)
        slab[0, :main] = ew1c[0, :main]                 # dist row, main cols
        slab[1, :main] = eb1[0, :main]                  # edge bias 1, main cols
        slab[2, :m_dim] = np.asarray(lp["eb2"], np.float32)[0]
        for t in range(tail):                           # edge Linear-2 tail rows
            slab[3 + t, :m_dim] = ew2[main + t]
        slab[5, :hid_c] = np.asarray(lp["cb1"], np.float32)[0]
        slab[6, :hid_c] = np.asarray(lp["cw2"], np.float32)[:, 0]
        slab[7, :D] = np.asarray(lp["lng"], np.float32)[0]
        slab[8, :D] = np.asarray(lp["lnb"], np.float32)[0]
        slab[9, :hid_n] = np.asarray(lp["nb1"], np.float32)[0]
        slab[10, :D] = np.asarray(lp["nb2"], np.float32)[0]
        slab[11, 0:tail] = ew1c[0, main:]               # dist row, tail cols
        slab[11, 4:4 + tail] = eb1[0, main:]            # edge bias 1, tail cols
        slab[11, 8] = np.asarray(lp["cb2"], np.float32)[0, 0]
        vec_layers.append(slab)

    packed = {k: jnp.asarray(np.stack(v, axis=0)) for k, v in mats.items()}
    packed["vec"] = jnp.asarray(np.stack(vec_layers, axis=0))
    packed["token_emb"] = jnp.asarray(net_params["token_emb"], jnp.float32)
    return packed


# -----------------------------------------------------------------------------
# Wrapper (one pallas_call for the whole network).
# -----------------------------------------------------------------------------
def _choose_batch_block(B, N):
    # >= ~256 node rows per grid step (fills MXU/VPU pipelines, amortizes the
    # ~0.35us fixed per-step cost) ...
    bb = min(B, max(1, -(-256 // N)))
    # ... capped so ~2 KiB/f32 of edge intermediates per (i,j) pair stays
    # under ~20 MiB per step (safe within v7x's 64 MiB physical VMEM).
    bb = min(bb, max(1, (20 * 1024 * 1024) // (2048 * N * N)))
    # keep at least 2 grid steps so v7x's two TensorCores both get work
    # (costs one extra ~0.35us step on v5e/v6e — negligible).
    if B >= 2:
        bb = min(bb, B // 2)
    bb = max(bb, 1)
    while B % bb:          # grid must tile the batch exactly
        bb -= 1
    return bb


def egnn_fused(feats, coors, packed, *, batch_block=None):
    B, N, D = feats.shape
    depth = packed["vec"].shape[0]
    m_dim = packed["ew2_m"].shape[2]
    two_ei = packed["ew1a_m"].shape[2] + packed["ew1t"].shape[2] // 2
    hid_c = packed["cw1"].shape[2]
    hid_n = packed["nw1a"].shape[2]

    Bb = batch_block if batch_block is not None else _choose_batch_block(B, N)
    grid = (B // Bb,)

    feats = feats.astype(jnp.float32)
    coors = coors.astype(jnp.float32)

    weights = [packed[k] for k in _MAT_KEYS] + [packed["vec"]]
    in_specs = [pl.BlockSpec((Bb, N, D), lambda g: (g, 0, 0)),
                pl.BlockSpec((Bb, N, 3), lambda g: (g, 0, 0))]
    for w in weights:
        # Constant across the grid (block index always 0).
        in_specs.append(pl.BlockSpec(w.shape, lambda g, nd=w.ndim: (0,) * nd))

    # Advisory cost estimate so XLA schedules surrounding ops (token-embedding
    # gather, downstream layers) around the custom call.
    edges = B * N * N
    flops = 2 * depth * (
        edges * ((2 * D + 1) * two_ei + two_ei * m_dim + m_dim * hid_c + hid_c)
        + B * N * ((D + m_dim) * hid_n + hid_n * D))
    transc = depth * (edges * (two_ei + m_dim + hid_c) + B * N * hid_n)
    weight_bytes = sum(int(w.size) for w in weights) * 4
    bytes_accessed = 4 * (2 * B * N * D + 2 * B * N * 3) + weight_bytes

    fout, cout = pl.pallas_call(
        egnn_fused_kernel,
        out_shape=(jax.ShapeDtypeStruct((B, N, D), jnp.float32),
                   jax.ShapeDtypeStruct((B, N, 3), jnp.float32)),
        grid=grid,
        in_specs=in_specs,
        out_specs=(pl.BlockSpec((Bb, N, D), lambda g: (g, 0, 0)),
                   pl.BlockSpec((Bb, N, 3), lambda g: (g, 0, 0))),
        compiler_params=pltpu.CompilerParams(
            dimension_semantics=("parallel",),
            vmem_limit_bytes=32 * 1024 * 1024),
        cost_estimate=pl.CostEstimate(
            flops=int(flops), transcendentals=int(transc),
            bytes_accessed=int(bytes_accessed)),
    )(feats, coors, *weights)
    return fout, cout


def egnn_network_forward(tokens, coors, packed):
    # token embedding (gather) is glue — plain JAX, scheduled by XLA around
    # the pallas_call using the attached CostEstimate.
    feats = jnp.take(packed["token_emb"], tokens, axis=0)       # (B, N, D)
    return egnn_fused(feats, coors, packed)


# -----------------------------------------------------------------------------
# Deterministic parameter init (matches module __init__ shapes; init_eps=1e-3).
# -----------------------------------------------------------------------------
def init_layer_params(key, dim, m_dim, init_eps=1e-3):
    ei = 2 * dim + 1                      # edge_input_dim (fourier=0, edge_dim=0)
    ks = jax.random.split(key, 12)
    nrm = lambda k, shape: jax.random.normal(k, shape, jnp.float32) * init_eps

    ew1 = nrm(ks[0], (ei, 2 * ei))
    ew2 = nrm(ks[1], (2 * ei, m_dim))
    cw1 = nrm(ks[2], (m_dim, 4 * m_dim))
    cw2 = nrm(ks[3], (4 * m_dim, 1))
    nw1 = nrm(ks[4], (dim + m_dim, 2 * dim))
    nw2 = nrm(ks[5], (2 * dim, dim))

    return {
        "ew1a": ew1[:dim],                      # feats_i block of edge Linear-1
        "ew1b": ew1[dim:2 * dim],               # feats_j block
        "ew1c": ew1[2 * dim:2 * dim + 1],       # rel_dist block (1, 2ei)
        "eb1": nrm(ks[6], (1, 2 * ei)),
        "ew2": ew2,
        "eb2": nrm(ks[7], (1, m_dim)),
        "cw1": cw1,
        "cb1": nrm(ks[8], (1, 4 * m_dim)),
        "cw2": cw2,
        "cb2": nrm(ks[9], (1, 1)),
        "lng": jnp.ones((1, dim), jnp.float32),     # LayerNorm gamma
        "lnb": jnp.zeros((1, dim), jnp.float32),    # LayerNorm beta
        "nw1a": nw1[:dim],                      # normed_feats block
        "nw1b": nw1[dim:],                      # m_i block
        "nb1": nrm(ks[10], (1, 2 * dim)),
        "nw2": nw2,
        "nb2": nrm(ks[11], (1, dim)),
    }


def init_network_params(key, depth, dim, m_dim, num_tokens):
    k_emb, *k_layers = jax.random.split(key, depth + 1)
    return {
        "token_emb": jax.random.normal(k_emb, (num_tokens, dim), jnp.float32),
        "layers": [init_layer_params(k, dim, m_dim) for k in k_layers],
    }


# -----------------------------------------------------------------------------
# Pure-JAX reference (mirrors the PyTorch forward) for correctness checking.
# -----------------------------------------------------------------------------
def egnn_layer_ref(feats, coors, p):
    silu = lambda x: x * jax.nn.sigmoid(x)
    B, N, D = feats.shape
    rel = coors[:, :, None, :] - coors[:, None, :, :]
    dist = jnp.sum(rel ** 2, axis=-1, keepdims=True)
    fi = jnp.broadcast_to(feats[:, :, None, :], (B, N, N, D))
    fj = jnp.broadcast_to(feats[:, None, :, :], (B, N, N, D))
    edge_in = jnp.concatenate([fi, fj, dist], axis=-1)
    ew1 = jnp.concatenate([p["ew1a"], p["ew1b"], p["ew1c"]], axis=0)
    h = silu(edge_in @ ew1 + p["eb1"][0])
    m = silu(h @ p["ew2"] + p["eb2"][0])
    ch = silu(m @ p["cw1"] + p["cb1"][0])
    cw = (ch @ p["cw2"] + p["cb2"][0])[..., 0]
    coors_out = jnp.einsum("bij,bijc->bic", cw, rel) + coors
    m_i = m.sum(axis=2)
    mean = feats.mean(-1, keepdims=True)
    var = ((feats - mean) ** 2).mean(-1, keepdims=True)
    normed = (feats - mean) / jnp.sqrt(var + 1e-5) * p["lng"][0] + p["lnb"][0]
    nw1 = jnp.concatenate([p["nw1a"], p["nw1b"]], axis=0)
    nin = jnp.concatenate([normed, m_i], axis=-1)
    nh = silu(nin @ nw1 + p["nb1"][0])
    node_out = nh @ p["nw2"] + p["nb2"][0] + feats
    return node_out, coors_out


def egnn_network_ref(tokens, coors, net_params):
    feats = net_params["token_emb"][tokens]
    for lp in net_params["layers"]:
        feats, coors = egnn_layer_ref(feats, coors, lp)
    return feats, coors


# -----------------------------------------------------------------------------
if __name__ == "__main__":
    B, N = 2, 8
    depth, dim, m_dim, num_tokens = 2, 32, 16, 21

    key = jax.random.PRNGKey(0)
    k_tok, k_coor, k_par = jax.random.split(key, 3)

    tokens = jax.random.randint(k_tok, (B, N), 0, num_tokens)       # (2, 8) int32
    coors = jax.random.normal(k_coor, (B, N, 3), jnp.float32)       # (2, 8, 3)
    params = init_network_params(k_par, depth, dim, m_dim, num_tokens)

    packed = pack_network_params(params)        # hoisted: pack once, reuse
    fwd = jax.jit(egnn_network_forward)

    feats_out, coors_out = jax.block_until_ready(fwd(tokens, coors, packed))

    # sanity check against a pure-JAX reference of the same math
    feats_ref, coors_ref = egnn_network_ref(tokens, coors, params)
    assert jnp.allclose(feats_out, feats_ref, atol=1e-4, rtol=1e-4)
    assert jnp.allclose(coors_out, coors_ref, atol=1e-4, rtol=1e-4)

    print("KERNEL_OK")
</pallas_src>

<mosaic_0001>
module attributes {stable_mosaic.version = 11 : i64} {
  func.func @egnn_fused_kernel(%arg0: i32, %arg1: memref<1x8x32xf32, #tpu.memory_space<vmem>>, %arg2: memref<1x8x3xf32, #tpu.memory_space<vmem>>, %arg3: memref<2x32x128xf32, #tpu.memory_space<vmem>>, %arg4: memref<2x32x128xf32, #tpu.memory_space<vmem>>, %arg5: memref<2x32x4xf32, #tpu.memory_space<vmem>>, %arg6: memref<2x128x16xf32, #tpu.memory_space<vmem>>, %arg7: memref<2x16x64xf32, #tpu.memory_space<vmem>>, %arg8: memref<2x32x64xf32, #tpu.memory_space<vmem>>, %arg9: memref<2x16x64xf32, #tpu.memory_space<vmem>>, %arg10: memref<2x64x32xf32, #tpu.memory_space<vmem>>, %arg11: memref<2x16x128xf32, #tpu.memory_space<vmem>>, %arg12: memref<1x8x32xf32, #tpu.memory_space<vmem>>, %arg13: memref<1x8x3xf32, #tpu.memory_space<vmem>>) attributes {dimension_semantics = [#tpu.dimension_semantics<parallel>], iteration_bounds = array<i64: 2>, scalar_prefetch = 0 : i64, scratch_operands = 0 : i64, tpu.core_type = #tpu.core_type<tc>, window_params = [{transform_indices = @transform_0, window_bounds = array<i64: 1, 8, 32>}, {transform_indices = @transform_1, window_bounds = array<i64: 1, 8, 3>}, {pipeline_mode = #tpu.pipeline_mode<synchronous>, transform_indices = @transform_2, window_bounds = array<i64: 2, 32, 128>}, {pipeline_mode = #tpu.pipeline_mode<synchronous>, transform_indices = @transform_3, window_bounds = array<i64: 2, 32, 128>}, {pipeline_mode = #tpu.pipeline_mode<synchronous>, transform_indices = @transform_4, window_bounds = array<i64: 2, 32, 4>}, {pipeline_mode = #tpu.pipeline_mode<synchronous>, transform_indices = @transform_5, window_bounds = array<i64: 2, 128, 16>}, {pipeline_mode = #tpu.pipeline_mode<synchronous>, transform_indices = @transform_6, window_bounds = array<i64: 2, 16, 64>}, {pipeline_mode = #tpu.pipeline_mode<synchronous>, transform_indices = @transform_7, window_bounds = array<i64: 2, 32, 64>}, {pipeline_mode = #tpu.pipeline_mode<synchronous>, transform_indices = @transform_8, window_bounds = array<i64: 2, 16, 64>}, {pipeline_mode = #tpu.pipeline_mode<synchronous>, transform_indices = @transform_9, window_bounds = array<i64: 2, 64, 32>}, {pipeline_mode = #tpu.pipeline_mode<synchronous>, transform_indices = @transform_10, window_bounds = array<i64: 2, 16, 128>}, {transform_indices = @transform_11, window_bounds = array<i64: 1, 8, 32>}, {transform_indices = @transform_12, window_bounds = array<i64: 1, 8, 3>}]} {
    %c0 = arith.constant 0 : index
    %c0_0 = arith.constant 0 : index
    %c0_1 = arith.constant 0 : index
    %0 = vector.load %arg1[%c0, %c0_0, %c0_1] : memref<1x8x32xf32, #tpu.memory_space<vmem>>, vector<1x8x32xf32>
    %1 = vector.shape_cast %0 : vector<1x8x32xf32> to vector<8x32xf32>
    %c0_2 = arith.constant 0 : index
    %c0_3 = arith.constant 0 : index
    %c0_4 = arith.constant 0 : index
    %2 = vector.load %arg2[%c0_2, %c0_3, %c0_4] : memref<1x8x3xf32, #tpu.memory_space<vmem>>, vector<1x8x3xf32>
    %c0_5 = arith.constant 0 : index
    %c0_6 = arith.constant 0 : index
    %c0_7 = arith.constant 0 : index
    %3 = vector.load %arg11[%c0_5, %c0_6, %c0_7] : memref<2x16x128xf32, #tpu.memory_space<vmem>>, vector<1x16x128xf32>
    %4 = vector.shape_cast %3 : vector<1x16x128xf32> to vector<16x128xf32>
    %5 = vector.extract_strided_slice %4 {offsets = [0, 0], sizes = [1, 128], strides = [1, 1]} : vector<16x128xf32> to vector<1x128xf32>
    %6 = vector.shape_cast %5 : vector<1x128xf32> to vector<128xf32>
    %7 = vector.extract_strided_slice %4 {offsets = [1, 0], sizes = [1, 128], strides = [1, 1]} : vector<16x128xf32> to vector<1x128xf32>
    %8 = vector.shape_cast %7 : vector<1x128xf32> to vector<128xf32>
    %9 = vector.extract_strided_slice %4 {offsets = [2, 0], sizes = [1, 16], strides = [1, 1]} : vector<16x128xf32> to vector<1x16xf32>
    %10 = vector.shape_cast %9 : vector<1x16xf32> to vector<16xf32>
    %11 = vector.extract_strided_slice %4 {offsets = [5, 0], sizes = [1, 64], strides = [1, 1]} : vector<16x128xf32> to vector<1x64xf32>
    %12 = vector.shape_cast %11 : vector<1x64xf32> to vector<64xf32>
    %13 = vector.extract_strided_slice %4 {offsets = [6, 0], sizes = [1, 64], strides = [1, 1]} : vector<16x128xf32> to vector<1x64xf32>
    %14 = vector.shape_cast %13 : vector<1x64xf32> to vector<64xf32>
    %15 = vector.extract_strided_slice %4 {offsets = [7, 0], sizes = [1, 32], strides = [1, 1]} : vector<16x128xf32> to vector<1x32xf32>
    %16 = vector.shape_cast %15 : vector<1x32xf32> to vector<32xf32>
    %17 = vector.extract_strided_slice %4 {offsets = [8, 0], sizes = [1, 32], strides = [1, 1]} : vector<16x128xf32> to vector<1x32xf32>
    %18 = vector.shape_cast %17 : vector<1x32xf32> to vector<32xf32>
    %19 = vector.extract_strided_slice %4 {offsets = [9, 0], sizes = [1, 64], strides = [1, 1]} : vector<16x128xf32> to vector<1x64xf32>
    %20 = vector.shape_cast %19 : vector<1x64xf32> to vector<64xf32>
    %21 = vector.extract_strided_slice %4 {offsets = [10, 0], sizes = [1, 32], strides = [1, 1]} : vector<16x128xf32> to vector<1x32xf32>
    %22 = vector.shape_cast %21 : vector<1x32xf32> to vector<32xf32>
    %23 = vector.extract_strided_slice %4 {offsets = [11, 0], sizes = [1, 2], strides = [1, 1]} : vector<16x128xf32> to vector<1x2xf32>
    %24 = vector.shape_cast %23 : vector<1x2xf32> to vector<2xf32>
    %25 = vector.extract_strided_slice %4 {offsets = [11, 4], sizes = [1, 2], strides = [1, 1]} : vector<16x128xf32> to vector<1x2xf32>
    %26 = vector.shape_cast %25 : vector<1x2xf32> to vector<2xf32>
    %27 = vector.extract_strided_slice %4 {offsets = [11, 8], sizes = [1, 1], strides = [1, 1]} : vector<16x128xf32> to vector<1x1xf32>
    %28 = vector.extract %27[0, 0] : f32 from vector<1x1xf32>
    %29 = vector.shape_cast %2 : vector<1x8x3xf32> to vector<1x8x1x3xf32>
    %30 = vector.shape_cast %2 : vector<1x8x3xf32> to vector<1x1x8x3xf32>
    %31 = vector.broadcast %29 : vector<1x8x1x3xf32> to vector<1x8x8x3xf32>
    %32 = vector.broadcast %30 : vector<1x1x8x3xf32> to vector<1x8x8x3xf32>
    %33 = arith.subf %31, %32 : vector<1x8x8x3xf32>
    %34 = arith.mulf %33, %33 : vector<1x8x8x3xf32>
    %cst = arith.constant dense<0.000000e+00> : vector<1x8x8xf32>
    %35 = vector.multi_reduction <add>, %34, %cst [3] : vector<1x8x8x3xf32> to vector<1x8x8xf32>
    %36 = vector.shape_cast %35 : vector<1x8x8xf32> to vector<1x8x8x1xf32>
    %c0_8 = arith.constant 0 : index
    %c0_9 = arith.constant 0 : index
    %c0_10 = arith.constant 0 : index
    %37 = vector.load %arg3[%c0_8, %c0_9, %c0_10] : memref<2x32x128xf32, #tpu.memory_space<vmem>>, vector<1x32x128xf32>
    %38 = vector.shape_cast %37 : vector<1x32x128xf32> to vector<32x128xf32>
    %cst_11 = arith.constant dense<0.000000e+00> : vector<8x128xf32>
    %39 = tpu.matmul %1, %38, %cst_11 {dimension_numbers = #tpu.dot_dimension_numbers<[1], [0], [0], [1], [0, 0, 1, 1], [], []>} : vector<8x32xf32>, vector<32x128xf32>, vector<8x128xf32> -> vector<8x128xf32>
    %c0_12 = arith.constant 0 : index
    %c0_13 = arith.constant 0 : index
    %c0_14 = arith.constant 0 : index
    %40 = vector.load %arg4[%c0_12, %c0_13, %c0_14] : memref<2x32x128xf32, #tpu.memory_space<vmem>>, vector<1x32x128xf32>
    %41 = vector.shape_cast %40 : vector<1x32x128xf32> to vector<32x128xf32>
    %cst_15 = arith.constant dense<0.000000e+00> : vector<8x128xf32>
    %42 = tpu.matmul %1, %41, %cst_15 {dimension_numbers = #tpu.dot_dimension_numbers<[1], [0], [0], [1], [0, 0, 1, 1], [], []>} : vector<8x32xf32>, vector<32x128xf32>, vector<8x128xf32> -> vector<8x128xf32>
    %43 = vector.shape_cast %39 : vector<8x128xf32> to vector<1x8x1x128xf32>
    %44 = vector.shape_cast %42 : vector<8x128xf32> to vector<1x1x8x128xf32>
    %45 = vector.broadcast %43 : vector<1x8x1x128xf32> to vector<1x8x8x128xf32>
    %46 = vector.broadcast %44 : vector<1x1x8x128xf32> to vector<1x8x8x128xf32>
    %47 = arith.addf %45, %46 : vector<1x8x8x128xf32>
    %48 = vector.shape_cast %6 : vector<128xf32> to vector<1x1x1x128xf32>
    %49 = vector.broadcast %36 : vector<1x8x8x1xf32> to vector<1x8x8x128xf32>
    %50 = vector.broadcast %48 : vector<1x1x1x128xf32> to vector<1x8x8x128xf32>
    %51 = arith.mulf %49, %50 : vector<1x8x8x128xf32>
    %52 = arith.addf %47, %51 : vector<1x8x8x128xf32>
    %53 = vector.shape_cast %8 : vector<128xf32> to vector<1x1x1x128xf32>
    %54 = vector.broadcast %53 : vector<1x1x1x128xf32> to vector<1x8x8x128xf32>
    %55 = arith.addf %52, %54 : vector<1x8x8x128xf32>
    %56 = arith.negf %55 : vector<1x8x8x128xf32>
    %57 = math.exp %56 : vector<1x8x8x128xf32>
    %cst_16 = arith.constant 1.000000e+00 : f32
    %58 = vector.broadcast %cst_16 : f32 to vector<1x8x8x128xf32>
    %59 = arith.addf %58, %57 : vector<1x8x8x128xf32>
    %60 = arith.divf %58, %59 : vector<1x8x8x128xf32>
    %61 = arith.mulf %55, %60 : vector<1x8x8x128xf32>
    %62 = vector.shape_cast %61 : vector<1x8x8x128xf32> to vector<64x128xf32>
    %c0_17 = arith.constant 0 : index
    %c0_18 = arith.constant 0 : index
    %c0_19 = arith.constant 0 : index
    %63 = vector.load %arg6[%c0_17, %c0_18, %c0_19] : memref<2x128x16xf32, #tpu.memory_space<vmem>>, vector<1x128x16xf32>
    %64 = vector.shape_cast %63 : vector<1x128x16xf32> to vector<128x16xf32>
    %cst_20 = arith.constant dense<0.000000e+00> : vector<64x16xf32>
    %65 = tpu.matmul %62, %64, %cst_20 {dimension_numbers = #tpu.dot_dimension_numbers<[1], [0], [0], [1], [0, 0, 1, 1], [], []>} : vector<64x128xf32>, vector<128x16xf32>, vector<64x16xf32> -> vector<64x16xf32>
    %66 = vector.shape_cast %65 : vector<64x16xf32> to vector<1x8x8x16xf32>
    %67 = vector.shape_cast %10 : vector<16xf32> to vector<1x1x1x16xf32>
    %68 = vector.broadcast %67 : vector<1x1x1x16xf32> to vector<1x8x8x16xf32>
    %69 = arith.addf %66, %68 : vector<1x8x8x16xf32>
    %c0_21 = arith.constant 0 : index
    %c0_22 = arith.constant 0 : index
    %c0_23 = arith.constant 0 : index
    %70 = vector.load %arg5[%c0_21, %c0_22, %c0_23] : memref<2x32x4xf32, #tpu.memory_space<vmem>>, vector<1x32x4xf32>
    %71 = vector.shape_cast %70 : vector<1x32x4xf32> to vector<32x4xf32>
    %cst_24 = arith.constant dense<0.000000e+00> : vector<8x4xf32>
    %72 = tpu.matmul %1, %71, %cst_24 {dimension_numbers = #tpu.dot_dimension_numbers<[1], [0], [0], [1], [0, 0, 1, 1], [], []>} : vector<8x32xf32>, vector<32x4xf32>, vector<8x4xf32> -> vector<8x4xf32>
    %73 = vector.extract_strided_slice %72 {offsets = [0, 0], sizes = [8, 2], strides = [1, 1]} : vector<8x4xf32> to vector<8x2xf32>
    %74 = vector.shape_cast %73 : vector<8x2xf32> to vector<1x8x1x2xf32>
    %75 = vector.extract_strided_slice %72 {offsets = [0, 2], sizes = [8, 2], strides = [1, 1]} : vector<8x4xf32> to vector<8x2xf32>
    %76 = vector.shape_cast %75 : vector<8x2xf32> to vector<1x1x8x2xf32>
    %77 = vector.broadcast %74 : vector<1x8x1x2xf32> to vector<1x8x8x2xf32>
    %78 = vector.broadcast %76 : vector<1x1x8x2xf32> to vector<1x8x8x2xf32>
    %79 = arith.addf %77, %78 : vector<1x8x8x2xf32>
    %80 = vector.shape_cast %24 : vector<2xf32> to vector<1x1x1x2xf32>
    %81 = vector.broadcast %36 : vector<1x8x8x1xf32> to vector<1x8x8x2xf32>
    %82 = vector.broadcast %80 : vector<1x1x1x2xf32> to vector<1x8x8x2xf32>
    %83 = arith.mulf %81, %82 : vector<1x8x8x2xf32>
    %84 = arith.addf %79, %83 : vector<1x8x8x2xf32>
    %85 = vector.shape_cast %26 : vector<2xf32> to vector<1x1x1x2xf32>
    %86 = vector.broadcast %85 : vector<1x1x1x2xf32> to vector<1x8x8x2xf32>
    %87 = arith.addf %84, %86 : vector<1x8x8x2xf32>
    %88 = arith.negf %87 : vector<1x8x8x2xf32>
    %89 = math.exp %88 : vector<1x8x8x2xf32>
    %cst_25 = arith.constant 1.000000e+00 : f32
    %90 = vector.broadcast %cst_25 : f32 to vector<1x8x8x2xf32>
    %91 = arith.addf %90, %89 : vector<1x8x8x2xf32>
    %92 = arith.divf %90, %91 : vector<1x8x8x2xf32>
    %93 = arith.mulf %87, %92 : vector<1x8x8x2xf32>
    %94 = vector.extract_strided_slice %93 {offsets = [0, 0, 0, 0], sizes = [1, 8, 8, 1], strides = [1, 1, 1, 1]} : vector<1x8x8x2xf32> to vector<1x8x8x1xf32>
    %95 = vector.extract_strided_slice %4 {offsets = [3, 0], sizes = [1, 16], strides = [1, 1]} : vector<16x128xf32> to vector<1x16xf32>
    %96 = vector.shape_cast %95 : vector<1x16xf32> to vector<16xf32>
    %97 = vector.shape_cast %96 : vector<16xf32> to vector<1x1x1x16xf32>
    %98 = vector.broadcast %94 : vector<1x8x8x1xf32> to vector<1x8x8x16xf32>
    %99 = vector.broadcast %97 : vector<1x1x1x16xf32> to vector<1x8x8x16xf32>
    %100 = arith.mulf %98, %99 : vector<1x8x8x16xf32>
    %101 = arith.addf %69, %100 : vector<1x8x8x16xf32>
    %102 = vector.extract_strided_slice %93 {offsets = [0, 0, 0, 1], sizes = [1, 8, 8, 1], strides = [1, 1, 1, 1]} : vector<1x8x8x2xf32> to vector<1x8x8x1xf32>
    %103 = vector.extract_strided_slice %4 {offsets = [4, 0], sizes = [1, 16], strides = [1, 1]} : vector<16x128xf32> to vector<1x16xf32>
    %104 = vector.shape_cast %103 : vector<1x16xf32> to vector<16xf32>
    %105 = vector.shape_cast %104 : vector<16xf32> to vector<1x1x1x16xf32>
    %106 = vector.broadcast %102 : vector<1x8x8x1xf32> to vector<1x8x8x16xf32>
    %107 = vector.broadcast %105 : vector<1x1x1x16xf32> to vector<1x8x8x16xf32>
    %108 = arith.mulf %106, %107 : vector<1x8x8x16xf32>
    %109 = arith.addf %101, %108 : vector<1x8x8x16xf32>
    %110 = arith.negf %109 : vector<1x8x8x16xf32>
    %111 = math.exp %110 : vector<1x8x8x16xf32>
    %cst_26 = arith.constant 1.000000e+00 : f32
    %112 = vector.broadcast %cst_26 : f32 to vector<1x8x8x16xf32>
    %113 = arith.addf %112, %111 : vector<1x8x8x16xf32>
    %114 = arith.divf %112, %113 : vector<1x8x8x16xf32>
    %115 = arith.mulf %109, %114 : vector<1x8x8x16xf32>
    %116 = vector.shape_cast %115 : vector<1x8x8x16xf32> to vector<64x16xf32>
    %c0_27 = arith.constant 0 : index
    %c0_28 = arith.constant 0 : index
    %c0_29 = arith.constant 0 : index
    %117 = vector.load %arg7[%c0_27, %c0_28, %c0_29] : memref<2x16x64xf32, #tpu.memory_space<vmem>>, vector<1x16x64xf32>
    %118 = vector.shape_cast %117 : vector<1x16x64xf32> to vector<16x64xf32>
    %cst_30 = arith.constant dense<0.000000e+00> : vector<64x64xf32>
    %119 = tpu.matmul %116, %118, %cst_30 {dimension_numbers = #tpu.dot_dimension_numbers<[1], [0], [0], [1], [0, 0, 1, 1], [], []>} : vector<64x16xf32>, vector<16x64xf32>, vector<64x64xf32> -> vector<64x64xf32>
    %120 = vector.shape_cast %12 : vector<64xf32> to vector<1x64xf32>
    %121 = vector.broadcast %120 : vector<1x64xf32> to vector<64x64xf32>
    %122 = arith.addf %119, %121 : vector<64x64xf32>
    %123 = arith.negf %122 : vector<64x64xf32>
    %124 = math.exp %123 : vector<64x64xf32>
    %cst_31 = arith.constant 1.000000e+00 : f32
    %125 = vector.broadcast %cst_31 : f32 to vector<64x64xf32>
    %126 = arith.addf %125, %124 : vector<64x64xf32>
    %127 = arith.divf %125, %126 : vector<64x64xf32>
    %128 = arith.mulf %122, %127 : vector<64x64xf32>
    %129 = vector.shape_cast %14 : vector<64xf32> to vector<1x64xf32>
    %130 = vector.broadcast %129 : vector<1x64xf32> to vector<64x64xf32>
    %131 = arith.mulf %128, %130 : vector<64x64xf32>
    %cst_32 = arith.constant dense<0.000000e+00> : vector<64xf32>
    %132 = vector.multi_reduction <add>, %131, %cst_32 [1] : vector<64x64xf32> to vector<64xf32>
    %133 = vector.shape_cast %132 : vector<64xf32> to vector<64x1xf32>
    %134 = vector.broadcast %28 : f32 to vector<64x1xf32>
    %135 = arith.addf %133, %134 : vector<64x1xf32>
    %136 = vector.shape_cast %135 : vector<64x1xf32> to vector<1x8x8x1xf32>
    %137 = vector.broadcast %136 : vector<1x8x8x1xf32> to vector<1x8x8x3xf32>
    %138 = arith.mulf %137, %33 : vector<1x8x8x3xf32>
    %cst_33 = arith.constant dense<0.000000e+00> : vector<1x8x3xf32>
    %139 = vector.multi_reduction <add>, %138, %cst_33 [2] : vector<1x8x8x3xf32> to vector<1x8x3xf32>
    %140 = arith.addf %139, %2 : vector<1x8x3xf32>
    %cst_34 = arith.constant dense<0.000000e+00> : vector<1x8x16xf32>
    %141 = vector.multi_reduction <add>, %115, %cst_34 [2] : vector<1x8x8x16xf32> to vector<1x8x16xf32>
    %142 = vector.shape_cast %141 : vector<1x8x16xf32> to vector<8x16xf32>
    %cst_35 = arith.constant dense<0.000000e+00> : vector<8xf32>
    %143 = vector.multi_reduction <add>, %1, %cst_35 [1] : vector<8x32xf32> to vector<8xf32>
    %144 = vector.shape_cast %143 : vector<8xf32> to vector<8x1xf32>
    %cst_36 = arith.constant 3.200000e+01 : f32
    %145 = vector.broadcast %cst_36 : f32 to vector<8x1xf32>
    %146 = arith.divf %144, %145 : vector<8x1xf32>
    %147 = vector.broadcast %146 : vector<8x1xf32> to vector<8x32xf32>
    %148 = arith.subf %1, %147 : vector<8x32xf32>
    %149 = arith.mulf %148, %148 : vector<8x32xf32>
    %cst_37 = arith.constant dense<0.000000e+00> : vector<8xf32>
    %150 = vector.multi_reduction <add>, %149, %cst_37 [1] : vector<8x32xf32> to vector<8xf32>
    %151 = vector.shape_cast %150 : vector<8xf32> to vector<8x1xf32>
    %cst_38 = arith.constant 3.200000e+01 : f32
    %152 = vector.broadcast %cst_38 : f32 to vector<8x1xf32>
    %153 = arith.divf %151, %152 : vector<8x1xf32>
    %154 = vector.broadcast %146 : vector<8x1xf32> to vector<8x32xf32>
    %155 = arith.subf %1, %154 : vector<8x32xf32>
    %cst_39 = arith.constant 9.99999974E-6 : f32
    %156 = vector.broadcast %cst_39 : f32 to vector<8x1xf32>
    %157 = arith.addf %153, %156 : vector<8x1xf32>
    %158 = math.rsqrt %157 : vector<8x1xf32>
    %159 = vector.broadcast %158 : vector<8x1xf32> to vector<8x32xf32>
    %160 = arith.mulf %155, %159 : vector<8x32xf32>
    %161 = vector.shape_cast %16 : vector<32xf32> to vector<1x32xf32>
    %162 = vector.broadcast %161 : vector<1x32xf32> to vector<8x32xf32>
    %163 = arith.mulf %160, %162 : vector<8x32xf32>
    %164 = vector.shape_cast %18 : vector<32xf32> to vector<1x32xf32>
    %165 = vector.broadcast %164 : vector<1x32xf32> to vector<8x32xf32>
    %166 = arith.addf %163, %165 : vector<8x32xf32>
    %c0_40 = arith.constant 0 : index
    %c0_41 = arith.constant 0 : index
    %c0_42 = arith.constant 0 : index
    %167 = vector.load %arg8[%c0_40, %c0_41, %c0_42] : memref<2x32x64xf32, #tpu.memory_space<vmem>>, vector<1x32x64xf32>
    %168 = vector.shape_cast %167 : vector<1x32x64xf32> to vector<32x64xf32>
    %cst_43 = arith.constant dense<0.000000e+00> : vector<8x64xf32>
    %169 = tpu.matmul %166, %168, %cst_43 {dimension_numbers = #tpu.dot_dimension_numbers<[1], [0], [0], [1], [0, 0, 1, 1], [], []>} : vector<8x32xf32>, vector<32x64xf32>, vector<8x64xf32> -> vector<8x64xf32>
    %c0_44 = arith.constant 0 : index
    %c0_45 = arith.constant 0 : index
    %c0_46 = arith.constant 0 : index
    %170 = vector.load %arg9[%c0_44, %c0_45, %c0_46] : memref<2x16x64xf32, #tpu.memory_space<vmem>>, vector<1x16x64xf32>
    %171 = vector.shape_cast %170 : vector<1x16x64xf32> to vector<16x64xf32>
    %cst_47 = arith.constant dense<0.000000e+00> : vector<8x64xf32>
    %172 = tpu.matmul %142, %171, %cst_47 {dimension_numbers = #tpu.dot_dimension_numbers<[1], [0], [0], [1], [0, 0, 1, 1], [], []>} : vector<8x16xf32>, vector<16x64xf32>, vector<8x64xf32> -> vector<8x64xf32>
    %173 = arith.addf %169, %172 : vector<8x64xf32>
    %174 = vector.shape_cast %20 : vector<64xf32> to vector<1x64xf32>
    %175 = vector.broadcast %174 : vector<1x64xf32> to vector<8x64xf32>
    %176 = arith.addf %173, %175 : vector<8x64xf32>
    %177 = arith.negf %176 : vector<8x64xf32>
    %178 = math.exp %177 : vector<8x64xf32>
    %cst_48 = arith.constant 1.000000e+00 : f32
    %179 = vector.broadcast %cst_48 : f32 to vector<8x64xf32>
    %180 = arith.addf %179, %178 : vector<8x64xf32>
    %181 = arith.divf %179, %180 : vector<8x64xf32>
    %182 = arith.mulf %176, %181 : vector<8x64xf32>
    %c0_49 = arith.constant 0 : index
    %c0_50 = arith.constant 0 : index
    %c0_51 = arith.constant 0 : index
    %183 = vector.load %arg10[%c0_49, %c0_50, %c0_51] : memref<2x64x32xf32, #tpu.memory_space<vmem>>, vector<1x64x32xf32>
    %184 = vector.shape_cast %183 : vector<1x64x32xf32> to vector<64x32xf32>
    %cst_52 = arith.constant dense<0.000000e+00> : vector<8x32xf32>
    %185 = tpu.matmul %182, %184, %cst_52 {dimension_numbers = #tpu.dot_dimension_numbers<[1], [0], [0], [1], [0, 0, 1, 1], [], []>} : vector<8x64xf32>, vector<64x32xf32>, vector<8x32xf32> -> vector<8x32xf32>
    %186 = vector.shape_cast %22 : vector<32xf32> to vector<1x32xf32>
    %187 = vector.broadcast %186 : vector<1x32xf32> to vector<8x32xf32>
    %188 = arith.addf %185, %187 : vector<8x32xf32>
    %189 = arith.addf %188, %1 : vector<8x32xf32>
    %c1 = arith.constant 1 : index
    %c0_53 = arith.constant 0 : index
    %c0_54 = arith.constant 0 : index
    %190 = vector.load %arg11[%c1, %c0_53, %c0_54] : memref<2x16x128xf32, #tpu.memory_space<vmem>>, vector<1x16x128xf32>
    %191 = vector.shape_cast %190 : vector<1x16x128xf32> to vector<16x128xf32>
    %192 = vector.extract_strided_slice %191 {offsets = [0, 0], sizes = [1, 128], strides = [1, 1]} : vector<16x128xf32> to vector<1x128xf32>
    %193 = vector.shape_cast %192 : vector<1x128xf32> to vector<128xf32>
    %194 = vector.extract_strided_slice %191 {offsets = [1, 0], sizes = [1, 128], strides = [1, 1]} : vector<16x128xf32> to vector<1x128xf32>
    %195 = vector.shape_cast %194 : vector<1x128xf32> to vector<128xf32>
    %196 = vector.extract_strided_slice %191 {offsets = [2, 0], sizes = [1, 16], strides = [1, 1]} : vector<16x128xf32> to vector<1x16xf32>
    %197 = vector.shape_cast %196 : vector<1x16xf32> to vector<16xf32>
    %198 = vector.extract_strided_slice %191 {offsets = [5, 0], sizes = [1, 64], strides = [1, 1]} : vector<16x128xf32> to vector<1x64xf32>
    %199 = vector.shape_cast %198 : vector<1x64xf32> to vector<64xf32>
    %200 = vector.extract_strided_slice %191 {offsets = [6, 0], sizes = [1, 64], strides = [1, 1]} : vector<16x128xf32> to vector<1x64xf32>
    %201 = vector.shape_cast %200 : vector<1x64xf32> to vector<64xf32>
    %202 = vector.extract_strided_slice %191 {offsets = [7, 0], sizes = [1, 32], strides = [1, 1]} : vector<16x128xf32> to vector<1x32xf32>
    %203 = vector.shape_cast %202 : vector<1x32xf32> to vector<32xf32>
    %204 = vector.extract_strided_slice %191 {offsets = [8, 0], sizes = [1, 32], strides = [1, 1]} : vector<16x128xf32> to vector<1x32xf32>
    %205 = vector.shape_cast %204 : vector<1x32xf32> to vector<32xf32>
    %206 = vector.extract_strided_slice %191 {offsets = [9, 0], sizes = [1, 64], strides = [1, 1]} : vector<16x128xf32> to vector<1x64xf32>
    %207 = vector.shape_cast %206 : vector<1x64xf32> to vector<64xf32>
    %208 = vector.extract_strided_slice %191 {offsets = [10, 0], sizes = [1, 32], strides = [1, 1]} : vector<16x128xf32> to vector<1x32xf32>
    %209 = vector.shape_cast %208 : vector<1x32xf32> to vector<32xf32>
    %210 = vector.extract_strided_slice %191 {offsets = [11, 0], sizes = [1, 2], strides = [1, 1]} : vector<16x128xf32> to vector<1x2xf32>
    %211 = vector.shape_cast %210 : vector<1x2xf32> to vector<2xf32>
    %212 = vector.extract_strided_slice %191 {offsets = [11, 4], sizes = [1, 2], strides = [1, 1]} : vector<16x128xf32> to vector<1x2xf32>
    %213 = vector.shape_cast %212 : vector<1x2xf32> to vector<2xf32>
    %214 = vector.extract_strided_slice %191 {offsets = [11, 8], sizes = [1, 1], strides = [1, 1]} : vector<16x128xf32> to vector<1x1xf32>
    %215 = vector.extract %214[0, 0] : f32 from vector<1x1xf32>
    %216 = vector.shape_cast %140 : vector<1x8x3xf32> to vector<1x8x1x3xf32>
    %217 = vector.shape_cast %140 : vector<1x8x3xf32> to vector<1x1x8x3xf32>
    %218 = vector.broadcast %216 : vector<1x8x1x3xf32> to vector<1x8x8x3xf32>
    %219 = vector.broadcast %217 : vector<1x1x8x3xf32> to vector<1x8x8x3xf32>
    %220 = arith.subf %218, %219 : vector<1x8x8x3xf32>
    %221 = arith.mulf %220, %220 : vector<1x8x8x3xf32>
    %cst_55 = arith.constant dense<0.000000e+00> : vector<1x8x8xf32>
    %222 = vector.multi_reduction <add>, %221, %cst_55 [3] : vector<1x8x8x3xf32> to vector<1x8x8xf32>
    %223 = vector.shape_cast %222 : vector<1x8x8xf32> to vector<1x8x8x1xf32>
    %c1_56 = arith.constant 1 : index
    %c0_57 = arith.constant 0 : index
    %c0_58 = arith.constant 0 : index
    %224 = vector.load %arg3[%c1_56, %c0_57, %c0_58] : memref<2x32x128xf32, #tpu.memory_space<vmem>>, vector<1x32x128xf32>
    %225 = vector.shape_cast %224 : vector<1x32x128xf32> to vector<32x128xf32>
    %cst_59 = arith.constant dense<0.000000e+00> : vector<8x128xf32>
    %226 = tpu.matmul %189, %225, %cst_59 {dimension_numbers = #tpu.dot_dimension_numbers<[1], [0], [0], [1], [0, 0, 1, 1], [], []>} : vector<8x32xf32>, vector<32x128xf32>, vector<8x128xf32> -> vector<8x128xf32>
    %c1_60 = arith.constant 1 : index
    %c0_61 = arith.constant 0 : index
    %c0_62 = arith.constant 0 : index
    %227 = vector.load %arg4[%c1_60, %c0_61, %c0_62] : memref<2x32x128xf32, #tpu.memory_space<vmem>>, vector<1x32x128xf32>
    %228 = vector.shape_cast %227 : vector<1x32x128xf32> to vector<32x128xf32>
    %cst_63 = arith.constant dense<0.000000e+00> : vector<8x128xf32>
    %229 = tpu.matmul %189, %228, %cst_63 {dimension_numbers = #tpu.dot_dimension_numbers<[1], [0], [0], [1], [0, 0, 1, 1], [], []>} : vector<8x32xf32>, vector<32x128xf32>, vector<8x128xf32> -> vector<8x128xf32>
    %230 = vector.shape_cast %226 : vector<8x128xf32> to vector<1x8x1x128xf32>
    %231 = vector.shape_cast %229 : vector<8x128xf32> to vector<1x1x8x128xf32>
    %232 = vector.broadcast %230 : vector<1x8x1x128xf32> to vector<1x8x8x128xf32>
    %233 = vector.broadcast %231 : vector<1x1x8x128xf32> to vector<1x8x8x128xf32>
    %234 = arith.addf %232, %233 : vector<1x8x8x128xf32>
    %235 = vector.shape_cast %193 : vector<128xf32> to vector<1x1x1x128xf32>
    %236 = vector.broadcast %223 : vector<1x8x8x1xf32> to vector<1x8x8x128xf32>
    %237 = vector.broadcast %235 : vector<1x1x1x128xf32> to vector<1x8x8x128xf32>
    %238 = arith.mulf %236, %237 : vector<1x8x8x128xf32>
    %239 = arith.addf %234, %238 : vector<1x8x8x128xf32>
    %240 = vector.shape_cast %195 : vector<128xf32> to vector<1x1x1x128xf32>
    %241 = vector.broadcast %240 : vector<1x1x1x128xf32> to vector<1x8x8x128xf32>
    %242 = arith.addf %239, %241 : vector<1x8x8x128xf32>
    %243 = arith.negf %242 : vector<1x8x8x128xf32>
    %244 = math.exp %243 : vector<1x8x8x128xf32>
    %cst_64 = arith.constant 1.000000e+00 : f32
    %245 = vector.broadcast %cst_64 : f32 to vector<1x8x8x128xf32>
    %246 = arith.addf %245, %244 : vector<1x8x8x128xf32>
    %247 = arith.divf %245, %246 : vector<1x8x8x128xf32>
    %248 = arith.mulf %242, %247 : vector<1x8x8x128xf32>
    %249 = vector.shape_cast %248 : vector<1x8x8x128xf32> to vector<64x128xf32>
    %c1_65 = arith.constant 1 : index
    %c0_66 = arith.constant 0 : index
    %c0_67 = arith.constant 0 : index
    %250 = vector.load %arg6[%c1_65, %c0_66, %c0_67] : memref<2x128x16xf32, #tpu.memory_space<vmem>>, vector<1x128x16xf32>
    %251 = vector.shape_cast %250 : vector<1x128x16xf32> to vector<128x16xf32>
    %cst_68 = arith.constant dense<0.000000e+00> : vector<64x16xf32>
    %252 = tpu.matmul %249, %251, %cst_68 {dimension_numbers = #tpu.dot_dimension_numbers<[1], [0], [0], [1], [0, 0, 1, 1], [], []>} : vector<64x128xf32>, vector<128x16xf32>, vector<64x16xf32> -> vector<64x16xf32>
    %253 = vector.shape_cast %252 : vector<64x16xf32> to vector<1x8x8x16xf32>
    %254 = vector.shape_cast %197 : vector<16xf32> to vector<1x1x1x16xf32>
    %255 = vector.broadcast %254 : vector<1x1x1x16xf32> to vector<1x8x8x16xf32>
    %256 = arith.addf %253, %255 : vector<1x8x8x16xf32>
    %c1_69 = arith.constant 1 : index
    %c0_70 = arith.constant 0 : index
    %c0_71 = arith.constant 0 : index
    %257 = vector.load %arg5[%c1_69, %c0_70, %c0_71] : memref<2x32x4xf32, #tpu.memory_space<vmem>>, vector<1x32x4xf32>
    %258 = vector.shape_cast %257 : vector<1x32x4xf32> to vector<32x4xf32>
    %cst_72 = arith.constant dense<0.000000e+00> : vector<8x4xf32>
    %259 = tpu.matmul %189, %258, %cst_72 {dimension_numbers = #tpu.dot_dimension_numbers<[1], [0], [0], [1], [0, 0, 1, 1], [], []>} : vector<8x32xf32>, vector<32x4xf32>, vector<8x4xf32> -> vector<8x4xf32>
    %260 = vector.extract_strided_slice %259 {offsets = [0, 0], sizes = [8, 2], strides = [1, 1]} : vector<8x4xf32> to vector<8x2xf32>
    %261 = vector.shape_cast %260 : vector<8x2xf32> to vector<1x8x1x2xf32>
    %262 = vector.extract_strided_slice %259 {offsets = [0, 2], sizes = [8, 2], strides = [1, 1]} : vector<8x4xf32> to vector<8x2xf32>
    %263 = vector.shape_cast %262 : vector<8x2xf32> to vector<1x1x8x2xf32>
    %264 = vector.broadcast %261 : vector<1x8x1x2xf32> to vector<1x8x8x2xf32>
    %265 = vector.broadcast %263 : vector<1x1x8x2xf32> to vector<1x8x8x2xf32>
    %266 = arith.addf %264, %265 : vector<1x8x8x2xf32>
    %267 = vector.shape_cast %211 : vector<2xf32> to vector<1x1x1x2xf32>
    %268 = vector.broadcast %223 : vector<1x8x8x1xf32> to vector<1x8x8x2xf32>
    %269 = vector.broadcast %267 : vector<1x1x1x2xf32> to vector<1x8x8x2xf32>
    %270 = arith.mulf %268, %269 : vector<1x8x8x2xf32>
    %271 = arith.addf %266, %270 : vector<1x8x8x2xf32>
    %272 = vector.shape_cast %213 : vector<2xf32> to vector<1x1x1x2xf32>
    %273 = vector.broadcast %272 : vector<1x1x1x2xf32> to vector<1x8x8x2xf32>
    %274 = arith.addf %271, %273 : vector<1x8x8x2xf32>
    %275 = arith.negf %274 : vector<1x8x8x2xf32>
    %276 = math.exp %275 : vector<1x8x8x2xf32>
    %cst_73 = arith.constant 1.000000e+00 : f32
    %277 = vector.broadcast %cst_73 : f32 to vector<1x8x8x2xf32>
    %278 = arith.addf %277, %276 : vector<1x8x8x2xf32>
    %279 = arith.divf %277, %278 : vector<1x8x8x2xf32>
    %280 = arith.mulf %274, %279 : vector<1x8x8x2xf32>
    %281 = vector.extract_strided_slice %280 {offsets = [0, 0, 0, 0], sizes = [1, 8, 8, 1], strides = [1, 1, 1, 1]} : vector<1x8x8x2xf32> to vector<1x8x8x1xf32>
    %282 = vector.extract_strided_slice %191 {offsets = [3, 0], sizes = [1, 16], strides = [1, 1]} : vector<16x128xf32> to vector<1x16xf32>
    %283 = vector.shape_cast %282 : vector<1x16xf32> to vector<16xf32>
    %284 = vector.shape_cast %283 : vector<16xf32> to vector<1x1x1x16xf32>
    %285 = vector.broadcast %281 : vector<1x8x8x1xf32> to vector<1x8x8x16xf32>
    %286 = vector.broadcast %284 : vector<1x1x1x16xf32> to vector<1x8x8x16xf32>
    %287 = arith.mulf %285, %286 : vector<1x8x8x16xf32>
    %288 = arith.addf %256, %287 : vector<1x8x8x16xf32>
    %289 = vector.extract_strided_slice %280 {offsets = [0, 0, 0, 1], sizes = [1, 8, 8, 1], strides = [1, 1, 1, 1]} : vector<1x8x8x2xf32> to vector<1x8x8x1xf32>
    %290 = vector.extract_strided_slice %191 {offsets = [4, 0], sizes = [1, 16], strides = [1, 1]} : vector<16x128xf32> to vector<1x16xf32>
    %291 = vector.shape_cast %290 : vector<1x16xf32> to vector<16xf32>
    %292 = vector.shape_cast %291 : vector<16xf32> to vector<1x1x1x16xf32>
    %293 = vector.broadcast %289 : vector<1x8x8x1xf32> to vector<1x8x8x16xf32>
    %294 = vector.broadcast %292 : vector<1x1x1x16xf32> to vector<1x8x8x16xf32>
    %295 = arith.mulf %293, %294 : vector<1x8x8x16xf32>
    %296 = arith.addf %288, %295 : vector<1x8x8x16xf32>
    %297 = arith.negf %296 : vector<1x8x8x16xf32>
    %298 = math.exp %297 : vector<1x8x8x16xf32>
    %cst_74 = arith.constant 1.000000e+00 : f32
    %299 = vector.broadcast %cst_74 : f32 to vector<1x8x8x16xf32>
    %300 = arith.addf %299, %298 : vector<1x8x8x16xf32>
    %301 = arith.divf %299, %300 : vector<1x8x8x16xf32>
    %302 = arith.mulf %296, %301 : vector<1x8x8x16xf32>
    %303 = vector.shape_cast %302 : vector<1x8x8x16xf32> to vector<64x16xf32>
    %c1_75 = arith.constant 1 : index
    %c0_76 = arith.constant 0 : index
    %c0_77 = arith.constant 0 : index
    %304 = vector.load %arg7[%c1_75, %c0_76, %c0_77] : memref<2x16x64xf32, #tpu.memory_space<vmem>>, vector<1x16x64xf32>
    %305 = vector.shape_cast %304 : vector<1x16x64xf32> to vector<16x64xf32>
    %cst_78 = arith.constant dense<0.000000e+00> : vector<64x64xf32>
    %306 = tpu.matmul %303, %305, %cst_78 {dimension_numbers = #tpu.dot_dimension_numbers<[1], [0], [0], [1], [0, 0, 1, 1], [], []>} : vector<64x16xf32>, vector<16x64xf32>, vector<64x64xf32> -> vector<64x64xf32>
    %307 = vector.shape_cast %199 : vector<64xf32> to vector<1x64xf32>
    %308 = vector.broadcast %307 : vector<1x64xf32> to vector<64x64xf32>
    %309 = arith.addf %306, %308 : vector<64x64xf32>
    %310 = arith.negf %309 : vector<64x64xf32>
    %311 = math.exp %310 : vector<64x64xf32>
    %cst_79 = arith.constant 1.000000e+00 : f32
    %312 = vector.broadcast %cst_79 : f32 to vector<64x64xf32>
    %313 = arith.addf %312, %311 : vector<64x64xf32>
    %314 = arith.divf %312, %313 : vector<64x64xf32>
    %315 = arith.mulf %309, %314 : vector<64x64xf32>
    %316 = vector.shape_cast %201 : vector<64xf32> to vector<1x64xf32>
    %317 = vector.broadcast %316 : vector<1x64xf32> to vector<64x64xf32>
    %318 = arith.mulf %315, %317 : vector<64x64xf32>
    %cst_80 = arith.constant dense<0.000000e+00> : vector<64xf32>
    %319 = vector.multi_reduction <add>, %318, %cst_80 [1] : vector<64x64xf32> to vector<64xf32>
    %320 = vector.shape_cast %319 : vector<64xf32> to vector<64x1xf32>
    %321 = vector.broadcast %215 : f32 to vector<64x1xf32>
    %322 = arith.addf %320, %321 : vector<64x1xf32>
    %323 = vector.shape_cast %322 : vector<64x1xf32> to vector<1x8x8x1xf32>
    %324 = vector.broadcast %323 : vector<1x8x8x1xf32> to vector<1x8x8x3xf32>
    %325 = arith.mulf %324, %220 : vector<1x8x8x3xf32>
    %cst_81 = arith.constant dense<0.000000e+00> : vector<1x8x3xf32>
    %326 = vector.multi_reduction <add>, %325, %cst_81 [2] : vector<1x8x8x3xf32> to vector<1x8x3xf32>
    %327 = arith.addf %326, %140 : vector<1x8x3xf32>
    %cst_82 = arith.constant dense<0.000000e+00> : vector<1x8x16xf32>
    %328 = vector.multi_reduction <add>, %302, %cst_82 [2] : vector<1x8x8x16xf32> to vector<1x8x16xf32>
    %329 = vector.shape_cast %328 : vector<1x8x16xf32> to vector<8x16xf32>
    %cst_83 = arith.constant dense<0.000000e+00> : vector<8xf32>
    %330 = vector.multi_reduction <add>, %189, %cst_83 [1] : vector<8x32xf32> to vector<8xf32>
    %331 = vector.shape_cast %330 : vector<8xf32> to vector<8x1xf32>
    %cst_84 = arith.constant 3.200000e+01 : f32
    %332 = vector.broadcast %cst_84 : f32 to vector<8x1xf32>
    %333 = arith.divf %331, %332 : vector<8x1xf32>
    %334 = vector.broadcast %333 : vector<8x1xf32> to vector<8x32xf32>
    %335 = arith.subf %189, %334 : vector<8x32xf32>
    %336 = arith.mulf %335, %335 : vector<8x32xf32>
    %cst_85 = arith.constant dense<0.000000e+00> : vector<8xf32>
    %337 = vector.multi_reduction <add>, %336, %cst_85 [1] : vector<8x32xf32> to vector<8xf32>
    %338 = vector.shape_cast %337 : vector<8xf32> to vector<8x1xf32>
    %cst_86 = arith.constant 3.200000e+01 : f32
    %339 = vector.broadcast %cst_86 : f32 to vector<8x1xf32>
    %340 = arith.divf %338, %339 : vector<8x1xf32>
    %341 = vector.broadcast %333 : vector<8x1xf32> to vector<8x32xf32>
    %342 = arith.subf %189, %341 : vector<8x32xf32>
    %cst_87 = arith.constant 9.99999974E-6 : f32
    %343 = vector.broadcast %cst_87 : f32 to vector<8x1xf32>
    %344 = arith.addf %340, %343 : vector<8x1xf32>
    %345 = math.rsqrt %344 : vector<8x1xf32>
    %346 = vector.broadcast %345 : vector<8x1xf32> to vector<8x32xf32>
    %347 = arith.mulf %342, %346 : vector<8x32xf32>
    %348 = vector.shape_cast %203 : vector<32xf32> to vector<1x32xf32>
    %349 = vector.broadcast %348 : vector<1x32xf32> to vector<8x32xf32>
    %350 = arith.mulf %347, %349 : vector<8x32xf32>
    %351 = vector.shape_cast %205 : vector<32xf32> to vector<1x32xf32>
    %352 = vector.broadcast %351 : vector<1x32xf32> to vector<8x32xf32>
    %353 = arith.addf %350, %352 : vector<8x32xf32>
    %c1_88 = arith.constant 1 : index
    %c0_89 = arith.constant 0 : index
    %c0_90 = arith.constant 0 : index
    %354 = vector.load %arg8[%c1_88, %c0_89, %c0_90] : memref<2x32x64xf32, #tpu.memory_space<vmem>>, vector<1x32x64xf32>
    %355 = vector.shape_cast %354 : vector<1x32x64xf32> to vector<32x64xf32>
    %cst_91 = arith.constant dense<0.000000e+00> : vector<8x64xf32>
    %356 = tpu.matmul %353, %355, %cst_91 {dimension_numbers = #tpu.dot_dimension_numbers<[1], [0], [0], [1], [0, 0, 1, 1], [], []>} : vector<8x32xf32>, vector<32x64xf32>, vector<8x64xf32> -> vector<8x64xf32>
    %c1_92 = arith.constant 1 : index
    %c0_93 = arith.constant 0 : index
    %c0_94 = arith.constant 0 : index
    %357 = vector.load %arg9[%c1_92, %c0_93, %c0_94] : memref<2x16x64xf32, #tpu.memory_space<vmem>>, vector<1x16x64xf32>
    %358 = vector.shape_cast %357 : vector<1x16x64xf32> to vector<16x64xf32>
    %cst_95 = arith.constant dense<0.000000e+00> : vector<8x64xf32>
    %359 = tpu.matmul %329, %358, %cst_95 {dimension_numbers = #tpu.dot_dimension_numbers<[1], [0], [0], [1], [0, 0, 1, 1], [], []>} : vector<8x16xf32>, vector<16x64xf32>, vector<8x64xf32> -> vector<8x64xf32>
    %360 = arith.addf %356, %359 : vector<8x64xf32>
    %361 = vector.shape_cast %207 : vector<64xf32> to vector<1x64xf32>
    %362 = vector.broadcast %361 : vector<1x64xf32> to vector<8x64xf32>
    %363 = arith.addf %360, %362 : vector<8x64xf32>
    %364 = arith.negf %363 : vector<8x64xf32>
    %365 = math.exp %364 : vector<8x64xf32>
    %cst_96 = arith.constant 1.000000e+00 : f32
    %366 = vector.broadcast %cst_96 : f32 to vector<8x64xf32>
    %367 = arith.addf %366, %365 : vector<8x64xf32>
    %368 = arith.divf %366, %367 : vector<8x64xf32>
    %369 = arith.mulf %363, %368 : vector<8x64xf32>
    %c1_97 = arith.constant 1 : index
    %c0_98 = arith.constant 0 : index
    %c0_99 = arith.constant 0 : index
    %370 = vector.load %arg10[%c1_97, %c0_98, %c0_99] : memref<2x64x32xf32, #tpu.memory_space<vmem>>, vector<1x64x32xf32>
    %371 = vector.shape_cast %370 : vector<1x64x32xf32> to vector<64x32xf32>
    %cst_100 = arith.constant dense<0.000000e+00> : vector<8x32xf32>
    %372 = tpu.matmul %369, %371, %cst_100 {dimension_numbers = #tpu.dot_dimension_numbers<[1], [0], [0], [1], [0, 0, 1, 1], [], []>} : vector<8x64xf32>, vector<64x32xf32>, vector<8x32xf32> -> vector<8x32xf32>
    %373 = vector.shape_cast %209 : vector<32xf32> to vector<1x32xf32>
    %374 = vector.broadcast %373 : vector<1x32xf32> to vector<8x32xf32>
    %375 = arith.addf %372, %374 : vector<8x32xf32>
    %376 = arith.addf %375, %189 : vector<8x32xf32>
    %377 = vector.shape_cast %376 : vector<8x32xf32> to vector<1x8x32xf32>
    %c0_101 = arith.constant 0 : index
    %c0_102 = arith.constant 0 : index
    %c0_103 = arith.constant 0 : index
    %378 = vector.load %arg12[%c0_101, %c0_102, %c0_103] : memref<1x8x32xf32, #tpu.memory_space<vmem>>, vector<1x8x32xf32>
    tpu.vector_store %arg12[%c0_101, %c0_102, %c0_103], %377 {strides = array<i32>} : memref<1x8x32xf32, #tpu.memory_space<vmem>>, vector<1x8x32xf32>,
    %c0_104 = arith.constant 0 : index
    %c0_105 = arith.constant 0 : index
    %c0_106 = arith.constant 0 : index
    %379 = vector.load %arg13[%c0_104, %c0_105, %c0_106] : memref<1x8x3xf32, #tpu.memory_space<vmem>>, vector<1x8x3xf32>
    tpu.vector_store %arg13[%c0_104, %c0_105, %c0_106], %327 {strides = array<i32>} : memref<1x8x3xf32, #tpu.memory_space<vmem>>, vector<1x8x3xf32>,
    return
  }
  func.func @transform_0(%arg0: i32) -> (i32, i32, i32) {
    %c0_i32 = arith.constant 0 : i32
    %c0_i32_0 = arith.constant 0 : i32
    %c0_i32_1 = arith.constant 0 : i32
    return %arg0, %c0_i32, %c0_i32_0 : i32, i32, i32
  }
  func.func @transform_1(%arg0: i32) -> (i32, i32, i32) {
    %c0_i32 = arith.constant 0 : i32
    %c0_i32_0 = arith.constant 0 : i32
    %c0_i32_1 = arith.constant 0 : i32
    return %arg0, %c0_i32, %c0_i32_0 : i32, i32, i32
  }
  func.func @transform_2(%arg0: i32) -> (i32, i32, i32) {
    %c0_i32 = arith.constant 0 : i32
    %c0_i32_0 = arith.constant 0 : i32
    %c0_i32_1 = arith.constant 0 : i32
    %c0_i32_2 = arith.constant 0 : i32
    return %c0_i32, %c0_i32_0, %c0_i32_1 : i32, i32, i32
  }
  func.func @transform_3(%arg0: i32) -> (i32, i32, i32) {
    %c0_i32 = arith.constant 0 : i32
    %c0_i32_0 = arith.constant 0 : i32
    %c0_i32_1 = arith.constant 0 : i32
    %c0_i32_2 = arith.constant 0 : i32
    return %c0_i32, %c0_i32_0, %c0_i32_1 : i32, i32, i32
  }
  func.func @transform_4(%arg0: i32) -> (i32, i32, i32) {
    %c0_i32 = arith.constant 0 : i32
    %c0_i32_0 = arith.constant 0 : i32
    %c0_i32_1 = arith.constant 0 : i32
    %c0_i32_2 = arith.constant 0 : i32
    return %c0_i32, %c0_i32_0, %c0_i32_1 : i32, i32, i32
  }
  func.func @transform_5(%arg0: i32) -> (i32, i32, i32) {
    %c0_i32 = arith.constant 0 : i32
    %c0_i32_0 = arith.constant 0 : i32
    %c0_i32_1 = arith.constant 0 : i32
    %c0_i32_2 = arith.constant 0 : i32
    return %c0_i32, %c0_i32_0, %c0_i32_1 : i32, i32, i32
  }
  func.func @transform_6(%arg0: i32) -> (i32, i32, i32) {
    %c0_i32 = arith.constant 0 : i32
    %c0_i32_0 = arith.constant 0 : i32
    %c0_i32_1 = arith.constant 0 : i32
    %c0_i32_2 = arith.constant 0 : i32
    return %c0_i32, %c0_i32_0, %c0_i32_1 : i32, i32, i32
  }
  func.func @transform_7(%arg0: i32) -> (i32, i32, i32) {
    %c0_i32 = arith.constant 0 : i32
    %c0_i32_0 = arith.constant 0 : i32
    %c0_i32_1 = arith.constant 0 : i32
    %c0_i32_2 = arith.constant 0 : i32
    return %c0_i32, %c0_i32_0, %c0_i32_1 : i32, i32, i32
  }
  func.func @transform_8(%arg0: i32) -> (i32, i32, i32) {
    %c0_i32 = arith.constant 0 : i32
    %c0_i32_0 = arith.constant 0 : i32
    %c0_i32_1 = arith.constant 0 : i32
    %c0_i32_2 = arith.constant 0 : i32
    return %c0_i32, %c0_i32_0, %c0_i32_1 : i32, i32, i32
  }
  func.func @transform_9(%arg0: i32) -> (i32, i32, i32) {
    %c0_i32 = arith.constant 0 : i32
    %c0_i32_0 = arith.constant 0 : i32
    %c0_i32_1 = arith.constant 0 : i32
    %c0_i32_2 = arith.constant 0 : i32
    return %c0_i32, %c0_i32_0, %c0_i32_1 : i32, i32, i32
  }
  func.func @transform_10(%arg0: i32) -> (i32, i32, i32) {
    %c0_i32 = arith.constant 0 : i32
    %c0_i32_0 = arith.constant 0 : i32
    %c0_i32_1 = arith.constant 0 : i32
    %c0_i32_2 = arith.constant 0 : i32
    return %c0_i32, %c0_i32_0, %c0_i32_1 : i32, i32, i32
  }
  func.func @transform_11(%arg0: i32) -> (i32, i32, i32) {
    %c0_i32 = arith.constant 0 : i32
    %c0_i32_0 = arith.constant 0 : i32
    %c0_i32_1 = arith.constant 0 : i32
    return %arg0, %c0_i32, %c0_i32_0 : i32, i32, i32
  }
  func.func @transform_12(%arg0: i32) -> (i32, i32, i32) {
    %c0_i32 = arith.constant 0 : i32
    %c0_i32_0 = arith.constant 0 : i32
    %c0_i32_1 = arith.constant 0 : i32
    return %arg0, %c0_i32, %c0_i32_0 : i32, i32, i32
  }
}

</mosaic_0001>

<bundles_post_ra>
// kernel: egnn_network_forward.1
= control target key start
LH: loop header
LB: loop body
LE: loop exit
PB: predicated region body
PF: predicated region fallthrough
CT: control target
= control target key end

     0   :  { %s6300_s0 = inlined_call_operand.vmem [shape: f32[2,8,32], index: 0, kind: input, shape index: {}]   ;;  %s6301_s1 = inlined_call_operand.vmem [shape: f32[2,8,3], index: 1, kind: input, shape index: {}]   ;;  %s6302_s2 = inlined_call_operand.vmem [shape: f32[2,32,128], index: 2, kind: input, shape index: {}]   ;;  %s6303_s3 = inlined_call_operand.vmem [shape: f32[2,32,128], index: 3, kind: input, shape index: {}]   ;;  %s6304_s4 = inlined_call_operand.vmem [shape: f32[2,32,4], index: 4, kind: input, shape index: {}]   ;;  %s6305_s5 = inlined_call_operand.vmem [shape: f32[2,128,16], index: 5, kind: input, shape index: {}]   ;;  %s6306_s6 = inlined_call_operand.vmem [shape: f32[2,16,64], index: 6, kind: input, shape index: {}]   ;;  %s6307_s7 = inlined_call_operand.vmem [shape: f32[2,32,64], index: 7, kind: input, shape index: {}]   ;;  %s6308_s8 = inlined_call_operand.vmem [shape: f32[2,16,64], index: 8, kind: input, shape index: {}]   ;;  %s6309_s9 = inlined_call_operand.vmem [shape: f32[2,64,32], index: 9, kind: input, shape index: {}]   ;;  %s6310_s10 = inlined_call_operand.vmem [shape: f32[2,16,128], index: 10, kind: input, shape index: {}]   ;;  %s6311_s11 = inlined_call_operand.hbm [shape: f32[2,8,32], index: 11, kind: output, shape index: {0}]   ;;  %s6312_s12 = inlined_call_operand.vmem [shape: f32[2,8,3], index: 12, kind: output, shape index: {1}]  }
   0x1   :  { %6332 = sst [smem:[#allocation11_spill]] %s6300_s0 }
   0x2   :  { %6333 = sst [smem:[#allocation12_spill]] %s6301_s1 }
   0x3   :  { %18 = vsyncpa [#allocation3], 0 }
   0x4   :  { %20 = vsyncpa [#allocation3 + $0x1], 0  ;;  %s5129_s21 = smov 0   ;;  %s5131_s22 = smov 0  }
   0x5   :  { %s5133_s23 = smov 0   ;;  %s5135_s24 = smov 0  }
   0x6 LB: > { %6334 = sst [smem:[#allocation5_spill]] %s5048_s23  ;;  %s5150_s25 = sadd.s32 4294967295, %s5052_s24   ;;  %s5052_s24 = sphi %s5135_s24, %s6362_s24   ;;  %s5048_s23 = sphi %s5133_s23, %s6359_s23   ;;  %s5044_s22 = sphi %s5131_s22, %s6361_s22   ;;  %s5040_s21 = sphi %s5129_s21, %s6360_s21  }
   0x7   : > { %s3957_s26 = sadd.s32 4294967294, %s5052_s24   ;;  %s5154_s27 = sadd.s32 1, %s5052_s24  }
   0x8   : > { %s274_s28 = sadd.s32 1, %s5048_s23  ;;  %s271_s29 = ssub.s32 %s5052_s24, %s5154_s27 }
   0x9   : > { %p284_p0 = scmp.ne.s32.totalorder %s5048_s23, %s5044_s22  ;;  %p272_p1 = scmp.eq.s32.totalorder %s271_s29, 0 }
   0xa   : > { %p285_p2 = scmp.eq.s32.totalorder %s5150_s25, 1  ;;  %p290_p3 = scmp.ne.s32.totalorder %s5044_s22, %s5040_s21 }
   0xb   : > { %p291_p4 = scmp.eq.s32.totalorder %s3957_s26, 1  ;;  %p3960_p7 = scmp.ge.s32.totalorder %s5052_s24, 1 }
   0xc   : > { %s5165_s30 = scalar_select %p272_p1, %s5048_s23, %s274_s28  }
   0xd   : > { %p5167_p5 = por %p285_p2, %p284_p0  ;;  %p5171_p6 = por %p291_p4, %p290_p3 }
   0xe   : > { %6335 = sst [smem:[#allocation6_spill]] %s5165_s30  ;;  %p376_p8 = scmp.lt.s32.totalorder %s5052_s24, 3 }
  0x10   : > { %p377_p9 = pnand %p3960_p7, %p376_p8 }
  0x12   : > { %380 = sbr.rel (%p377_p9) target bundleno = 2175 (0x87f), region = 64 }
  0x19   : > { %v576_v0 = vld [vmem:[%s6302_s2] sm:$0xff]  ;;  %v577_v1 = vld [vmem:[%s6302_s2 + $0x8] sm:$0xff]  ;;  %v450_v3 = vlaneseq  ;;  %v6320_v4 = vmov 0.0|0.0   ;;  %v578_v7 = vld [vmem:[%s6302_s2 + $0x10] sm:$0xff]  ;;  %p425_p10 = scmp.lt.s32.totalorder %s5150_s25, 1  ;;  %vm5055_vm0 = vmmov 0  }
  0x1a   : > { %v654_v2 = vld [vmem:[%s6303_s3] sm:$0xff]  ;;  %4501 = vmatprep.subr.bf16.mxu0 %v6320_v4  ;;  %4507 = vmatprep.subr.bf16.mxu1 %v6320_v4  ;;  %v4502_v5 = vpack.c.bf16 %v577_v1, %v576_v0  ;;  %v655_v6 = vld [vmem:[%s6303_s3 + $0x8] sm:$0xff]  ;;  %v579_v8 = vld [vmem:[%s6302_s2 + $0x18] sm:$0xff]  ;;  %v6326_v12 = vmov 0.0   ;;  %v5057_v14 = vmov 1966171168  }
  0x1b   : > { %v4508_v9 = vpack.c.bf16 %v655_v6, %v654_v2  ;;  %v656_v10 = vld [vmem:[%s6303_s3 + $0x10] sm:$0xff]  ;;  %v657_v11 = vld [vmem:[%s6303_s3 + $0x18] sm:$0xff]  ;;  %4249 = vmatprep.mubr.msk.f32.mxu0 %vm5055_vm0, %v6326_v12  ;;  %4260 = vmatprep.mubr.msk.f32.mxu1 %vm5055_vm0, %v6326_v12  ;;  %v4505_v13 = vpack.c.bf16 %v579_v8, %v578_v7  ;;  %s426_s26 = scalar_select %p425_p10, %s5150_s25, 1  ;;  %v448_v15 = vunpack.c.l.s4 %v5057_v14  ;;  %v5209_v16 = vshrl.u32 %v450_v3, 7  ;;  %v1047_v18 = vld [vmem:[%s6304_s4] sm:$0xff] }
  0x1c   : > { %4503 = vmatpush3.bf16.msra.mxu0 %v4502_v5  ;;  %v4511_v17 = vpack.c.bf16 %v657_v11, %v656_v10  ;;  %v1048_v19 = vld [vmem:[%s6304_s4 + $0x8] sm:$0xff]  ;;  %s6338_s0 = sld [smem:[#allocation11_spill]]  ;;  %s6339_s1 = sld [smem:[#allocation12_spill]]  ;;  %vm580_vm1 = vcmask 261120   ;;  %v1049_v26 = vld [vmem:[%s6304_s4 + $0x10] sm:$0xff]  ;;  %v1050_v27 = vld [vmem:[%s6304_s4 + $0x18] sm:$0xff] }
  0x1d   : > { %4509 = vmatpush3.bf16.msra.mxu1 %v4508_v9  ;;  %4504 = vmatprep.subr.bf16.mxu0 %v6320_v4  ;;  %s5213_s30 = sshll.u32 %s426_s26, 3  ;;  %v449_v20 = vunpack.c.0.s8 %v448_v15  ;;  %v4546_v24 = vpack.c.bf16 %v1048_v19, %v1047_v18  ;;  %v5249_v29 = vsub.s32 0, %v5209_v16  ;;  %v4549_v33 = vpack.c.bf16 %v1050_v27, %v1049_v26  ;;  %v914_v14 = vld [vmem:[%s6305_s5] sm:$0xff]  ;;  %v915_v15 = vld [vmem:[%s6305_s5 + $0x8] sm:$0xff]  ;;  %v916_v19 = vld [vmem:[%s6305_s5 + $0x10] sm:$0xff]  ;;  %s6314_s18 = smov 124  }
  0x1e   : > { %4510 = vmatprep.subr.bf16.mxu1 %v6320_v4  ;;  %vm551_vm2 = vcmask 23552   ;;  %v5314_v11 = vsub.s32 3, %v5209_v16  ;;  %v920_v27 = vld [vmem:[%s6305_s5 + $0x30] sm:$0xff]  ;;  %s5060_s16 = smov 126   ;;  %vm1484_vm3 = vcmask 130048   ;;  %vm1897_vm4 = vcmask 1041409   ;;  %s436_s20 = scalar_lea.vmem %s6312_s12, %s5213_s30 }
  0x1f   : > { %v5238_v23 = vsub.s32 %v449_v20, %v5209_v16  ;;  %v917_v20 = vld [vmem:[%s6305_s5 + $0x18] sm:$0xff]  ;;  %vm1899_vm5 = vcmask 1042434   ;;  %vm1901_vm6 = vcmask 1043459   ;;  %vm1903_vm7 = vcmask 1044484   ;;  %s6315_s17 = smov 120   ;;  %s6344_s28 = smov 124  }
  0x20   : > { %4506 = vmatpush3.bf16.msra.mxu0 %v4505_v13  ;;  %v440_v13 = vld [vmem:[%s6310_s10 + $0x8] sm:$0xff]  ;;  %vm1905_vm8 = vcmask 1045509   ;;  %vm1907_vm9 = vcmask 1046534   ;;  %vm1909_vm10 = vcmask 1047559   ;;  %vm1682_vm11 = vcmask 523264   ;;  %s4106_s29 = sshll.u32 %s5150_s25, 7 }
  0x21   : > { %4512 = vmatpush3.bf16.msra.mxu1 %v4511_v17  ;;  %v4513_v17 = vpack.c.bf16 %v915_v15, %v914_v14  ;;  %v5326_v18 = vrot.slane %v440_v13, %v5314_v11 }
  0x22   : > { %s5225_s19 = scalar_lea.vmem %s6338_s0, %s5213_s30  ;;  %s5231_s26 = scalar_lea.vmem %s6339_s1, %s5213_s30  ;;  %4545 = vmatprep.subr.bf16.mxu1 %v6320_v4 }
  0x23   : > { %v5234_v21 = vld [vmem:[%s5225_s19] sm:$0xff]  ;;  %4514 = vmatprep.subr.bf16.mxu0 %v4513_v17  ;;  %s6351_s0 = smov 120  }
  0x24   : > { %v438_v22 = vld [vmem:[%s5231_s26] sm:$0xff]  ;;  %4250 = vmatmul.mubr.msk.f32.vlgmr.msra.gmra.mrb[0].mxu0 %vm580_vm1, %v5234_v21  ;;  %4261 = vmatmul.mubr.msk.f32.vlgmr.msra.gmra.mrb[0].mxu1 %vm580_vm1, %v5234_v21 }
  0x25   : > { %v446_v25 = vcombine.high %v438_v22, %v438_v22  ;;  %v453_v28 = vrot.slane %v438_v22, %v5238_v23  ;;  %4547 = vmatpush3.bf16.msra.mxu1 %v4546_v24  ;;  %4315 = vmatprep.mubr.msk.f32.mxu1 %vm5055_vm0, %v6326_v12  ;;  %v918_v24 = vld [vmem:[%s6305_s5 + $0x20] sm:$0xff] }
  0x26   : > { %4548 = vmatprep.subr.bf16.mxu1 %v6320_v4  ;;  %4516 = vmatpush3.bf16.msra.mxu0 %v4513_v17 }
  0x27   : > { %v460_v30 = vrot.slane %v446_v25, %v5238_v23  ;;  %v469_v31 = vrot.slane %v453_v28, %v5238_v23  ;;  %v461_v32 = vcombine.high %v453_v28, %v453_v28  ;;  %v919_v25 = vld [vmem:[%s6305_s5 + $0x28] sm:$0xff]  ;;  %v921_v28 = vld [vmem:[%s6305_s5 + $0x38] sm:$0xff] }
  0x28   : > { %v4521_v26 = vpack.c.bf16 %v919_v25, %v918_v24 }
  0x29   : > { %v476_v34 = vrot.slane %v460_v30, %v5238_v23  ;;  %v462_v35 = vcombine.high %v460_v30, %v460_v30  ;;  %v498_v36 = vrot.slane %v469_v31, %v5249_v29  ;;  %v491_v37 = vcombine.high %v469_v31, %v469_v31  ;;  %4550 = vmatpush3.bf16.msra.mxu1 %v4549_v33  ;;  %v922_v31 = vld [vmem:[%s6305_s5 + $0x40] sm:$0xff] }
  0x2a   : > { %v483_v38 = vrot.slane %v461_v32, %v5238_v23  ;;  %v4525_v30 = vpack.c.bf16 %v921_v28, %v920_v27  ;;  %v923_v32 = vld [vmem:[%s6305_s5 + $0x48] sm:$0xff]  ;;  %v5419_v28 = vsub.s32 1, %v5209_v16 }
  0x2b   : > { %v514_v39 = vrot.slane %v476_v34, %v5249_v29  ;;  %v490_v40 = vrot.slane %v462_v35, %v5238_v23  ;;  %v492_v41 = vcombine.high %v476_v34, %v476_v34  ;;  %v5265_v42 = vsub.f32 %v498_v36, %v438_v22  ;;  %v924_v34 = vld [vmem:[%s6305_s5 + $0x50] sm:$0xff]  ;;  %v925_v35 = vld [vmem:[%s6305_s5 + $0x58] sm:$0xff] }
  0x2c   : > { %v506_v43 = vrot.slane %v491_v37, %v5249_v29  ;;  %v502_v44 = vrot.slane %v483_v38, %v5249_v29  ;;  %v493_v45 = vcombine.high %v483_v38, %v483_v38  ;;  %4316 = vmatmul.mubr.msk.f32.vlgmr.msra.gmra.mrb[2].mxu1 %vm580_vm1, %v5234_v21  ;;  %v4529_v33 = vpack.c.bf16 %v923_v32, %v922_v31  ;;  %v926_v37 = vld [vmem:[%s6305_s5 + $0x60] sm:$0xff]  ;;  %v927_v38 = vld [vmem:[%s6305_s5 + $0x68] sm:$0xff] }
  0x2d   : > { %v5269_v46 = vsub.f32 %v514_v39, %v438_v22  ;;  %v518_v47 = vrot.slane %v490_v40, %v5249_v29  ;;  %v522_v48 = vrot.slane %v492_v41, %v5249_v29  ;;  %v494_v49 = vcombine.high %v490_v40, %v490_v40  ;;  %v928_v40 = vld [vmem:[%s6305_s5 + $0x70] sm:$0xff]  ;;  %v929_v41 = vld [vmem:[%s6305_s5 + $0x78] sm:$0xff] }
  0x2e   : > { %v543_v50 = vmul.f32 %v5265_v42, %v5265_v42  ;;  %v5275_v51 = vsub.f32 %v506_v43, %v438_v22  ;;  %v5277_v52 = vsub.f32 %v502_v44, %v438_v22  ;;  %v510_v53 = vrot.slane %v493_v45, %v5249_v29 }
  0x2f   : > { %v5280_v54 = vsub.f32 %v518_v47, %v438_v22  ;;  %v526_v55 = vrot.slane %v494_v49, %v5249_v29  ;;  %v547_v60 = vmul.f32 %v5269_v46, %v5269_v46  ;;  %v5298_v0 = vsub.f32 %v522_v48, %v438_v22 }
  0x30   : > { %v552_v56 = vsel %vm551_vm2, %v543_v50, 0.0  ;;  %v545_v57 = vmul.f32 %v5275_v51, %v5275_v51  ;;  %v544_v58 = vmul.f32 %v5277_v52, %v5277_v52  ;;  %v5290_v59 = vsub.f32 %v510_v53, %v438_v22 }
  0x31   : > { %553 = vadd.xlane.f32.xlu0 %v552_v56  ;;  %v548_v2 = vmul.f32 %v5280_v54, %v5280_v54  ;;  %v5303_v3 = vsub.f32 %v526_v55, %v438_v22  ;;  %v564_v5 = vsel %vm551_vm2, %v547_v60, 0.0  ;;  %v549_v6 = vmul.f32 %v5298_v0, %v5298_v0 }
  0x32   : > { %v558_v61 = vsel %vm551_vm2, %v545_v57, 0.0  ;;  %v555_v62 = vsel %vm551_vm2, %v544_v58, 0.0  ;;  %v546_v63 = vmul.f32 %v5290_v59, %v5290_v59  ;;  %v4517_v22 = vpack.c.bf16 %v917_v20, %v916_v19 }
  0x33   : > { %559 = vadd.xlane.f32.xlu1 %v558_v61  ;;  %v567_v7 = vsel %vm551_vm2, %v548_v2, 0.0  ;;  %v550_v8 = vmul.f32 %v5303_v3, %v5303_v3  ;;  %v570_v9 = vsel %vm551_vm2, %v549_v6, 0.0  ;;  %v4533_v36 = vpack.c.bf16 %v925_v35, %v924_v34 }
  0x34   : > { %v561_v1 = vsel %vm551_vm2, %v546_v63, 0.0  ;;  %4518 = vmatprep.subr.bf16.mxu0 %v4517_v22  ;;  %v4537_v39 = vpack.c.bf16 %v927_v38, %v926_v37  ;;  %v4541_v43 = vpack.c.bf16 %v929_v41, %v928_v40  ;;  %v1859_v44 = vsel %vm580_vm1, %v5234_v21, 0.0 }
  0x35   : > { %556 = vadd.xlane.f32.xlu0 %v555_v62  ;;  %v573_v10 = vsel %vm551_vm2, %v550_v8, 0.0  ;;  %4520 = vmatpush3.bf16.msra.mxu0 %v4517_v22 }
  0x36   : > { %4522 = vmatprep.subr.bf16.mxu0 %v4521_v26 }
  0x37   : > { %562 = vadd.xlane.f32.xlu1 %v561_v1  ;;  %v6324_v1 = vmov 0  }
  0x38   : > { %4705 = vset.pattern.permute.xlu1 %v6324_v1  ;;  %4703 = vset.pattern.permute.xlu0 %v6324_v1 }
  0x39   : > { %565 = vadd.xlane.f32.xlu0 %v564_v5  ;;  %4524 = vmatpush3.bf16.msra.mxu0 %v4521_v26 }
  0x3a   : > { %4526 = vmatprep.subr.bf16.mxu0 %v4525_v30 }
  0x3b   : > { %568 = vadd.xlane.f32.xlu1 %v567_v7 }
  0x3d   : > { %571 = vadd.xlane.f32.xlu0 %v570_v9  ;;  %4528 = vmatpush3.bf16.msra.mxu0 %v4525_v30 }
  0x3e   : > { %4530 = vmatprep.subr.bf16.mxu0 %v4529_v33 }
  0x3f   : > { %574 = vadd.xlane.f32.xlu1 %v573_v10  ;;  %v5408_v10 = vld [vmem:[%s6310_s10] sm:$0xff] }
  0x40   : > { %v829_v22 = vrot.slane %v5408_v10, %v5249_v29 }
  0x41   : > { %4532 = vmatpush3.bf16.msra.mxu0 %v4529_v33 }
  0x42   : > { %4534 = vmatprep.subr.bf16.mxu0 %v4533_v36 }
  0x45   : > { %4536 = vmatpush3.bf16.msra.mxu0 %v4533_v36 }
  0x46   : > { %4538 = vmatprep.subr.bf16.mxu0 %v4537_v39 }
  0x49   : > { %4540 = vmatpush3.bf16.msra.mxu0 %v4537_v39 }
  0x4a   : > { %4542 = vmatprep.subr.bf16.mxu0 %v4541_v43 }
  0x4d   : > { %4544 = vmatpush3.bf16.msra.mxu0 %v4541_v43 }
  0x4e   : > { %4564 = vmatprep.subr.bf16.mxu0 %v6320_v4 }
  0x50   : > { %1243 = vrot.lane.b32.xlu1 %v5326_v18, %s6314_s18 }
  0x74   : > { %1860 = vadd.xlane.f32.xlu1 %v1859_v44 }
  0xbe   : > { %v5375_v45 = vpop.xlane.xlu0 %553 }
  0xbf   : > { %v5379_v47 = vmul.f32 %v5326_v18, %v5375_v45 }
  0xc0   : > { %v5381_v48 = vpop.xlane.xlu1 %559 }
  0xc1   : > { %v5385_v49 = vmul.f32 %v5326_v18, %v5381_v48 }
  0xc2   : > { %v557_v50 = vpop.xlane.xlu0 %556 }
  0xc3   : > { %v5388_v53 = vmul.f32 %v5326_v18, %v557_v50  ;;  %v831_v31 = vmul.f32 %v829_v22, %v557_v50 }
  0xc4   : > { %v563_v55 = vpop.xlane.xlu1 %562 }
  0xc5   : > { %v5391_v56 = vmul.f32 %v5326_v18, %v563_v55  ;;  %v833_v35 = vmul.f32 %v829_v22, %v563_v55  ;;  %v849_v55 = vrot.slane %v5408_v10, %v5419_v28 }
  0xc6   : > { %v566_v57 = vpop.xlane.xlu0 %565 }
  0xc7   : > { %v5394_v58 = vmul.f32 %v5326_v18, %v566_v57  ;;  %v834_v41 = vmul.f32 %v829_v22, %v566_v57 }
  0xc8   : > { %v569_v60 = vpop.xlane.xlu1 %568 }
  0xc9   : > { %v5397_v61 = vmul.f32 %v5326_v18, %v569_v60 }
  0xcc   : > { %v575_v62 = vpop.xlane.xlu1 %574 }
  0xcd   : > { %v5400_v63 = vmul.f32 %v5326_v18, %v575_v62 }
  0xf7   : > { %v650_v2 = vpop.f32.mrb[0].mxu0  ;;  %v724_v7 = vpop.f32.mrb[0].mxu1 }
  0xf8   : > { %v729_v5 = vcombine.high %v650_v2, %v650_v2  ;;  %v736_v6 = vrot.slane %v650_v2, %v5238_v23  ;;  %v4251_v8 = vpop.f32.mrb[1].mxu0  ;;  %v4262_v9 = vpop.f32.mrb[1].mxu1 }
  0xfa   : > { %v743_v13 = vrot.slane %v729_v5, %v5238_v23  ;;  %v744_v14 = vcombine.high %v736_v6, %v736_v6  ;;  %v752_v15 = vrot.slane %v736_v6, %v5238_v23  ;;  %v5432_v6 = vpop.xlane.xlu0 %571 }
  0xfc   : > { %v745_v17 = vcombine.high %v743_v13, %v743_v13  ;;  %v759_v19 = vrot.slane %v743_v13, %v5238_v23  ;;  %v766_v20 = vrot.slane %v744_v14, %v5238_v23  ;;  %v781_v24 = vrot.slane %v752_v15, %v5249_v29 }
  0xfd   : > { %v774_v9 = vcombine.high %v752_v15, %v752_v15 }
  0xfe   : > { %v773_v25 = vrot.slane %v745_v17, %v5238_v23  ;;  %v775_v26 = vcombine.high %v759_v19, %v759_v19  ;;  %v776_v27 = vcombine.high %v766_v20, %v766_v20  ;;  %v785_v30 = vrot.slane %v766_v20, %v5249_v29 }
  0xff   : > { %v797_v32 = vrot.slane %v759_v19, %v5249_v29  ;;  %v818_v33 = vadd.f32 %v781_v24, %v724_v7  ;;  %v5425_v37 = vpop.f32.mrb[2].mxu1  ;;  %v835_v17 = vmul.f32 %v829_v22, %v569_v60  ;;  %v836_v19 = vmul.f32 %v829_v22, %v5432_v6 }
 0x100   : > { %v793_v34 = vrot.slane %v776_v27, %v5249_v29  ;;  %v801_v36 = vrot.slane %v773_v25, %v5249_v29  ;;  %v805_v38 = vrot.slane %v775_v26, %v5249_v29  ;;  %v819_v39 = vadd.f32 %v785_v30, %v724_v7  ;;  %1211 = vrot.lane.b32.xlu0 %v5425_v37, %s5060_s16  ;;  %v4317_v43 = vpop.f32.mrb[3].mxu1 }
 0x101   : > { %v822_v40 = vadd.f32 %v797_v32, %v724_v7  ;;  %v777_v8 = vcombine.high %v773_v25, %v773_v25  ;;  %v830_v26 = vmul.f32 %v829_v22, %v5375_v45  ;;  %v789_v27 = vrot.slane %v774_v9, %v5249_v29 }
 0x102   : > { %v821_v44 = vadd.f32 %v793_v34, %v724_v7  ;;  %v823_v50 = vadd.f32 %v801_v36, %v724_v7  ;;  %v824_v2 = vadd.f32 %v805_v38, %v724_v7  ;;  %v839_v5 = vadd.f32 %v831_v31, %v819_v39 }
 0x103   : > { %v842_v57 = vadd.f32 %v834_v41, %v822_v40  ;;  %v809_v24 = vrot.slane %v777_v8, %v5249_v29  ;;  %v837_v25 = vmul.f32 %v829_v22, %v575_v62  ;;  %v832_v32 = vmul.f32 %v829_v22, %v5381_v48 }
 0x104   : > { %v841_v13 = vadd.f32 %v833_v35, %v821_v44  ;;  %v5434_v14 = vadd.f32 %v849_v55, %v839_v5  ;;  %v843_v15 = vadd.f32 %v835_v17, %v823_v50  ;;  %v844_v34 = vadd.f32 %v836_v19, %v824_v2 }
 0x105   : > { %v5443_v31 = vadd.f32 %v849_v55, %v842_v57  ;;  %v825_v60 = vadd.f32 %v809_v24, %v724_v7  ;;  %v838_v36 = vadd.f32 %v830_v26, %v818_v33  ;;  %v820_v38 = vadd.f32 %v789_v27, %v724_v7 }
 0x106   : > { %v3968_v20 = vmul.f32 -1.442695, %v5434_v14  ;;  %v5441_v30 = vadd.f32 %v849_v55, %v841_v13  ;;  %v855_v45 = vadd.f32 %v849_v55, %v843_v15  ;;  %v856_v41 = vadd.f32 %v849_v55, %v844_v34 }
 0x107   : > { %v3971_v39 = vmul.f32 -1.442695, %v5443_v31  ;;  %v845_v40 = vadd.f32 %v837_v25, %v825_v60  ;;  %v850_v43 = vadd.f32 %v849_v55, %v838_v36  ;;  %v840_v44 = vadd.f32 %v832_v32, %v820_v38 }
 0x108   : > { %4716 = vpow2.f32 %v3968_v20  ;;  %v3970_v35 = vmul.f32 -1.442695, %v5441_v30  ;;  %v3972_v62 = vmul.f32 -1.442695, %v855_v45  ;;  %v3973_v22 = vmul.f32 -1.442695, %v856_v41 }
 0x109   : > { %v3967_v5 = vmul.f32 -1.442695, %v850_v43  ;;  %v852_v50 = vadd.f32 %v849_v55, %v840_v44  ;;  %v857_v48 = vadd.f32 %v849_v55, %v845_v40 }
 0x10a   : > { %4718 = vpow2.f32 %v3970_v35 }
 0x10b   : > { %4720 = vpow2.f32 %v3971_v39  ;;  %v3969_v2 = vmul.f32 -1.442695, %v852_v50  ;;  %v3974_v7 = vmul.f32 -1.442695, %v857_v48 }
 0x10c   : > { %4722 = vpow2.f32 %v3967_v5 }
 0x10d   : > { %4724 = vpow2.f32 %v3969_v2 }
 0x10e   : > { %4726 = vpow2.f32 %v3972_v62 }
 0x10f   : > { %4728 = vpow2.f32 %v3973_v22 }
 0x110   : > { %4730 = vpow2.f32 %v3974_v7 }
 0x112   : > { %v4717_v8 = vpop.eup %4716 }
 0x113   : > { %v883_v33 = vadd.f32 1.0, %v4717_v8 }
 0x114   : > { %v4719_v9 = vpop.eup %4718 }
 0x115   : > { %v4721_v13 = vpop.eup %4720  ;;  %4732 = vrcp.f32 %v883_v33  ;;  %v885_v20 = vadd.f32 1.0, %v4719_v9 }
 0x116   : > { %v4723_v57 = vpop.eup %4722  ;;  %v886_v26 = vadd.f32 1.0, %v4721_v13 }
 0x117   : > { %v882_v17 = vadd.f32 1.0, %v4723_v57  ;;  %v4725_v19 = vpop.eup %4724 }
 0x118   : > { %v4727_v24 = vpop.eup %4726  ;;  %v884_v55 = vadd.f32 1.0, %v4725_v19 }
 0x119   : > { %4734 = vrcp.f32 %v882_v17  ;;  %v4729_v27 = vpop.eup %4728  ;;  %v887_v15 = vadd.f32 1.0, %v4727_v24 }
 0x11a   : > { %4736 = vrcp.f32 %v884_v55  ;;  %v4731_v25 = vpop.eup %4730  ;;  %v888_v32 = vadd.f32 1.0, %v4729_v27 }
 0x11b   : > { %4738 = vrcp.f32 %v885_v20  ;;  %v889_v60 = vadd.f32 1.0, %v4731_v25 }
 0x11c   : > { %4740 = vrcp.f32 %v886_v26  ;;  %v1232_v26 = vmul.f32 %v5326_v18, %v5432_v6 }
 0x11d   : > { %4742 = vrcp.f32 %v887_v15 }
 0x11e   : > { %4744 = vrcp.f32 %v888_v32 }
 0x11f   : > { %v4733_v34 = vpop.eup %4732  ;;  %4746 = vrcp.f32 %v889_v60 }
 0x120   : > { %v907_v36 = vmul.f32 %v4733_v34, %v5434_v14 }
 0x123   : > { %v4735_v35 = vpop.eup %4734 }
 0x124   : > { %v906_v38 = vmul.f32 %v4735_v35, %v850_v43  ;;  %v4737_v39 = vpop.eup %4736 }
 0x125   : > { %v4739_v40 = vpop.eup %4738  ;;  %v908_v44 = vmul.f32 %v4737_v39, %v852_v50  ;;  %v1122_v50 = vcombine.high %v5425_v37, %v5425_v37  ;;  %v1244_v39 = vpop.permute.xlu1 %1243 }
 0x126   : > { %4295 = vmatprep.mubr.f32.mxu0 %v906_v38  ;;  %v4741_v5 = vpop.eup %4740  ;;  %v909_v62 = vmul.f32 %v4739_v40, %v5441_v30  ;;  %v1129_v30 = vrot.slane %v5425_v37, %v5238_v23 }
 0x127   : > { %4296 = vmatmul.mubr.f32.vlgmr.msra.gmra.mrb[2].mxu0 %v907_v36  ;;  %v4743_v22 = vpop.eup %4742  ;;  %v910_v2 = vmul.f32 %v4741_v5, %v5443_v31  ;;  %v1136_v31 = vrot.slane %v1122_v50, %v5238_v23 }
 0x128   : > { %4298 = vmatprep.mubr.f32.mxu0 %v908_v44  ;;  %v4745_v8 = vpop.eup %4744  ;;  %v911_v7 = vmul.f32 %v4743_v22, %v855_v45  ;;  %v1137_v9 = vcombine.high %v1129_v30, %v1129_v30 }
 0x129   : > { %v4747_v33 = vpop.eup %4746  ;;  %v912_v14 = vmul.f32 %v4745_v8, %v856_v41  ;;  %v1138_v13 = vcombine.high %v1136_v31, %v1136_v31  ;;  %v1152_v45 = vrot.slane %v1136_v31, %v5238_v23  ;;  %v1145_v41 = vrot.slane %v1129_v30, %v5238_v23 }
 0x12a   : > { %v913_v43 = vmul.f32 %v4747_v33, %v857_v48  ;;  %v1159_v48 = vrot.slane %v1137_v9, %v5238_v23 }
 0x12b   : > { %4299 = vmatmul.mubr.f32.gmra.mrb[4].mxu0 %v909_v62  ;;  %v1166_v57 = vrot.slane %v1138_v13, %v5238_v23  ;;  %v1168_v17 = vcombine.high %v1152_v45, %v1152_v45  ;;  %v1167_v19 = vcombine.high %v1145_v41, %v1145_v41  ;;  %v1174_v37 = vrot.slane %v1145_v41, %v5249_v29 }
 0x12c   : > { %4301 = vmatprep.mubr.f32.mxu0 %v910_v2  ;;  %v1169_v20 = vcombine.high %v1159_v48, %v1159_v48  ;;  %v1178_v55 = vrot.slane %v1159_v48, %v5249_v29  ;;  %v1190_v27 = vrot.slane %v1152_v45, %v5249_v29 }
 0x12d   : > { %v1170_v24 = vcombine.high %v1166_v57, %v1166_v57  ;;  %v1198_v15 = vrot.slane %v1168_v17, %v5249_v29  ;;  %v1182_v25 = vrot.slane %v1167_v19, %v5249_v29  ;;  %v1194_v34 = vrot.slane %v1166_v57, %v5249_v29 }
 0x12e   : > { %v1186_v32 = vrot.slane %v1169_v20, %v5249_v29 }
 0x12f   : > { %4302 = vmatmul.mubr.f32.gmra.mrb[6].mxu0 %v911_v7  ;;  %v1202_v35 = vrot.slane %v1170_v24, %v5249_v29 }
 0x130   : > { %4304 = vmatprep.mubr.f32.mxu0 %v912_v14 }
 0x133   : > { %4305 = vmatmul.mubr.f32.gmra.mrb[8].mxu0 %v913_v43 }
 0x134   : > { %4368 = vmatprep.mubr.msk.f32.mxu0 %vm5055_vm0, %v6326_v12 }
 0x172   : > { %v1212_v60 = vpop.permute.xlu0 %1211 }
 0x173   : > { %v1214_v36 = vadd.f32 %v1212_v60, %v1174_v37  ;;  %v1218_v38 = vadd.f32 %v1212_v60, %v1190_v27  ;;  %v1215_v18 = vadd.f32 %v1212_v60, %v1178_v55  ;;  %v1220_v6 = vadd.f32 %v1212_v60, %v1198_v15 }
 0x174   : > { %v1216_v40 = vadd.f32 %v1212_v60, %v1182_v25  ;;  %v1221_v44 = vadd.f32 %v1212_v60, %v1202_v35  ;;  %v1217_v5 = vadd.f32 %v1212_v60, %v1186_v32  ;;  %v1219_v62 = vadd.f32 %v1212_v60, %v1194_v34 }
 0x175   : > { %v1234_v22 = vadd.f32 %v5379_v47, %v1214_v36  ;;  %v1238_v2 = vadd.f32 %v5394_v58, %v1218_v38  ;;  %v1235_v8 = vadd.f32 %v5388_v53, %v1215_v18  ;;  %v1240_v7 = vadd.f32 %v1232_v26, %v1220_v6 }
 0x176   : > { %v1236_v33 = vadd.f32 %v5385_v49, %v1216_v40  ;;  %v1241_v14 = vadd.f32 %v5400_v63, %v1221_v44  ;;  %v1237_v43 = vadd.f32 %v5391_v56, %v1217_v5  ;;  %v1239_v50 = vadd.f32 %v5397_v61, %v1219_v62 }
 0x177   : > { %v1246_v30 = vadd.f32 %v1244_v39, %v1234_v22  ;;  %v1250_v31 = vadd.f32 %v1244_v39, %v1238_v2  ;;  %v1247_v9 = vadd.f32 %v1244_v39, %v1235_v8  ;;  %v1252_v13 = vadd.f32 %v1244_v39, %v1240_v7 }
 0x178   : > { %v1248_v45 = vadd.f32 %v1244_v39, %v1236_v33  ;;  %v1253_v41 = vadd.f32 %v1244_v39, %v1241_v14  ;;  %v1249_v57 = vadd.f32 %v1244_v39, %v1237_v43  ;;  %v1251_v60 = vadd.f32 %v1244_v39, %v1239_v50 }
 0x179   : > { %v3976_v47 = vmul.f32 -1.442695, %v1246_v30  ;;  %v3980_v48 = vmul.f32 -1.442695, %v1250_v31  ;;  %v3977_v58 = vmul.f32 -1.442695, %v1247_v9 }
 0x17a   : > { %v3982_v53 = vmul.f32 -1.442695, %v1252_v13  ;;  %v3978_v17 = vmul.f32 -1.442695, %v1248_v45  ;;  %v3983_v49 = vmul.f32 -1.442695, %v1253_v41 }
 0x17b   : > { %4748 = vpow2.f32 %v3976_v47  ;;  %v3979_v63 = vmul.f32 -1.442695, %v1249_v57  ;;  %v3981_v36 = vmul.f32 -1.442695, %v1251_v60 }
 0x17c   : > { %4750 = vpow2.f32 %v3980_v48 }
 0x17d   : > { %4752 = vpow2.f32 %v3977_v58  ;;  %v1478_v58 = vld [vmem:[%s6306_s6] sm:$0xff] }
 0x17e   : > { %4754 = vpow2.f32 %v3982_v53 }
 0x17f   : > { %4756 = vpow2.f32 %v3978_v17 }
 0x180   : > { %4758 = vpow2.f32 %v3983_v49 }
 0x181   : > { %4760 = vpow2.f32 %v3979_v63 }
 0x185   : > { %v4749_v56 = vpop.eup %4748 }
 0x186   : > { %v4751_v61 = vpop.eup %4750  ;;  %v1278_v19 = vadd.f32 1.0, %v4749_v56 }
 0x187   : > { %v4753_v20 = vpop.eup %4752  ;;  %v1282_v24 = vadd.f32 1.0, %v4751_v61 }
 0x188   : > { %v4755_v26 = vpop.eup %4754  ;;  %4762 = vrcp.f32 %v1278_v19  ;;  %v1279_v37 = vadd.f32 1.0, %v4753_v20 }
 0x189   : > { %v4757_v55 = vpop.eup %4756  ;;  %4764 = vrcp.f32 %v1282_v24  ;;  %v1284_v27 = vadd.f32 1.0, %v4755_v26 }
 0x18a   : > { %v4759_v15 = vpop.eup %4758  ;;  %4766 = vrcp.f32 %v1279_v37  ;;  %v1280_v25 = vadd.f32 1.0, %v4757_v55 }
 0x18b   : > { %v4761_v32 = vpop.eup %4760  ;;  %4768 = vrcp.f32 %v1284_v27  ;;  %v1285_v34 = vadd.f32 1.0, %v4759_v15  ;;  %v5502_v27 = vsub.s32 2, %v5209_v16 }
 0x18c   : > { %4770 = vrcp.f32 %v1280_v25  ;;  %v1281_v35 = vadd.f32 1.0, %v4761_v32  ;;  %v5508_v32 = vrot.slane %v5408_v10, %v5314_v11 }
 0x18d   : > { %4772 = vrcp.f32 %v1285_v34  ;;  %v6319_v34 = vsub.s32 4, %v5209_v16 }
 0x18e   : > { %4774 = vrcp.f32 %v1281_v35 }
 0x18f   : > { %4776 = vpow2.f32 %v3981_v36 }
 0x192   : > { %v4763_v38 = vpop.eup %4762 }
 0x193   : > { %v4765_v18 = vpop.eup %4764  ;;  %v1302_v6 = vmul.f32 %v4763_v38, %v1246_v30  ;;  %v6322_v30 = vmov 1   ;;  %v5519_v38 = vrot.slane %v5408_v10, %v6319_v34 }
 0x194   : > { %v4767_v40 = vpop.eup %4766  ;;  %v1306_v44 = vmul.f32 %v4765_v18, %v1250_v31 }
 0x195   : > { %v4769_v5 = vpop.eup %4768  ;;  %1312 = vperm.xlu0 %4703, %v1302_v6   ;;  %v1303_v62 = vmul.f32 %v4767_v40, %v1247_v9 }
 0x196   : > { %1332 = vperm.xlu1 %4705, %v1306_v44   ;;  %v4771_v22 = vpop.eup %4770  ;;  %v1308_v2 = vmul.f32 %v4769_v5, %v1252_v13  ;;  %v1861_v13 = vpop.xlane.xlu1 %1860 }
 0x197   : > { %v4773_v8 = vpop.eup %4772  ;;  %v1304_v39 = vmul.f32 %v4771_v22, %v1248_v45  ;;  %v1863_v45 = vmul.f32 0.03125, %v1861_v13 }
 0x198   : > { %v4775_v7 = vpop.eup %4774  ;;  %v1309_v33 = vmul.f32 %v4773_v8, %v1253_v41 }
 0x199   : > { %1317 = vperm.xlu0 %4703, %v1303_v62   ;;  %v4777_v14 = vpop.eup %4776  ;;  %v1305_v43 = vmul.f32 %v4775_v7, %v1249_v57  ;;  %v5484_v41 = vsub.f32 %v5234_v21, %v1863_v45  ;;  %v1479_v57 = vld [vmem:[%s6306_s6 + $0x8] sm:$0xff] }
 0x19a   : > { %1342 = vperm.xlu1 %4705, %v1308_v2   ;;  %v1283_v50 = vadd.f32 1.0, %v4777_v14  ;;  %v4551_v21 = vpack.c.bf16 %v1479_v57, %v1478_v58 }
 0x19b   : > { %v1865_v47 = vmul.f32 %v5484_v41, %v5484_v41 }
 0x19c   : > { %4778 = vrcp.f32 %v1283_v50  ;;  %4552 = vmatprep.subr.bf16.mxu1 %v4551_v21 }
 0x19d   : > { %1322 = vperm.xlu0 %4703, %v1304_v39   ;;  %v1866_v48 = vsel %vm580_vm1, %v1865_v47, 0.0  ;;  %4554 = vmatpush3.bf16.msra.mxu1 %v4551_v21 }
 0x19e   : > { %1347 = vperm.xlu1 %4705, %v1309_v33   ;;  %4555 = vmatprep.subr.bf16.mxu1 %v6320_v4 }
 0x1a1   : > { %1327 = vperm.xlu0 %4703, %v1305_v43  }
 0x1a2   : > { %4708 = vset.pattern.permute.xlu1 %v6322_v30 }
 0x1a3   : > { %1395 = vperm.xlu1 %4708, %v1308_v2  }
 0x1a5   : > { %4704 = vset.pattern.permute.xlu0 %v6322_v30 }
 0x1a6   : > { %1371 = vperm.xlu0 %4704, %v1302_v6   ;;  %v4779_v31 = vpop.eup %4778 }
 0x1a7   : > { %v1307_v9 = vmul.f32 %v4779_v31, %v1251_v60  ;;  %v5513_v60 = vrot.slane %v5408_v10, %v5502_v27 }
 0x1aa   : > { %1375 = vperm.xlu0 %4704, %v1303_v62  }
 0x1ae   : > { %1379 = vperm.xlu0 %4704, %v1304_v39  }
 0x1b2   : > { %4706 = vset.pattern.permute.xlu0 %v6324_v1 }
 0x1b3   : > { %1337 = vperm.xlu0 %4706, %v1307_v9  }
 0x1b7   : > { %4707 = vset.pattern.permute.xlu0 %v6322_v30 }
 0x1b8   : > { %1383 = vperm.xlu0 %4707, %v1305_v43  }
 0x1bc   : > { %1387 = vperm.xlu0 %4707, %v1306_v44  }
 0x1c0   : > { %1391 = vperm.xlu0 %4707, %v1307_v9  }
 0x1c4   : > { %1399 = vperm.xlu0 %4707, %v1309_v33  }
 0x1c7   : > { %1867 = vadd.xlane.f32.xlu1 %v1866_v48 }
 0x1c8   : > { %4709 = vset.pattern.permute.xlu0 %v6324_v1 }
 0x1fa   : > { %v4297_v53 = vpop.f32.mrb[2].mxu0 }
 0x1fb   : > { %v996_v17 = vpop.f32.mrb[3].mxu0  ;;  %v1040_v39 = vadd.f32 %v4297_v53, %v5513_v60 }
 0x1fc   : > { %v1039_v6 = vadd.f32 %v5513_v60, %v996_v17 }
 0x1fe   : > { %v4300_v49 = vpop.f32.mrb[4].mxu0 }
 0x1ff   : > { %v1006_v63 = vpop.f32.mrb[5].mxu0 }
 0x200   : > { %v1041_v45 = vadd.f32 %v5513_v60, %v1006_v63 }
 0x202   : > { %v5497_v56 = vpop.f32.mrb[6].mxu0 }
 0x203   : > { %v1016_v61 = vpop.f32.mrb[7].mxu0 }
 0x206   : > { %v5499_v19 = vpop.f32.mrb[8].mxu0 }
 0x207   : > { %v1026_v20 = vpop.f32.mrb[9].mxu0 }
 0x208   : > { %v1045_v62 = vadd.f32 %v5513_v60, %v1026_v20 }
 0x214   : > { %v1313_v24 = vpop.permute.xlu0 %1312 }
 0x215   : > { %v1333_v26 = vpop.permute.xlu1 %1332  ;;  %v1354_v36 = vmul.f32 %v5508_v32, %v1313_v24 }
 0x217   : > { %v1362_v22 = vadd.f32 %v1354_v36, %v1039_v6 }
 0x218   : > { %v1318_v37 = vpop.permute.xlu0 %1317 }
 0x219   : > { %v1343_v55 = vpop.permute.xlu1 %1342  ;;  %v1355_v44 = vmul.f32 %v5508_v32, %v1318_v37 }
 0x21a   : > { %v1360_v40 = vmul.f32 %v5508_v32, %v1343_v55  ;;  %v1042_v55 = vadd.f32 %v4300_v49, %v5513_v60 }
 0x21b   : > { %v1363_v14 = vadd.f32 %v1355_v44, %v1040_v39 }
 0x21c   : > { %v1323_v15 = vpop.permute.xlu0 %1322  ;;  %v1368_v7 = vadd.f32 %v1360_v40, %v1045_v62 }
 0x21d   : > { %v5504_v25 = vpop.permute.xlu1 %1347  ;;  %v1356_v50 = vmul.f32 %v5508_v32, %v1323_v15 }
 0x21f   : > { %v1364_v58 = vadd.f32 %v1356_v50, %v1041_v45 }
 0x220   : > { %v1328_v35 = vpop.permute.xlu0 %1327 }
 0x221   : > { %v1357_v63 = vmul.f32 %v5508_v32, %v1328_v35 }
 0x222   : > { %v1396_v18 = vpop.permute.xlu1 %1395 }
 0x223   : > { %v1412_v2 = vmul.f32 %v5519_v38, %v1396_v18  ;;  %v1358_v18 = vmul.f32 %v5508_v32, %v1333_v26  ;;  %v1365_v6 = vadd.f32 %v1357_v63, %v1042_v55 }
 0x225   : > { %v1372_v5 = vpop.permute.xlu0 %1371  ;;  %v5529_v31 = vadd.f32 %v1412_v2, %v1368_v7 }
 0x226   : > { %v1406_v8 = vmul.f32 %v5519_v38, %v1372_v5  ;;  %v1043_v5 = vadd.f32 %v5513_v60, %v1016_v61 }
 0x227   : > { %v3990_v57 = vmul.f32 -1.442695, %v5529_v31 }
 0x228   : > { %v1414_v33 = vadd.f32 %v1406_v8, %v1362_v22  ;;  %v1366_v8 = vadd.f32 %v1358_v18, %v1043_v5 }
 0x229   : > { %v1376_v43 = vpop.permute.xlu0 %1375 }
 0x22a   : > { %v3984_v9 = vmul.f32 -1.442695, %v1414_v33  ;;  %v1407_v13 = vmul.f32 %v5519_v38, %v1376_v43 }
 0x22c   : > { %4780 = vpow2.f32 %v3984_v9  ;;  %v5533_v47 = vadd.f32 %v1407_v13, %v1363_v14  ;;  %v1044_v14 = vadd.f32 %v5497_v56, %v5513_v60  ;;  %v1361_v13 = vmul.f32 %v5508_v32, %v5504_v25 }
 0x22d   : > { %v1380_v48 = vpop.permute.xlu0 %1379 }
 0x22e   : > { %v3985_v21 = vmul.f32 -1.442695, %v5533_v47  ;;  %v1408_v53 = vmul.f32 %v5519_v38, %v1380_v48 }
 0x230   : > { %4782 = vpow2.f32 %v3985_v21  ;;  %v5538_v17 = vadd.f32 %v1408_v53, %v1364_v58 }
 0x231   : > { %4784 = vpow2.f32 %v3990_v57  ;;  %v1046_v57 = vadd.f32 %v5499_v19, %v5513_v60  ;;  %v1888_v19 = vld [vmem:[%s6308_s8 + $0x8] sm:$0xff] }
 0x232   : > { %v3986_v20 = vmul.f32 -1.442695, %v5538_v17  ;;  %v1338_v24 = vpop.permute.xlu0 %1337 }
 0x233   : > { %v1359_v39 = vmul.f32 %v5508_v32, %v1338_v24  ;;  %v1887_v32 = vld [vmem:[%s6308_s8] sm:$0xff] }
 0x234   : > { %4786 = vpow2.f32 %v3986_v20  ;;  %v1369_v20 = vadd.f32 %v1361_v13, %v1046_v57 }
 0x235   : > { %v1367_v45 = vadd.f32 %v1359_v39, %v1044_v14 }
 0x236   : > { %v4781_v37 = vpop.eup %4780 }
 0x237   : > { %v1446_v15 = vadd.f32 1.0, %v4781_v37  ;;  %v1384_v36 = vpop.permute.xlu0 %1383 }
 0x238   : > { %v1409_v40 = vmul.f32 %v5519_v38, %v1384_v36 }
 0x239   : > { %4788 = vrcp.f32 %v1446_v15  ;;  %v4556_v15 = vpack.c.bf16 %v1888_v19, %v1887_v32 }
 0x23a   : > { %v4783_v44 = vpop.eup %4782  ;;  %v5546_v62 = vadd.f32 %v1409_v40, %v1365_v6 }
 0x23b   : > { %v1447_v22 = vadd.f32 1.0, %v4783_v44  ;;  %v1388_v2 = vpop.permute.xlu0 %1387  ;;  %v4785_v35 = vpop.eup %4784 }
 0x23c   : > { %v3987_v49 = vmul.f32 -1.442695, %v5546_v62  ;;  %v1410_v7 = vmul.f32 %v5519_v38, %v1388_v2  ;;  %v1452_v61 = vadd.f32 1.0, %v4785_v35 }
 0x23d   : > { %4790 = vrcp.f32 %v1447_v22 }
 0x23e   : > { %v4787_v26 = vpop.eup %4786  ;;  %4792 = vpow2.f32 %v3987_v49  ;;  %v5553_v43 = vadd.f32 %v1410_v7, %v1366_v8 }
 0x23f   : > { %v1448_v50 = vadd.f32 1.0, %v4787_v26  ;;  %v1392_v9 = vpop.permute.xlu0 %1391 }
 0x240   : > { %v3988_v48 = vmul.f32 -1.442695, %v5553_v43  ;;  %v1411_v58 = vmul.f32 %v5519_v38, %v1392_v9 }
 0x241   : > { %4794 = vrcp.f32 %v1448_v50 }
 0x242   : > { %4796 = vpow2.f32 %v3988_v48  ;;  %v5561_v56 = vadd.f32 %v1411_v58, %v1367_v45 }
 0x243   : > { %v4789_v21 = vpop.eup %4788  ;;  %4798 = vrcp.f32 %v1452_v61  ;;  %v1400_v53 = vpop.permute.xlu0 %1399 }
 0x244   : > { %v1470_v24 = vmul.f32 %v4789_v21, %v1414_v33  ;;  %v3989_v63 = vmul.f32 -1.442695, %v5561_v56  ;;  %v1413_v25 = vmul.f32 %v5519_v38, %v1400_v53 }
 0x246   : > { %v1803_v60 = vsel %vm1484_vm3, %v1470_v24, 0.0  ;;  %4800 = vpow2.f32 %v3989_v63  ;;  %v5572_v37 = vadd.f32 %v1413_v25, %v1369_v20  ;;  %4322 = vmatprep.mubr.msk.f32.mxu1 %vm1484_vm3, %v1470_v24 }
 0x247   : > { %v4791_v33 = vpop.eup %4790  ;;  %v1804_v55 = vrot.slane %v1803_v60, 4 }
 0x248   : > { %v4793_v38 = vpop.eup %4792  ;;  %v1471_v36 = vmul.f32 %v4791_v33, %v5533_v47  ;;  %v3991_v18 = vmul.f32 -1.442695, %v5572_v37 }
 0x249   : > { %v1805_v6 = vadd.f32 %v1804_v55, %v1803_v60  ;;  %v1449_v40 = vadd.f32 1.0, %v4793_v38 }
 0x24a   : > { %v1810_v44 = vsel %vm1484_vm3, %v1471_v36, 0.0  ;;  %4802 = vpow2.f32 %v3991_v18  ;;  %4323 = vmatmul.mubr.msk.f32.vlgmr.msra.gmra.mrb[4].mxu1 %vm1484_vm3, %v1471_v36 }
 0x24b   : > { %v4795_v5 = vpop.eup %4794  ;;  %v1806_v22 = vrot.slane %v1805_v6, 2  ;;  %v1811_v2 = vrot.slane %v1810_v44, 4  ;;  %4804 = vrcp.f32 %v1449_v40  ;;  %4557 = vmatpush3.bf16.msra.mxu1 %v4556_v15 }
 0x24c   : > { %v4797_v35 = vpop.eup %4796  ;;  %v1472_v8 = vmul.f32 %v4795_v5, %v5538_v17  ;;  %4558 = vmatprep.subr.bf16.mxu1 %v6320_v4 }
 0x24d   : > { %v4799_v47 = vpop.eup %4798  ;;  %v1807_v39 = vadd.f32 %v1806_v22, %v1805_v6  ;;  %v1812_v49 = vadd.f32 %v1811_v2, %v1810_v44  ;;  %v1450_v7 = vadd.f32 1.0, %v4797_v35 }
 0x24e   : > { %v1817_v26 = vsel %vm1484_vm3, %v1472_v8, 0.0  ;;  %4325 = vmatprep.mubr.msk.f32.mxu1 %vm1484_vm3, %v1472_v8  ;;  %v1476_v9 = vmul.f32 %v4799_v47, %v5529_v31 }
 0x24f   : > { %v1813_v14 = vrot.slane %v1812_v49, 2  ;;  %v1818_v61 = vrot.slane %v1817_v26, 4  ;;  %4806 = vrcp.f32 %v1450_v7  ;;  %v1808_v13 = vrot.slane %v1807_v39, 1 }
 0x250   : > { %v4801_v50 = vpop.eup %4800  ;;  %v1845_v53 = vsel %vm1484_vm3, %v1476_v9, 0.0 }
 0x251   : > { %v1814_v45 = vadd.f32 %v1813_v14, %v1812_v49  ;;  %v1819_v48 = vadd.f32 %v1818_v61, %v1817_v26  ;;  %v1451_v17 = vadd.f32 1.0, %v4801_v50  ;;  %v1809_v24 = vadd.f32 %v1808_v13, %v1807_v39 }
 0x252   : > { %v1846_v33 = vrot.slane %v1845_v53, 4 }
 0x253   : > { %v1815_v58 = vrot.slane %v1814_v45, 1  ;;  %v1820_v57 = vrot.slane %v1819_v48, 2  ;;  %4808 = vrcp.f32 %v1451_v17 }
 0x254   : > { %v4803_v21 = vpop.eup %4802  ;;  %v1868_v15 = vpop.xlane.xlu1 %1867  ;;  %v1847_v5 = vadd.f32 %v1846_v33, %v1845_v53 }
 0x255   : > { %v4805_v20 = vpop.eup %4804  ;;  %v1816_v63 = vadd.f32 %v1815_v58, %v1814_v45  ;;  %v1821_v25 = vadd.f32 %v1820_v57, %v1819_v48  ;;  %v1453_v32 = vadd.f32 1.0, %v4803_v21 }
 0x256   : > { %v1473_v19 = vmul.f32 %v4805_v20, %v5546_v62  ;;  %v1869_v62 = vmul.f32 0.03125, %v1868_v15  ;;  %v1848_v26 = vrot.slane %v1847_v5, 2  ;;  %v1883_v15 = vld [vmem:[%s6307_s7] sm:$0xff] }
 0x257   : > { %v1898_v31 = vsel %vm1897_vm4, %v1816_v63, %v1809_v24  ;;  %v1822_v60 = vrot.slane %v1821_v25, 1  ;;  %4810 = vrcp.f32 %v1453_v32 }
 0x258   : > { %v1824_v55 = vsel %vm1484_vm3, %v1473_v19, 0.0  ;;  %4326 = vmatmul.mubr.msk.f32.gmra.mrb[6].mxu1 %vm1484_vm3, %v1473_v19  ;;  %v1870_v7 = vadd.f32 1e-05, %v1869_v62  ;;  %v1849_v58 = vadd.f32 %v1848_v26, %v1847_v5 }
 0x259   : > { %v4807_v38 = vpop.eup %4806  ;;  %v1823_v36 = vadd.f32 %v1822_v60, %v1821_v25  ;;  %v1825_v18 = vrot.slane %v1824_v55, 4 }
 0x25a   : > { %v1474_v6 = vmul.f32 %v4807_v38, %v5553_v43  ;;  %4812 = vrsqrt.f32 %v1870_v7  ;;  %v1850_v25 = vrot.slane %v1849_v58, 1  ;;  %v1884_v38 = vld [vmem:[%s6307_s7 + $0x8] sm:$0xff] }
 0x25b   : > { %v1900_v40 = vsel %vm1899_vm5, %v1823_v36, %v1898_v31  ;;  %v1826_v44 = vadd.f32 %v1825_v18, %v1824_v55  ;;  %v6318_v36 = vsub.s32 7, %v5209_v16  ;;  %v4559_v5 = vpack.c.bf16 %v1884_v38, %v1883_v15 }
 0x25c   : > { %v1831_v22 = vsel %vm1484_vm3, %v1474_v6, 0.0  ;;  %4328 = vmatprep.mubr.msk.f32.mxu1 %vm1484_vm3, %v1474_v6  ;;  %v1851_v55 = vadd.f32 %v1850_v25, %v1849_v58  ;;  %v2074_v58 = vld [vmem:[%s6309_s9 + $0x30] sm:$0xff] }
 0x25d   : > { %v4809_v2 = vpop.eup %4808  ;;  %v1827_v35 = vrot.slane %v1826_v44, 2  ;;  %v1832_v8 = vrot.slane %v1831_v22, 4 }
 0x25e   : > { %v1475_v47 = vmul.f32 %v4809_v2, %v5561_v56  ;;  %v1885_v2 = vld [vmem:[%s6307_s7 + $0x10] sm:$0xff] }
 0x25f   : > { %v1828_v39 = vadd.f32 %v1827_v35, %v1826_v44  ;;  %v1833_v49 = vadd.f32 %v1832_v8, %v1831_v22  ;;  %v1886_v35 = vld [vmem:[%s6307_s7 + $0x18] sm:$0xff]  ;;  %v1876_v8 = vrot.slane %v5408_v10, %v6318_v36 }
 0x260   : > { %v1838_v43 = vsel %vm1484_vm3, %v1475_v47, 0.0  ;;  %4329 = vmatmul.mubr.msk.f32.gmra.mrb[8].mxu1 %vm1484_vm3, %v1475_v47 }
 0x261   : > { %v4811_v14 = vpop.eup %4810  ;;  %v1829_v61 = vrot.slane %v1828_v39, 1  ;;  %v1834_v50 = vrot.slane %v1833_v49, 2  ;;  %v1839_v13 = vrot.slane %v1838_v43, 4  ;;  %4331 = vmatprep.mubr.msk.f32.mxu1 %vm1484_vm3, %v1476_v9 }
 0x262   : > { %v1477_v45 = vmul.f32 %v4811_v14, %v5572_v37  ;;  %v2069_v14 = vld [vmem:[%s6309_s9 + $0x8] sm:$0xff] }
 0x263   : > { %v1830_v48 = vadd.f32 %v1829_v61, %v1828_v39  ;;  %v1835_v17 = vadd.f32 %v1834_v50, %v1833_v49  ;;  %v1840_v56 = vadd.f32 %v1839_v13, %v1838_v43  ;;  %v4562_v39 = vpack.c.bf16 %v1886_v35, %v1885_v2  ;;  %v5631_v49 = vld [vmem:[%s6310_s10 + $0x8] sm:$0xff]  ;;  %v2068_v43 = vld [vmem:[%s6309_s9] sm:$0xff]  ;;  %v2070_v50 = vld [vmem:[%s6309_s9 + $0x10] sm:$0xff] }
 0x264   : > { %v1852_v57 = vsel %vm1484_vm3, %v1477_v45, 0.0  ;;  %4332 = vmatmul.mubr.msk.f32.gmra.mrb[10].mxu1 %vm1484_vm3, %v1477_v45  ;;  %v4813_v18 = vpop.eup %4812  ;;  %v1881_v10 = vrot.slane %v5631_v49, %v5249_v29  ;;  %v441_v26 = vrot.slane %v5631_v49, 3  ;;  %v4565_v61 = vpack.c.bf16 %v2069_v14, %v2068_v43  ;;  %v2071_v13 = vld [vmem:[%s6309_s9 + $0x18] sm:$0xff] }
 0x265   : > { %v1902_v21 = vsel %vm1901_vm6, %v1830_v48, %v1900_v40  ;;  %v1836_v53 = vrot.slane %v1835_v17, 1  ;;  %v1841_v20 = vrot.slane %v1840_v56, 2  ;;  %v1853_v24 = vrot.slane %v1852_v57, 4  ;;  %4338 = vmatprep.mubr.msk.f32.mxu1 %vm5055_vm0, %v6326_v12  ;;  %v2072_v48 = vld [vmem:[%s6309_s9 + $0x20] sm:$0xff] }
 0x266   : > { %v1872_v22 = vmul.f32 %v4813_v18, %v5484_v41  ;;  %442 = vrot.lane.b32.xlu0 %v441_v26, %s6315_s17  ;;  %4566 = vmatpush3.bf16.msra.mxu0 %v4565_v61  ;;  %v4568_v45 = vpack.c.bf16 %v2071_v13, %v2070_v50  ;;  %v6316_v35 = vsub.s32 6, %v5209_v16  ;;  %s6257_s17 = scalar_lea.hbm %s6311_s11, %s4106_s29 }
 0x267   : > { %v1837_v9 = vadd.f32 %v1836_v53, %v1835_v17  ;;  %v1842_v37 = vadd.f32 %v1841_v20, %v1840_v56  ;;  %v1854_v63 = vadd.f32 %v1853_v24, %v1852_v57  ;;  %4567 = vmatprep.subr.bf16.mxu0 %v6320_v4  ;;  %v2073_v17 = vld [vmem:[%s6309_s9 + $0x28] sm:$0xff]  ;;  %v2075_v57 = vld [vmem:[%s6309_s9 + $0x38] sm:$0xff]  ;;  %v6317_v53 = vsub.s32 5, %v5209_v16  ;;  %v4985_v20 = vld [vmem:[%s6310_s10] sm:$0xff] }
 0x268   : > { %v1877_v41 = vmul.f32 %v1876_v8, %v1872_v22  ;;  %v4571_v56 = vpack.c.bf16 %v2073_v17, %v2072_v48  ;;  %v5679_v26 = vrot.slane %v4985_v20, %v6316_v35 }
 0x269   : > { %v1843_v32 = vrot.slane %v1842_v37, 1  ;;  %v1855_v19 = vrot.slane %v1854_v63, 2  ;;  %v1904_v31 = vsel %vm1903_vm7, %v1837_v9, %v1902_v21  ;;  %v4574_v21 = vpack.c.bf16 %v2075_v57, %v2074_v58 }
 0x26a   : > { %v1882_v7 = vadd.f32 %v1881_v10, %v1877_v41  ;;  %4569 = vmatpush3.bf16.msra.mxu0 %v4568_v45  ;;  %v1483_v24 = vrot.slane %v4985_v20, %v6317_v53 }
 0x26b   : > { %v1844_v60 = vadd.f32 %v1843_v32, %v1842_v37  ;;  %v1856_v33 = vadd.f32 %v1855_v19, %v1854_v63  ;;  %4570 = vmatprep.subr.bf16.mxu0 %v6320_v4 }
 0x26d   : > { %v1857_v6 = vrot.slane %v1856_v33, 1  ;;  %v1906_v40 = vsel %vm1905_vm8, %v1844_v60, %v1904_v31 }
 0x26e   : > { %v1908_v44 = vsel %vm1907_vm9, %v1851_v55, %v1906_v40  ;;  %4572 = vmatpush3.bf16.msra.mxu0 %v4571_v56 }
 0x26f   : > { %v1858_v62 = vadd.f32 %v1857_v6, %v1856_v33  ;;  %4573 = vmatprep.subr.bf16.mxu0 %v6320_v4 }
 0x271   : > { %v1910_v47 = vsel %vm1909_vm10, %v1858_v62, %v1908_v44 }
 0x272   : > { %4339 = vmatmul.mubr.msk.f32.vlgmr.msra.gmra.mrb[12].mxu1 %vm1484_vm3, %v1910_v47  ;;  %4575 = vmatpush3.bf16.msra.mxu0 %v4574_v21 }
 0x273   : > { %4560 = vmatpush3.bf16.msra.mxu1 %v4559_v5  ;;  %4349 = vmatprep.mubr.msk.f32.mxu1 %vm5055_vm0, %v6326_v12 }
 0x274   : > { %4561 = vmatprep.subr.bf16.mxu1 %v6320_v4 }
 0x277   : > { %4563 = vmatpush3.bf16.msra.mxu1 %v4562_v39 }
 0x278   : > { %4576 = vmatprep.subr.bf16.mxu1 %v6320_v4 }
 0x27a   : > { %4350 = vmatmul.mubr.msk.f32.vlgmr.msra.gmra.mrb[14].mxu1 %vm580_vm1, %v1882_v7 }
 0x27b   : > { %4379 = vmatprep.mubr.msk.f32.mxu1 %vm5055_vm0, %v6326_v12 }
 0x2d8   : > { %v443_v37 = vpop.permute.xlu0 %442 }
 0x2d9   : > { %4651 = vpush %v443_v37 }
 0x30a   : > { %s4652_s18 = spop %4651 }
 0x31d   : > { %v4324_v9 = vpop.f32.mrb[4].mxu1 }
 0x31e   : > { %v1581_v63 = vadd.f32 %v4324_v9, %v1483_v24  ;;  %v1575_v25 = vpop.f32.mrb[5].mxu1 }
 0x31f   : > { %v1576_v32 = vadd.f32 %v1575_v25, %v1483_v24 }
 0x320   : > { %v4001_v19 = vmul.f32 -1.442695, %v1581_v63 }
 0x321   : > { %v4000_v31 = vmul.f32 -1.442695, %v1576_v32 }
 0x322   : > { %4814 = vpow2.f32 %v4001_v19 }
 0x323   : > { %4816 = vpow2.f32 %v4000_v31 }
 0x32b   : > { %v4327_v60 = vpop.f32.mrb[6].mxu1 }
 0x32c   : > { %v4815_v33 = vpop.eup %4814  ;;  %v1591_v55 = vadd.f32 %v4327_v60, %v1483_v24  ;;  %v1585_v15 = vpop.f32.mrb[7].mxu1 }
 0x32d   : > { %v4817_v38 = vpop.eup %4816  ;;  %v1639_v18 = vadd.f32 1.0, %v4815_v33  ;;  %v1586_v6 = vadd.f32 %v1585_v15, %v1483_v24 }
 0x32e   : > { %v1638_v40 = vadd.f32 1.0, %v4817_v38  ;;  %v4003_v44 = vmul.f32 -1.442695, %v1591_v55 }
 0x32f   : > { %4818 = vrcp.f32 %v1639_v18  ;;  %v4002_v62 = vmul.f32 -1.442695, %v1586_v6 }
 0x330   : > { %4820 = vrcp.f32 %v1638_v40 }
 0x331   : > { %4822 = vpow2.f32 %v4003_v44 }
 0x332   : > { %4824 = vpow2.f32 %v4002_v62 }
 0x333   : > { %v4330_v5 = vpop.f32.mrb[8].mxu1 }
 0x334   : > { %v1601_v22 = vadd.f32 %v4330_v5, %v1483_v24  ;;  %v1595_v2 = vpop.f32.mrb[9].mxu1 }
 0x335   : > { %v1596_v8 = vadd.f32 %v1595_v2, %v1483_v24  ;;  %v2059_v2 = vrot.slane %v5631_v49, %v5419_v28 }
 0x336   : > { %v4005_v47 = vmul.f32 -1.442695, %v1601_v22 }
 0x337   : > { %v4004_v39 = vmul.f32 -1.442695, %v1596_v8  ;;  %v4333_v41 = vpop.f32.mrb[10].mxu1 }
 0x338   : > { %4826 = vpow2.f32 %v4005_v47  ;;  %v5675_v10 = vadd.f32 %v4333_v41, %v1483_v24  ;;  %v1605_v7 = vpop.f32.mrb[11].mxu1 }
 0x339   : > { %v4819_v43 = vpop.eup %4818  ;;  %4828 = vpow2.f32 %v4004_v39  ;;  %v1606_v14 = vadd.f32 %v1605_v7, %v1483_v24 }
 0x33a   : > { %v4821_v61 = vpop.eup %4820  ;;  %v1663_v50 = vmul.f32 %v4819_v43, %v1581_v63  ;;  %v4007_v13 = vmul.f32 -1.442695, %v5675_v10 }
 0x33b   : > { %v4823_v45 = vpop.eup %4822  ;;  %v1662_v48 = vmul.f32 %v4821_v61, %v1576_v32  ;;  %v4006_v17 = vmul.f32 -1.442695, %v1606_v14 }
 0x33c   : > { %v4825_v56 = vpop.eup %4824  ;;  %v1641_v58 = vadd.f32 1.0, %v4823_v45  ;;  %4830 = vpow2.f32 %v4007_v13  ;;  %v1675_v57 = vmul.f32 %v5679_v26, %v1663_v50 }
 0x33d   : > { %v1640_v21 = vadd.f32 1.0, %v4825_v56  ;;  %4832 = vpow2.f32 %v4006_v17  ;;  %v1674_v24 = vmul.f32 %v5679_v26, %v1662_v48 }
 0x33e   : > { %4834 = vrcp.f32 %v1641_v58  ;;  %v1686_v20 = vsel %vm1682_vm11, %v1675_v57, 0.0 }
 0x33f   : > { %4836 = vrcp.f32 %v1640_v21  ;;  %1687 = vadd.xlane.f32.xlu0 %v1686_v20  ;;  %v1683_v37 = vsel %vm1682_vm11, %v1674_v24, 0.0 }
 0x342   : > { %v4827_v9 = vpop.eup %4826 }
 0x343   : > { %v4829_v63 = vpop.eup %4828  ;;  %v1643_v25 = vadd.f32 1.0, %v4827_v9  ;;  %1684 = vadd.xlane.f32.xlu0 %v1683_v37 }
 0x344   : > { %v1642_v32 = vadd.f32 1.0, %v4829_v63 }
 0x345   : > { %4838 = vrcp.f32 %v1643_v25  ;;  %v1979_v19 = vpop.f32.mrb[12].mxu1 }
 0x346   : > { %v4831_v31 = vpop.eup %4830  ;;  %4840 = vrcp.f32 %v1642_v32  ;;  %v4340_v60 = vpop.f32.mrb[13].mxu1 }
 0x347   : > { %v4833_v33 = vpop.eup %4832  ;;  %v1645_v15 = vadd.f32 1.0, %v4831_v31  ;;  %v4016_v60 = vld [vmem:[%s6302_s2 + $0x30] sm:$0xff] }
 0x348   : > { %v4835_v38 = vpop.eup %4834  ;;  %v1644_v18 = vadd.f32 1.0, %v4833_v33  ;;  %v4017_v33 = vld [vmem:[%s6302_s2 + $0x38] sm:$0xff] }
 0x349   : > { %v4837_v40 = vpop.eup %4836  ;;  %v1665_v44 = vmul.f32 %v4835_v38, %v1591_v55  ;;  %4842 = vrcp.f32 %v1645_v15  ;;  %v4580_v15 = vpack.c.bf16 %v4017_v33, %v4016_v60  ;;  %v1707_v38 = vstv %s4652_s18 }
 0x34a   : > { %v1664_v62 = vmul.f32 %v4837_v40, %v1586_v6  ;;  %4844 = vrcp.f32 %v1644_v18 }
 0x34b   : > { %v1677_v5 = vmul.f32 %v5679_v26, %v1665_v44 }
 0x34c   : > { %v1676_v41 = vmul.f32 %v5679_v26, %v1664_v62 }
 0x34d   : > { %v2052_v47 = vpop.f32.mrb[14].mxu1  ;;  %v1692_v39 = vsel %vm1682_vm11, %v1677_v5, 0.0 }
 0x34e   : > { %v2053_v7 = vadd.f32 %v2052_v47, %v1979_v19  ;;  %1693 = vadd.xlane.f32.xlu1 %v1692_v39  ;;  %v4351_v43 = vpop.f32.mrb[15].mxu1  ;;  %v1689_v6 = vsel %vm1682_vm11, %v1676_v41, 0.0 }
 0x34f   : > { %v4839_v61 = vpop.eup %4838 }
 0x350   : > { %v4841_v50 = vpop.eup %4840  ;;  %v1667_v13 = vmul.f32 %v4839_v61, %v1601_v22  ;;  %v2060_v55 = vadd.f32 %v2059_v2, %v2053_v7 }
 0x351   : > { %v1666_v45 = vmul.f32 %v4841_v50, %v1596_v8 }
 0x352   : > { %v4010_v48 = vmul.f32 -1.442695, %v2060_v55  ;;  %1690 = vadd.xlane.f32.xlu1 %v1689_v6  ;;  %v1679_v17 = vmul.f32 %v5679_v26, %v1667_v13 }
 0x353   : > { %v4843_v56 = vpop.eup %4842  ;;  %v1678_v58 = vmul.f32 %v5679_v26, %v1666_v45 }
 0x354   : > { %v4845_v57 = vpop.eup %4844  ;;  %v1669_v21 = vmul.f32 %v4843_v56, %v5675_v10  ;;  %4846 = vpow2.f32 %v4010_v48  ;;  %v1698_v20 = vsel %vm1682_vm11, %v1679_v17, 0.0 }
 0x355   : > { %v1668_v24 = vmul.f32 %v4845_v57, %v1606_v14  ;;  %v1695_v22 = vsel %vm1682_vm11, %v1678_v58, 0.0  ;;  %v4014_v14 = vld [vmem:[%s6302_s2 + $0x20] sm:$0xff] }
 0x356   : > { %1699 = vadd.xlane.f32.xlu1 %v1698_v20  ;;  %1696 = vadd.xlane.f32.xlu0 %v1695_v22  ;;  %v1681_v8 = vmul.f32 %v5679_v26, %v1669_v21 }
 0x357   : > { %v1680_v9 = vmul.f32 %v5679_v26, %v1668_v24  ;;  %v4015_v26 = vld [vmem:[%s6302_s2 + $0x28] sm:$0xff] }
 0x358   : > { %v1704_v37 = vsel %vm1682_vm11, %v1681_v8, 0.0  ;;  %v4577_v31 = vpack.c.bf16 %v4015_v26, %v4014_v14 }
 0x359   : > { %v1701_v63 = vsel %vm1682_vm11, %v1680_v9, 0.0 }
 0x35a   : > { %1705 = vadd.xlane.f32.xlu1 %v1704_v37  ;;  %1702 = vadd.xlane.f32.xlu0 %v1701_v63 }
 0x35b   : > { %4578 = vmatpush3.bf16.msra.mxu1 %v4577_v31 }
 0x35c   : > { %4579 = vmatprep.subr.bf16.mxu1 %v6320_v4 }
 0x35e   : > { %v4847_v25 = vpop.eup %4846 }
 0x35f   : > { %v2064_v10 = vadd.f32 1.0, %v4847_v25  ;;  %4581 = vmatpush3.bf16.msra.mxu1 %v4580_v15 }
 0x360   : > { %4582 = vmatprep.subr.bf16.mxu1 %v6320_v4 }
 0x361   : > { %4848 = vrcp.f32 %v2064_v10 }
 0x36b   : > { %v4849_v32 = vpop.eup %4848 }
 0x36c   : > { %v2067_v19 = vmul.f32 %v4849_v32, %v2060_v55 }
 0x36e   : > { %4369 = vmatmul.mubr.msk.f32.vlgmr.msra.gmra.mrb[10].mxu0 %vm1682_vm11, %v2067_v19 }
 0x3cc   : > { %v1688_v18 = vpop.xlane.xlu0 %1687 }
 0x3cd   : > { %v1709_v40 = vadd.f32 %v1707_v38, %v1688_v18 }
 0x3cf   : > { %v1717_v44 = vmul.f32 %v1709_v40, %v5277_v52 }
 0x3d0   : > { %v1685_v62 = vpop.xlane.xlu0 %1684 }
 0x3d1   : > { %v1708_v5 = vadd.f32 %v1707_v38, %v1685_v62  ;;  %v1731_v2 = vsel %vm551_vm2, %v1717_v44, 0.0 }
 0x3d2   : > { %v1732_v39 = vrot.slane %v1731_v2, 4 }
 0x3d3   : > { %v1716_v47 = vmul.f32 %v1708_v5, %v5265_v42  ;;  %v4986_v5 = vld [vmem:[%s5231_s26] sm:$0xff] }
 0x3d4   : > { %v1733_v43 = vadd.f32 %v1732_v39, %v1731_v2  ;;  %v1780_v2 = vrot.slane %v4986_v5, 1 }
 0x3d5   : > { %v1724_v41 = vsel %vm551_vm2, %v1716_v47, 0.0 }
 0x3d6   : > { %v1725_v7 = vrot.slane %v1724_v41, 4  ;;  %v1734_v55 = vrot.slane %v1733_v43, 2 }
 0x3d8   : > { %v1726_v13 = vadd.f32 %v1725_v7, %v1724_v41  ;;  %v1735_v58 = vadd.f32 %v1734_v55, %v1733_v43  ;;  %v1781_v43 = vrot.slane %v4986_v5, 2 }
 0x3da   : > { %v1727_v17 = vrot.slane %v1726_v13, 2 }
 0x3db   : > { %v1694_v61 = vpop.xlane.xlu1 %1693 }
 0x3dc   : > { %v1711_v50 = vadd.f32 %v1707_v38, %v1694_v61  ;;  %v1728_v9 = vadd.f32 %v1727_v17, %v1726_v13 }
 0x3de   : > { %v1719_v45 = vmul.f32 %v1711_v50, %v5290_v59  ;;  %v1736_v59 = vrot.slane %v1735_v58, 1  ;;  %v1729_v15 = vrot.slane %v1728_v9, 1 }
 0x3df   : > { %v1691_v6 = vpop.xlane.xlu1 %1690 }
 0x3e0   : > { %v1745_v52 = vsel %vm551_vm2, %v1719_v45, 0.0  ;;  %v1710_v48 = vadd.f32 %v1707_v38, %v1691_v6  ;;  %v1737_v62 = vadd.f32 %v1736_v59, %v1735_v58  ;;  %v1730_v50 = vadd.f32 %v1729_v15, %v1728_v9 }
 0x3e1   : > { %v1746_v56 = vrot.slane %v1745_v52, 4  ;;  %v1782_v6 = vrot.slane %v4986_v5, 3  ;;  %v1784_v9 = vrot.slane %v4986_v5, 5  ;;  %v1785_v15 = vrot.slane %v4986_v5, 6 }
 0x3e2   : > { %v1718_v42 = vmul.f32 %v1710_v48, %v5275_v51  ;;  %v5733_v48 = vadd.f32 %v1780_v2, %v1737_v62 }
 0x3e3   : > { %v1747_v57 = vadd.f32 %v1746_v56, %v1745_v52  ;;  %v1700_v21 = vpop.xlane.xlu1 %1699  ;;  %v1697_v20 = vpop.xlane.xlu0 %1696 }
 0x3e4   : > { %v1738_v24 = vsel %vm551_vm2, %v1718_v42, 0.0  ;;  %v1713_v22 = vadd.f32 %v1707_v38, %v1700_v21  ;;  %v1712_v8 = vadd.f32 %v1707_v38, %v1697_v20  ;;  %v1783_v42 = vrot.slane %v4986_v5, 4 }
 0x3e5   : > { %v1748_v37 = vrot.slane %v1747_v57, 2  ;;  %v1739_v63 = vrot.slane %v1738_v24, 4  ;;  %v5735_v20 = vadd.f32 %v4986_v5, %v1730_v50  ;;  %v2201_v59 = vrot.slane %v5733_v48, 7 }
 0x3e6   : > { %v1721_v25 = vmul.f32 %v1713_v22, %v5280_v54  ;;  %v1720_v10 = vmul.f32 %v1712_v8, %v5269_v46 }
 0x3e7   : > { %v1749_v32 = vadd.f32 %v1748_v37, %v1747_v57  ;;  %v1740_v19 = vadd.f32 %v1739_v63, %v1738_v24  ;;  %v1706_v14 = vpop.xlane.xlu1 %1705  ;;  %v1703_v51 = vpop.xlane.xlu0 %1702 }
 0x3e8   : > { %v1759_v26 = vsel %vm551_vm2, %v1721_v25, 0.0  ;;  %v1752_v31 = vsel %vm551_vm2, %v1720_v10, 0.0  ;;  %v1715_v60 = vadd.f32 %v1707_v38, %v1706_v14  ;;  %v1714_v33 = vadd.f32 %v1707_v38, %v1703_v51 }
 0x3e9   : > { %v1741_v18 = vrot.slane %v1740_v19, 2  ;;  %v1760_v40 = vrot.slane %v1759_v26, 4  ;;  %v1753_v44 = vrot.slane %v1752_v31, 4  ;;  %v1750_v47 = vrot.slane %v1749_v32, 1 }
 0x3ea   : > { %v1723_v54 = vmul.f32 %v1715_v60, %v5303_v3  ;;  %v1722_v46 = vmul.f32 %v1714_v33, %v5298_v0  ;;  %v2202_v60 = vsel %vm1897_vm4, %v2201_v59, %v5735_v20 }
 0x3eb   : > { %v1742_v39 = vadd.f32 %v1741_v18, %v1740_v19  ;;  %v1761_v41 = vadd.f32 %v1760_v40, %v1759_v26  ;;  %v1754_v7 = vadd.f32 %v1753_v44, %v1752_v31  ;;  %v1751_v0 = vadd.f32 %v1750_v47, %v1749_v32 }
 0x3ec   : > { %v1773_v61 = vsel %vm551_vm2, %v1723_v54, 0.0  ;;  %v1766_v38 = vsel %vm551_vm2, %v1722_v46, 0.0  ;;  %v1786_v31 = vrot.slane %v4986_v5, 7 }
 0x3ed   : > { %v1743_v13 = vrot.slane %v1742_v39, 1  ;;  %v1762_v55 = vrot.slane %v1761_v41, 2  ;;  %v1755_v45 = vrot.slane %v1754_v7, 2  ;;  %v1774_v52 = vrot.slane %v1773_v61, 4 }
 0x3ee   : > { %v1767_v3 = vrot.slane %v1766_v38, 4  ;;  %v5740_v25 = vadd.f32 %v1782_v6, %v1751_v0 }
 0x3ef   : > { %v1744_v17 = vadd.f32 %v1743_v13, %v1742_v39  ;;  %v1763_v56 = vadd.f32 %v1762_v55, %v1761_v41  ;;  %v1756_v58 = vadd.f32 %v1755_v45, %v1754_v7  ;;  %v1775_v57 = vadd.f32 %v1774_v52, %v1773_v61 }
 0x3f0   : > { %v1768_v21 = vadd.f32 %v1767_v3, %v1766_v38  ;;  %v2205_v44 = vrot.slane %v5740_v25, 5  ;;  %v2168_v38 = vrot.slane %v5733_v48, %v5249_v29  ;;  %v2164_v55 = vrot.slane %v5735_v20, %v5249_v29 }
 0x3f1   : > { %v5737_v24 = vadd.f32 %v1781_v43, %v1744_v17  ;;  %v1764_v22 = vrot.slane %v1763_v56, 1  ;;  %v1757_v8 = vrot.slane %v1756_v58, 1  ;;  %v1776_v37 = vrot.slane %v1775_v57, 2 }
 0x3f2   : > { %v1769_v63 = vrot.slane %v1768_v21, 2  ;;  %v2176_v45 = vrot.slane %v5740_v25, %v5249_v29 }
 0x3f3   : > { %v2203_v10 = vrot.slane %v5737_v24, 6  ;;  %v1765_v32 = vadd.f32 %v1764_v22, %v1763_v56  ;;  %v1758_v19 = vadd.f32 %v1757_v8, %v1756_v58  ;;  %v1777_v14 = vadd.f32 %v1776_v37, %v1775_v57 }
 0x3f4   : > { %v1770_v51 = vadd.f32 %v1769_v63, %v1768_v21  ;;  %v2172_v6 = vrot.slane %v5737_v24, %v5249_v29 }
 0x3f5   : > { %v5743_v26 = vadd.f32 %v1783_v42, %v1758_v19  ;;  %v1778_v33 = vrot.slane %v1777_v14, 1  ;;  %v2204_v40 = vsel %vm1899_vm5, %v2203_v10, %v2202_v60  ;;  %v5749_v62 = vadd.f32 %v1784_v9, %v1765_v32 }
 0x3f6   : > { %v1771_v18 = vrot.slane %v1770_v51, 1  ;;  %v2206_v47 = vsel %vm1901_vm6, %v2205_v44, %v2204_v40 }
 0x3f7   : > { %6340 = vst [vmem:[#allocation7_spill] sm:$0xff] %v5743_v26  ;;  %6341 = vst [vmem:[#allocation8_spill] sm:$0xff] %v5749_v62  ;;  %v2207_v54 = vrot.slane %v5743_v26, 4  ;;  %v1779_v46 = vadd.f32 %v1778_v33, %v1777_v14  ;;  %v2209_v5 = vrot.slane %v5749_v62, 3  ;;  %v2184_v58 = vrot.slane %v5749_v62, %v5249_v29 }
 0x3f8   : > { %v1772_v2 = vadd.f32 %v1771_v18, %v1770_v51  ;;  %v2180_v42 = vrot.slane %v5743_v26, %v5249_v29 }
 0x3f9   : > { %v5753_v39 = vadd.f32 %v1786_v31, %v1779_v46  ;;  %v2208_v7 = vsel %vm1903_vm7, %v2207_v54, %v2206_v47 }
 0x3fa   : > { %v5755_v41 = vadd.f32 %v1785_v15, %v1772_v2  ;;  %v2210_v50 = vsel %vm1905_vm8, %v2209_v5, %v2208_v7  ;;  %v4013_v2 = vld [vmem:[%s6310_s10 + $0x18] sm:$0xff]  ;;  %v2079_v7 = vrot.slane %v5631_v49, %v5502_v27  ;;  %v4019_v5 = vld [vmem:[%s6303_s3 + $0x20] sm:$0xff] }
 0x3fb   : > { %6342 = vst [vmem:[#allocation9_spill] sm:$0xff] %v5753_v39  ;;  %v2213_v61 = vrot.slane %v5753_v39, 1  ;;  %v2192_v10 = vrot.slane %v5753_v39, %v5249_v29  ;;  %v5824_v47 = vrot.slane %v4013_v2, %v5314_v11  ;;  %v4022_v49 = vld [vmem:[%s6303_s3 + $0x38] sm:$0xff]  ;;  %v4041_v2 = vld [vmem:[%s6305_s5 + $0xc8] sm:$0xff] }
 0x3fc   : > { %6343 = vst [vmem:[#allocation10_spill] sm:$0xff] %v5755_v41  ;;  %v2211_v43 = vrot.slane %v5755_v41, 2  ;;  %v2188_v32 = vrot.slane %v5755_v41, %v5249_v29 }
 0x3fe   : > { %v2212_v13 = vsel %vm1907_vm9, %v2211_v43, %v2210_v50  ;;  %v4020_v43 = vld [vmem:[%s6303_s3 + $0x28] sm:$0xff] }
 0x3ff   : > { %v2214_v52 = vsel %vm1909_vm10, %v2213_v61, %v2212_v13  ;;  %v4583_v13 = vpack.c.bf16 %v4020_v43, %v4019_v5  ;;  %v4042_v5 = vld [vmem:[%s6305_s5 + $0xd0] sm:$0xff]  ;;  %v4043_v43 = vld [vmem:[%s6305_s5 + $0xd8] sm:$0xff] }
 0x400   : > { %v5772_v3 = vsub.f32 %v2168_v38, %v2214_v52  ;;  %v5774_v0 = vsub.f32 %v2164_v55, %v2214_v52  ;;  %v5776_v17 = vsub.f32 %v2176_v45, %v2214_v52  ;;  %v5778_v56 = vsub.f32 %v2172_v6, %v2214_v52  ;;  %v4987_v55 = vld [vmem:[%s5225_s19] sm:$0xff]  ;;  %v4021_v6 = vld [vmem:[%s6303_s3 + $0x30] sm:$0xff] }
 0x401   : > { %v5788_v22 = vsub.f32 %v2184_v58, %v2214_v52  ;;  %v5790_v8 = vsub.f32 %v2180_v42, %v2214_v52  ;;  %v5802_v19 = vsub.f32 %v2192_v10, %v2214_v52  ;;  %v5804_v14 = vsub.f32 %v2188_v32, %v2214_v52  ;;  %v4048_v42 = vld [vmem:[%s6304_s4 + $0x20] sm:$0xff]  ;;  %v4033_v10 = vld [vmem:[%s6305_s5 + $0x88] sm:$0xff]  ;;  %v4034_v32 = vld [vmem:[%s6305_s5 + $0x90] sm:$0xff] }
 0x402   : > { %v2225_v57 = vmul.f32 %v5772_v3, %v5772_v3  ;;  %v2224_v21 = vmul.f32 %v5774_v0, %v5774_v0  ;;  %v2227_v63 = vmul.f32 %v5776_v17, %v5776_v17  ;;  %v2226_v59 = vmul.f32 %v5778_v56, %v5778_v56 }
 0x403   : > { %v2229_v60 = vmul.f32 %v5788_v22, %v5788_v22  ;;  %v2228_v33 = vmul.f32 %v5790_v8, %v5790_v8  ;;  %v2231_v40 = vmul.f32 %v5802_v19, %v5802_v19  ;;  %v2230_v44 = vmul.f32 %v5804_v14, %v5804_v14 }
 0x404   : > { %v2235_v9 = vsel %vm551_vm2, %v2225_v57, 0.0  ;;  %v2232_v37 = vsel %vm551_vm2, %v2224_v21, 0.0  ;;  %v2241_v51 = vsel %vm551_vm2, %v2227_v63, 0.0  ;;  %v2238_v31 = vsel %vm551_vm2, %v2226_v59, 0.0  ;;  %v4049_v57 = vld [vmem:[%s6304_s4 + $0x28] sm:$0xff]  ;;  %v4032_v59 = vld [vmem:[%s6305_s5 + $0x80] sm:$0xff] }
 0x405   : > { %2236 = vadd.xlane.f32.xlu1 %v2235_v9  ;;  %2233 = vadd.xlane.f32.xlu0 %v2232_v37  ;;  %v2247_v15 = vsel %vm551_vm2, %v2229_v60, 0.0  ;;  %v2244_v18 = vsel %vm551_vm2, %v2228_v33, 0.0  ;;  %v2253_v54 = vsel %vm551_vm2, %v2231_v40, 0.0  ;;  %v2250_v46 = vsel %vm551_vm2, %v2230_v44, 0.0  ;;  %v4050_v9 = vld [vmem:[%s6304_s4 + $0x30] sm:$0xff]  ;;  %v4051_v37 = vld [vmem:[%s6304_s4 + $0x38] sm:$0xff] }
 0x406   : > { %v4586_v58 = vpack.c.bf16 %v4022_v49, %v4021_v6  ;;  %v4621_v21 = vpack.c.bf16 %v4049_v57, %v4048_v42  ;;  %v4624_v63 = vpack.c.bf16 %v4051_v37, %v4050_v9  ;;  %v4036_v33 = vld [vmem:[%s6305_s5 + $0xa0] sm:$0xff]  ;;  %v4039_v44 = vld [vmem:[%s6305_s5 + $0xb8] sm:$0xff]  ;;  %v5928_v42 = vld [vmem:[%s6310_s10 + $0x10] sm:$0xff] }
 0x407   : > { %v4047_v6 = vld [vmem:[%s6305_s5 + $0xf8] sm:$0xff]  ;;  %v2510_v9 = vrot.slane %v5928_v42, %v5249_v29 }
 0x409   : > { %2242 = vadd.xlane.f32.xlu1 %v2241_v51  ;;  %2239 = vadd.xlane.f32.xlu0 %v2238_v31  ;;  %v4588_v51 = vpack.c.bf16 %v4033_v10, %v4032_v59  ;;  %v4035_v31 = vld [vmem:[%s6305_s5 + $0x98] sm:$0xff] }
 0x40a   : > { %v4592_v60 = vpack.c.bf16 %v4035_v31, %v4034_v32 }
 0x40b   : > { %4589 = vmatprep.subr.bf16.mxu0 %v4588_v51 }
 0x40c   : > { %4591 = vmatpush3.bf16.msra.mxu0 %v4588_v51 }
 0x40d   : > { %2248 = vadd.xlane.f32.xlu1 %v2247_v15  ;;  %2245 = vadd.xlane.f32.xlu0 %v2244_v18  ;;  %v4037_v15 = vld [vmem:[%s6305_s5 + $0xa8] sm:$0xff]  ;;  %v4038_v18 = vld [vmem:[%s6305_s5 + $0xb0] sm:$0xff] }
 0x40e   : > { %4593 = vmatprep.subr.bf16.mxu0 %v4592_v60  ;;  %v4596_v40 = vpack.c.bf16 %v4037_v15, %v4036_v33 }
 0x410   : > { %4595 = vmatpush3.bf16.msra.mxu0 %v4592_v60 }
 0x411   : > { %2254 = vadd.xlane.f32.xlu1 %v2253_v54  ;;  %2251 = vadd.xlane.f32.xlu0 %v2250_v46  ;;  %v4600_v54 = vpack.c.bf16 %v4039_v44, %v4038_v18  ;;  %v4040_v46 = vld [vmem:[%s6305_s5 + $0xc0] sm:$0xff] }
 0x412   : > { %4597 = vmatprep.subr.bf16.mxu0 %v4596_v40 }
 0x414   : > { %4599 = vmatpush3.bf16.msra.mxu0 %v4596_v40 }
 0x415   : > { %4601 = vmatprep.subr.bf16.mxu0 %v4600_v54 }
 0x418   : > { %4603 = vmatpush3.bf16.msra.mxu0 %v4600_v54 }
 0x422   : > { %2926 = vrot.lane.b32.xlu1 %v5824_v47, %s6344_s28  ;;  %s416_s28 = sand.u32 1, %s5044_s22  }
 0x441   : > { %v2149_v61 = vpop.f32.mrb[10].mxu0 }
 0x442   : > { %v2150_v38 = vadd.f32 %v2149_v61, %v2079_v7  ;;  %v4370_v50 = vpop.f32.mrb[11].mxu0  ;;  %v4604_v7 = vpack.c.bf16 %v4041_v2, %v4040_v46  ;;  %v4608_v61 = vpack.c.bf16 %v4043_v43, %v4042_v5 }
 0x443   : > { %v4045_v50 = vld [vmem:[%s6305_s5 + $0xe8] sm:$0xff] }
 0x444   : > { %v5837_v45 = vadd.f32 %v4987_v55, %v2150_v38  ;;  %4605 = vmatprep.subr.bf16.mxu0 %v4604_v7  ;;  %v4044_v38 = vld [vmem:[%s6305_s5 + $0xe0] sm:$0xff]  ;;  %v4046_v55 = vld [vmem:[%s6305_s5 + $0xf0] sm:$0xff] }
 0x445   : > { %4607 = vmatpush3.bf16.msra.mxu0 %v4604_v7  ;;  %v4616_v49 = vpack.c.bf16 %v4047_v6, %v4046_v55 }
 0x446   : > { %4380 = vmatmul.mubr.msk.f32.vlgmr.msra.gmra.mrb[16].mxu1 %vm580_vm1, %v5837_v45  ;;  %v3526_v52 = vsel %vm580_vm1, %v5837_v45, 0.0  ;;  %4609 = vmatprep.subr.bf16.mxu0 %v4608_v61 }
 0x447   : > { %4584 = vmatpush3.bf16.msra.mxu1 %v4583_v13  ;;  %3527 = vadd.xlane.f32.xlu1 %v3526_v52  ;;  %v4612_v13 = vpack.c.bf16 %v4045_v50, %v4044_v38 }
 0x448   : > { %4585 = vmatprep.subr.bf16.mxu1 %v6320_v4  ;;  %4390 = vmatprep.mubr.msk.f32.mxu1 %vm5055_vm0, %v6326_v12 }
 0x449   : > { %4611 = vmatpush3.bf16.msra.mxu0 %v4608_v61 }
 0x44a   : > { %4613 = vmatprep.subr.bf16.mxu0 %v4612_v13 }
 0x44b   : > { %4587 = vmatpush3.bf16.msra.mxu1 %v4586_v58 }
 0x44c   : > { %4620 = vmatprep.subr.bf16.mxu1 %v6320_v4 }
 0x44d   : > { %4615 = vmatpush3.bf16.msra.mxu0 %v4612_v13 }
 0x44e   : > { %4391 = vmatmul.mubr.msk.f32.vlgmr.msra.gmra.mrb[18].mxu1 %vm580_vm1, %v5837_v45  ;;  %4617 = vmatprep.subr.bf16.mxu0 %v4616_v49 }
 0x44f   : > { %4622 = vmatpush3.bf16.msra.mxu1 %v4621_v21  ;;  %4445 = vmatprep.mubr.msk.f32.mxu1 %vm5055_vm0, %v6326_v12 }
 0x450   : > { %4623 = vmatprep.subr.bf16.mxu1 %v6320_v4 }
 0x451   : > { %4619 = vmatpush3.bf16.msra.mxu0 %v4616_v49 }
 0x452   : > { %4639 = vmatprep.subr.bf16.mxu0 %v6320_v4 }
 0x453   : > { %4625 = vmatpush3.bf16.msra.mxu1 %v4624_v63 }
 0x456   : > { %4446 = vmatmul.mubr.msk.f32.vlgmr.msra.gmra.mrb[20].mxu1 %vm580_vm1, %v5837_v45 }
 0x492   : > { %v5921_v52 = vpop.xlane.xlu1 %2236  ;;  %v5923_v58 = vpop.xlane.xlu0 %2233 }
 0x493   : > { %v2512_v33 = vmul.f32 %v2510_v9, %v5921_v52  ;;  %v2511_v15 = vmul.f32 %v2510_v9, %v5923_v58 }
 0x496   : > { %v5930_v57 = vpop.xlane.xlu1 %2242  ;;  %v5932_v21 = vpop.xlane.xlu0 %2239 }
 0x497   : > { %v2514_v2 = vmul.f32 %v2510_v9, %v5930_v57  ;;  %v2513_v7 = vmul.f32 %v2510_v9, %v5932_v21 }
 0x49a   : > { %v5937_v32 = vpop.xlane.xlu1 %2248  ;;  %v5943_v18 = vpop.xlane.xlu0 %2245 }
 0x49b   : > { %v2516_v5 = vmul.f32 %v2510_v9, %v5937_v32  ;;  %v2515_v55 = vmul.f32 %v2510_v9, %v5943_v18 }
 0x519   : > { %v2330_v37 = vpop.f32.mrb[16].mxu1 }
 0x51a   : > { %v2410_v63 = vcombine.high %v2330_v37, %v2330_v37  ;;  %v2417_v59 = vrot.slane %v2330_v37, %v5238_v23  ;;  %v4381_v10 = vpop.f32.mrb[17].mxu1 }
 0x51c   : > { %v2424_v51 = vrot.slane %v2410_v63, %v5238_v23  ;;  %v2425_v31 = vcombine.high %v2417_v59, %v2417_v59  ;;  %v2433_v60 = vrot.slane %v2417_v59, %v5238_v23  ;;  %v2530_v63 = vrot.slane %v5928_v42, %v5419_v28 }
 0x51e   : > { %v2426_v40 = vcombine.high %v2424_v51, %v2424_v51  ;;  %v2440_v44 = vrot.slane %v2424_v51, %v5238_v23  ;;  %v2447_v54 = vrot.slane %v2425_v31, %v5238_v23  ;;  %v2455_v46 = vcombine.high %v2433_v60, %v2433_v60 }
 0x51f   : > { %v2462_v43 = vrot.slane %v2433_v60, %v5249_v29 }
 0x520   : > { %v2454_v61 = vrot.slane %v2426_v40, %v5238_v23  ;;  %v2456_v38 = vcombine.high %v2440_v44, %v2440_v44  ;;  %v2457_v50 = vcombine.high %v2447_v54, %v2447_v54  ;;  %v2466_v13 = vrot.slane %v2447_v54, %v5249_v29  ;;  %v5961_v40 = vpop.xlane.xlu1 %2254  ;;  %v5963_v54 = vpop.xlane.xlu0 %2251 }
 0x521   : > { %v2470_v6 = vrot.slane %v2455_v46, %v5249_v29  ;;  %v2478_v49 = vrot.slane %v2440_v44, %v5249_v29  ;;  %v2405_v37 = vpop.f32.mrb[18].mxu1 }
 0x522   : > { %v2458_v59 = vcombine.high %v2454_v61, %v2454_v61  ;;  %v2474_v10 = vrot.slane %v2457_v50, %v5249_v29  ;;  %v2482_v51 = vrot.slane %v2454_v61, %v5249_v29  ;;  %v2486_v31 = vrot.slane %v2456_v38, %v5249_v29  ;;  %v4392_v60 = vpop.f32.mrb[19].mxu1 }
 0x523   : > { %v2499_v35 = vadd.f32 %v2462_v43, %v2405_v37  ;;  %v2500_v46 = vadd.f32 %v2466_v13, %v2405_v37  ;;  %v2501_v53 = vadd.f32 %v2470_v6, %v2405_v37  ;;  %v2503_v44 = vadd.f32 %v2478_v49, %v2405_v37 }
 0x524   : > { %v2490_v36 = vrot.slane %v2458_v59, %v5249_v29  ;;  %v2502_v34 = vadd.f32 %v2474_v10, %v2405_v37  ;;  %v2504_v4 = vadd.f32 %v2482_v51, %v2405_v37  ;;  %v2505_v30 = vadd.f32 %v2486_v31, %v2405_v37 }
 0x525   : > { %v2519_v1 = vadd.f32 %v2511_v15, %v2499_v35  ;;  %v2520_v50 = vadd.f32 %v2512_v33, %v2500_v46  ;;  %v2521_v12 = vadd.f32 %v2513_v7, %v2501_v53  ;;  %v2523_v61 = vadd.f32 %v2515_v55, %v2503_v44 }
 0x526   : > { %v2518_v38 = vmul.f32 %v2510_v9, %v5961_v40  ;;  %v2517_v60 = vmul.f32 %v2510_v9, %v5963_v54  ;;  %v2522_v41 = vadd.f32 %v2514_v2, %v2502_v34  ;;  %v2506_v39 = vadd.f32 %v2490_v36, %v2405_v37 }
 0x527   : > { %v2531_v62 = vadd.f32 %v2530_v63, %v2519_v1  ;;  %v2532_v43 = vadd.f32 %v2530_v63, %v2520_v50  ;;  %v2533_v13 = vadd.f32 %v2530_v63, %v2521_v12  ;;  %v2524_v6 = vadd.f32 %v2516_v5, %v2504_v4 }
 0x528   : > { %v2534_v49 = vadd.f32 %v2530_v63, %v2522_v41  ;;  %v2525_v26 = vadd.f32 %v2517_v60, %v2505_v30  ;;  %v2535_v35 = vadd.f32 %v2530_v63, %v2523_v61  ;;  %v2526_v33 = vadd.f32 %v2518_v38, %v2506_v39 }
 0x529   : > { %v5968_v59 = vpop.f32.mrb[20].mxu1  ;;  %v4024_v10 = vmul.f32 -1.442695, %v2531_v62  ;;  %v4025_v51 = vmul.f32 -1.442695, %v2532_v43  ;;  %v2536_v36 = vadd.f32 %v2530_v63, %v2524_v6 }
 0x52a   : > { %v4447_v53 = vpop.f32.mrb[21].mxu1  ;;  %2894 = vrot.lane.b32.xlu0 %v5968_v59, %s5060_s16  ;;  %v4026_v15 = vmul.f32 -1.442695, %v2533_v13  ;;  %v4027_v34 = vmul.f32 -1.442695, %v2534_v49  ;;  %v2537_v1 = vadd.f32 %v2530_v63, %v2525_v26  ;;  %v2538_v12 = vadd.f32 %v2530_v63, %v2526_v33  ;;  %s3842_s16 = scalar_lea.sflag [#allocation3], %s416_s28 }
 0x52b   : > { %4850 = vpow2.f32 %v4024_v10  ;;  %v4028_v4 = vmul.f32 -1.442695, %v2535_v35  ;;  %v4029_v30 = vmul.f32 -1.442695, %v2536_v36 }
 0x52c   : > { %4852 = vpow2.f32 %v4025_v51  ;;  %v4030_v41 = vmul.f32 -1.442695, %v2537_v1  ;;  %v4031_v9 = vmul.f32 -1.442695, %v2538_v12 }
 0x52d   : > { %4854 = vpow2.f32 %v4026_v15 }
 0x52e   : > { %4856 = vpow2.f32 %v4027_v34 }
 0x52f   : > { %4858 = vpow2.f32 %v4028_v4 }
 0x530   : > { %4860 = vpow2.f32 %v4029_v30 }
 0x531   : > { %4862 = vpow2.f32 %v4030_v41 }
 0x532   : > { %4864 = vpow2.f32 %v4031_v9 }
 0x535   : > { %v4851_v39 = vpop.eup %4850 }
 0x536   : > { %v4853_v2 = vpop.eup %4852  ;;  %v2563_v7 = vadd.f32 1.0, %v4851_v39 }
 0x537   : > { %v4855_v5 = vpop.eup %4854  ;;  %v2564_v55 = vadd.f32 1.0, %v4853_v2 }
 0x538   : > { %4866 = vrcp.f32 %v2563_v7  ;;  %v2565_v37 = vadd.f32 1.0, %v4855_v5  ;;  %v4857_v31 = vpop.eup %4856 }
 0x539   : > { %4868 = vrcp.f32 %v2564_v55  ;;  %v2566_v26 = vadd.f32 1.0, %v4857_v31  ;;  %v4859_v63 = vpop.eup %4858 }
 0x53a   : > { %4870 = vrcp.f32 %v2565_v37  ;;  %v2567_v46 = vadd.f32 1.0, %v4859_v63  ;;  %v4861_v44 = vpop.eup %4860 }
 0x53b   : > { %4872 = vrcp.f32 %v2566_v26  ;;  %v4863_v50 = vpop.eup %4862  ;;  %v2568_v61 = vadd.f32 1.0, %v4861_v44 }
 0x53c   : > { %4874 = vrcp.f32 %v2567_v46  ;;  %v4865_v38 = vpop.eup %4864  ;;  %v2569_v60 = vadd.f32 1.0, %v4863_v50 }
 0x53d   : > { %4876 = vrcp.f32 %v2568_v61  ;;  %v2570_v6 = vadd.f32 1.0, %v4865_v38  ;;  %v2910_v61 = vmul.f32 %v5824_v47, %v5921_v52  ;;  %v2912_v38 = vmul.f32 %v5824_v47, %v5930_v57 }
 0x53e   : > { %4878 = vrcp.f32 %v2569_v60  ;;  %v2911_v60 = vmul.f32 %v5824_v47, %v5932_v21  ;;  %v2915_v52 = vmul.f32 %v5824_v47, %v5963_v54 }
 0x53f   : > { %4880 = vrcp.f32 %v2570_v6  ;;  %v2914_v6 = vmul.f32 %v5824_v47, %v5937_v32 }
 0x542   : > { %v4867_v10 = vpop.eup %4866 }
 0x543   : > { %v4869_v51 = vpop.eup %4868  ;;  %v2587_v33 = vmul.f32 %v4867_v10, %v2531_v62  ;;  %v2916_v10 = vmul.f32 %v5824_v47, %v5961_v40 }
 0x544   : > { %v4871_v53 = vpop.eup %4870  ;;  %v2588_v15 = vmul.f32 %v4869_v51, %v2532_v43  ;;  %v6345_v43 = vmov 0.0  }
 0x545   : > { %4425 = vmatprep.mubr.f32.mxu0 %v2587_v33  ;;  %v2589_v34 = vmul.f32 %v4871_v53, %v2533_v13  ;;  %v4873_v4 = vpop.eup %4872  ;;  %v2805_v13 = vcombine.high %v5968_v59, %v5968_v59 }
 0x546   : > { %4426 = vmatmul.mubr.f32.vlgmr.msra.gmra.mrb[12].mxu0 %v2588_v15  ;;  %v4875_v30 = vpop.eup %4874  ;;  %v2590_v41 = vmul.f32 %v4873_v4, %v2534_v49  ;;  %v2812_v49 = vrot.slane %v5968_v59, %v5238_v23  ;;  %v2909_v59 = vmul.f32 %v5824_v47, %v5923_v58 }
 0x547   : > { %4428 = vmatprep.mubr.f32.mxu0 %v2589_v34  ;;  %v2591_v9 = vmul.f32 %v4875_v30, %v2535_v35  ;;  %v4877_v39 = vpop.eup %4876  ;;  %v2819_v35 = vrot.slane %v2805_v13, %v5238_v23 }
 0x548   : > { %v4879_v2 = vpop.eup %4878  ;;  %v2592_v7 = vmul.f32 %v4877_v39, %v2536_v36  ;;  %v2820_v37 = vcombine.high %v2812_v49, %v2812_v49  ;;  %v2828_v36 = vrot.slane %v2812_v49, %v5238_v23 }
 0x549   : > { %v4881_v5 = vpop.eup %4880  ;;  %v2593_v55 = vmul.f32 %v4879_v2, %v2537_v1  ;;  %v2821_v31 = vcombine.high %v2819_v35, %v2819_v35  ;;  %v2835_v1 = vrot.slane %v2819_v35, %v5238_v23 }
 0x54a   : > { %4429 = vmatmul.mubr.f32.gmra.mrb[14].mxu0 %v2590_v41  ;;  %v2594_v62 = vmul.f32 %v4881_v5, %v2538_v12  ;;  %v2842_v12 = vrot.slane %v2820_v37, %v5238_v23  ;;  %v2850_v63 = vcombine.high %v2828_v36, %v2828_v36  ;;  %v2857_v58 = vrot.slane %v2828_v36, %v5249_v29 }
 0x54b   : > { %4431 = vmatprep.mubr.f32.mxu0 %v2591_v9  ;;  %v2849_v26 = vrot.slane %v2821_v31, %v5238_v23  ;;  %v2851_v46 = vcombine.high %v2835_v1, %v2835_v1  ;;  %v2913_v23 = vmul.f32 %v5824_v47, %v5943_v18  ;;  %v2873_v32 = vrot.slane %v2835_v1, %v5249_v29 }
 0x54c   : > { %v2852_v44 = vcombine.high %v2842_v12, %v2842_v12  ;;  %v2861_v51 = vrot.slane %v2842_v12, %v5249_v29  ;;  %v2865_v57 = vrot.slane %v2850_v63, %v5249_v29 }
 0x54d   : > { %v2853_v50 = vcombine.high %v2849_v26, %v2849_v26  ;;  %v2881_v21 = vrot.slane %v2851_v46, %v5249_v29  ;;  %v2877_v18 = vrot.slane %v2849_v26, %v5249_v29 }
 0x54e   : > { %4432 = vmatmul.mubr.f32.gmra.mrb[16].mxu0 %v2592_v7  ;;  %v2869_v33 = vrot.slane %v2852_v44, %v5249_v29 }
 0x54f   : > { %4434 = vmatprep.mubr.f32.mxu0 %v2593_v55  ;;  %v2885_v40 = vrot.slane %v2853_v50, %v5249_v29  ;;  %v2927_v55 = vpop.permute.xlu1 %2926 }
 0x552   : > { %4435 = vmatmul.mubr.f32.gmra.mrb[18].mxu0 %v2594_v62 }
 0x553   : > { %4498 = vmatprep.mubr.msk.f32.mxu0 %vm5055_vm0, %v6345_v43 }
 0x59c   : > { %v2895_v53 = vpop.permute.xlu0 %2894 }
 0x59d   : > { %v2899_v15 = vadd.f32 %v2895_v53, %v2865_v57  ;;  %v2897_v34 = vadd.f32 %v2895_v53, %v2857_v58  ;;  %v2898_v47 = vadd.f32 %v2895_v53, %v2861_v51  ;;  %v2903_v54 = vadd.f32 %v2895_v53, %v2881_v21 }
 0x59e   : > { %v2904_v4 = vadd.f32 %v2895_v53, %v2885_v40  ;;  %v2900_v30 = vadd.f32 %v2895_v53, %v2869_v33  ;;  %v2901_v41 = vadd.f32 %v2895_v53, %v2873_v32  ;;  %v2902_v9 = vadd.f32 %v2895_v53, %v2877_v18 }
 0x59f   : > { %v2919_v39 = vadd.f32 %v2911_v60, %v2899_v15  ;;  %v2917_v2 = vadd.f32 %v2909_v59, %v2897_v34  ;;  %v2918_v7 = vadd.f32 %v2910_v61, %v2898_v47  ;;  %v2923_v5 = vadd.f32 %v2915_v52, %v2903_v54 }
 0x5a0   : > { %v2924_v62 = vadd.f32 %v2916_v10, %v2904_v4  ;;  %v2920_v13 = vadd.f32 %v2912_v38, %v2900_v30  ;;  %v2921_v49 = vadd.f32 %v2913_v23, %v2901_v41  ;;  %v2922_v35 = vadd.f32 %v2914_v6, %v2902_v9 }
 0x5a1   : > { %v2931_v37 = vadd.f32 %v2927_v55, %v2919_v39  ;;  %v2929_v31 = vadd.f32 %v2927_v55, %v2917_v2  ;;  %v2930_v36 = vadd.f32 %v2927_v55, %v2918_v7  ;;  %v2935_v1 = vadd.f32 %v2927_v55, %v2923_v5 }
 0x5a2   : > { %v2936_v12 = vadd.f32 %v2927_v55, %v2924_v62  ;;  %v2932_v50 = vadd.f32 %v2927_v55, %v2920_v13  ;;  %v2933_v51 = vadd.f32 %v2927_v55, %v2921_v49  ;;  %v2934_v53 = vadd.f32 %v2927_v55, %v2922_v35 }
 0x5a3   : > { %v4055_v26 = vmul.f32 -1.442695, %v2931_v37  ;;  %v4053_v63 = vmul.f32 -1.442695, %v2929_v31  ;;  %v4054_v46 = vmul.f32 -1.442695, %v2930_v36 }
 0x5a4   : > { %v4059_v44 = vmul.f32 -1.442695, %v2935_v1  ;;  %v4060_v60 = vmul.f32 -1.442695, %v2936_v12  ;;  %v4056_v61 = vmul.f32 -1.442695, %v2932_v50 }
 0x5a5   : > { %4882 = vpow2.f32 %v4055_v26  ;;  %v4057_v18 = vmul.f32 -1.442695, %v2933_v51  ;;  %v4058_v15 = vmul.f32 -1.442695, %v2934_v53  ;;  %v6346_v7 = vmov 0  }
 0x5a6   : > { %4884 = vpow2.f32 %v4053_v63  ;;  %v3528_v63 = vpop.xlane.xlu1 %3527 }
 0x5a7   : > { %4886 = vpow2.f32 %v4054_v46  ;;  %v3529_v46 = vmul.f32 0.03125, %v3528_v63 }
 0x5a8   : > { %4888 = vpow2.f32 %v4059_v44 }
 0x5a9   : > { %4890 = vpow2.f32 %v4060_v60  ;;  %v6013_v44 = vsub.f32 %v5837_v45, %v3529_v46 }
 0x5aa   : > { %4892 = vpow2.f32 %v4056_v61  ;;  %v4069_v61 = vld [vmem:[%s6306_s6 + $0x10] sm:$0xff] }
 0x5af   : > { %v4883_v59 = vpop.eup %4882 }
 0x5b0   : > { %v4885_v38 = vpop.eup %4884  ;;  %v2963_v6 = vadd.f32 1.0, %v4883_v59  ;;  %v4070_v59 = vld [vmem:[%s6306_s6 + $0x18] sm:$0xff] }
 0x5b1   : > { %v4887_v23 = vpop.eup %4886  ;;  %v2961_v10 = vadd.f32 1.0, %v4885_v38  ;;  %v4626_v38 = vpack.c.bf16 %v4070_v59, %v4069_v61 }
 0x5b2   : > { %v4889_v52 = vpop.eup %4888  ;;  %4894 = vrcp.f32 %v2963_v6  ;;  %v2962_v58 = vadd.f32 1.0, %v4887_v23  ;;  %v6348_v6 = vmov 0.0|0.0  }
 0x5b3   : > { %v4891_v57 = vpop.eup %4890  ;;  %4896 = vrcp.f32 %v2961_v10  ;;  %v2967_v21 = vadd.f32 1.0, %v4889_v52  ;;  %4627 = vmatprep.subr.bf16.mxu1 %v4626_v38 }
 0x5b4   : > { %4898 = vrcp.f32 %v2962_v58  ;;  %v2968_v33 = vadd.f32 1.0, %v4891_v57  ;;  %v4893_v32 = vpop.eup %4892  ;;  %4629 = vmatpush3.bf16.msra.mxu1 %v4626_v38 }
 0x5b5   : > { %4900 = vrcp.f32 %v2967_v21  ;;  %v2964_v40 = vadd.f32 1.0, %v4893_v32  ;;  %4630 = vmatprep.subr.bf16.mxu1 %v6348_v6 }
 0x5b6   : > { %4902 = vrcp.f32 %v2968_v33 }
 0x5b7   : > { %4904 = vpow2.f32 %v4057_v18 }
 0x5b8   : > { %4906 = vrcp.f32 %v2964_v40 }
 0x5b9   : > { %4908 = vpow2.f32 %v4058_v15  ;;  %v6031_v15 = vrot.slane %v5928_v42, %v5502_v27 }
 0x5bc   : > { %v4895_v34 = vpop.eup %4894 }
 0x5bd   : > { %v4897_v47 = vpop.eup %4896  ;;  %v2987_v54 = vmul.f32 %v4895_v34, %v2931_v37  ;;  %v6349_v34 = vsub.s32 4, %v5209_v16 }
 0x5be   : > { %v4899_v4 = vpop.eup %4898  ;;  %v2985_v30 = vmul.f32 %v4897_v47, %v2929_v31  ;;  %v6347_v31 = vmov 1  }
 0x5bf   : > { %v4901_v41 = vpop.eup %4900  ;;  %3062 = vperm.xlu1 %4708, %v2987_v54   ;;  %v2986_v9 = vmul.f32 %v4899_v4, %v2930_v36  ;;  %v6036_v47 = vrot.slane %v5928_v42, %v6349_v34 }
 0x5c0   : > { %2995 = vperm.xlu0 %4709, %v2985_v30   ;;  %v2991_v39 = vmul.f32 %v4901_v41, %v2935_v1  ;;  %v4903_v2 = vpop.eup %4902 }
 0x5c1   : > { %v4905_v5 = vpop.eup %4904  ;;  %v2992_v55 = vmul.f32 %v4903_v2, %v2936_v12 }
 0x5c2   : > { %v4907_v62 = vpop.eup %4906  ;;  %v2965_v13 = vadd.f32 1.0, %v4905_v5 }
 0x5c3   : > { %4713 = vset.pattern.permute.xlu1 %v6346_v7  ;;  %v4909_v49 = vpop.eup %4908  ;;  %v2988_v35 = vmul.f32 %v4907_v62, %v2932_v50  ;;  %v3531_v50 = vmul.f32 %v6013_v44, %v6013_v44 }
 0x5c4   : > { %3000 = vperm.xlu0 %4709, %v2986_v9   ;;  %3025 = vperm.xlu1 %4713, %v2991_v39   ;;  %4910 = vrcp.f32 %v2965_v13  ;;  %v2966_v37 = vadd.f32 1.0, %v4909_v49 }
 0x5c5   : > { %v3532_v60 = vsel %vm580_vm1, %v3531_v50, 0.0 }
 0x5c6   : > { %4912 = vrcp.f32 %v2966_v37 }
 0x5c8   : > { %3005 = vperm.xlu0 %4709, %v2987_v54   ;;  %3030 = vperm.xlu1 %4713, %v2992_v55   ;;  %v6040_v54 = vrot.slane %v5928_v42, %v5314_v11 }
 0x5cc   : > { %3010 = vperm.xlu0 %4709, %v2988_v35   ;;  %4714 = vset.pattern.permute.xlu1 %v6347_v31 }
 0x5cd   : > { %3078 = vperm.xlu1 %4714, %v2991_v39  }
 0x5ce   : > { %v4911_v36 = vpop.eup %4910 }
 0x5cf   : > { %v2989_v1 = vmul.f32 %v4911_v36, %v2933_v51 }
 0x5d0   : > { %4710 = vset.pattern.permute.xlu0 %v6347_v31  ;;  %v4913_v12 = vpop.eup %4912 }
 0x5d1   : > { %3054 = vperm.xlu0 %4710, %v2985_v30   ;;  %v2990_v26 = vmul.f32 %v4913_v12, %v2934_v53 }
 0x5d5   : > { %3058 = vperm.xlu0 %4710, %v2986_v9  }
 0x5d9   : > { %4711 = vset.pattern.permute.xlu0 %v6346_v7 }
 0x5da   : > { %3015 = vperm.xlu0 %4711, %v2989_v1  }
 0x5de   : > { %3020 = vperm.xlu0 %4711, %v2990_v26  }
 0x5e2   : > { %4712 = vset.pattern.permute.xlu0 %v6347_v31 }
 0x5e3   : > { %3066 = vperm.xlu0 %4712, %v2988_v35  }
 0x5e7   : > { %3070 = vperm.xlu0 %4712, %v2989_v1  }
 0x5eb   : > { %3074 = vperm.xlu0 %4712, %v2990_v26  }
 0x5ef   : > { %3082 = vperm.xlu0 %4712, %v2992_v55  }
 0x5f1   : > { %3533 = vadd.xlane.f32.xlu1 %v3532_v60 }
 0x619   : > { %v4427_v23 = vpop.f32.mrb[12].mxu0 }
 0x61a   : > { %v2678_v10 = vpop.f32.mrb[13].mxu0  ;;  %v2722_v26 = vadd.f32 %v4427_v23, %v6031_v15 }
 0x61b   : > { %v2721_v13 = vadd.f32 %v6031_v15, %v2678_v10 }
 0x61d   : > { %v4430_v52 = vpop.f32.mrb[14].mxu0 }
 0x61e   : > { %v2688_v58 = vpop.f32.mrb[15].mxu0 }
 0x61f   : > { %v2723_v30 = vadd.f32 %v6031_v15, %v2688_v58 }
 0x621   : > { %v6025_v51 = vpop.f32.mrb[16].mxu0 }
 0x622   : > { %v2698_v57 = vpop.f32.mrb[17].mxu0 }
 0x625   : > { %v6027_v21 = vpop.f32.mrb[18].mxu0 }
 0x626   : > { %v2708_v33 = vpop.f32.mrb[19].mxu0 }
 0x627   : > { %v2727_v1 = vadd.f32 %v6031_v15, %v2708_v33 }
 0x63e   : > { %v3063_v32 = vpop.permute.xlu1 %3062 }
 0x63f   : > { %v2996_v18 = vpop.permute.xlu0 %2995  ;;  %v3091_v39 = vmul.f32 %v6036_v47, %v3063_v32 }
 0x640   : > { %v3037_v55 = vmul.f32 %v6040_v54, %v2996_v18 }
 0x642   : > { %v3045_v37 = vadd.f32 %v3037_v55, %v2721_v13  ;;  %v2725_v13 = vadd.f32 %v6031_v15, %v2698_v57 }
 0x643   : > { %v3001_v53 = vpop.permute.xlu0 %3000  ;;  %v3026_v40 = vpop.permute.xlu1 %3025 }
 0x644   : > { %v3043_v11 = vmul.f32 %v6040_v54, %v3026_v40  ;;  %v3038_v31 = vmul.f32 %v6040_v54, %v3001_v53 }
 0x646   : > { %v3051_v46 = vadd.f32 %v3043_v11, %v2727_v1  ;;  %v3046_v60 = vadd.f32 %v3038_v31, %v2722_v26  ;;  %v2726_v26 = vadd.f32 %v6025_v51, %v6031_v15 }
 0x647   : > { %v3006_v4 = vpop.permute.xlu0 %3005  ;;  %v3031_v9 = vpop.permute.xlu1 %3030 }
 0x648   : > { %v3039_v41 = vmul.f32 %v6040_v54, %v3006_v4  ;;  %v2724_v4 = vadd.f32 %v4430_v52, %v6031_v15 }
 0x64a   : > { %v3047_v2 = vadd.f32 %v3039_v41, %v2723_v30 }
 0x64b   : > { %v3011_v7 = vpop.permute.xlu0 %3010 }
 0x64c   : > { %v3099_v5 = vadd.f32 %v3091_v39, %v3047_v2  ;;  %v3079_v49 = vpop.permute.xlu1 %3078  ;;  %v3040_v40 = vmul.f32 %v6040_v54, %v3011_v7 }
 0x64d   : > { %v3095_v12 = vmul.f32 %v6036_v47, %v3079_v49 }
 0x64e   : > { %v4063_v62 = vmul.f32 -1.442695, %v3099_v5  ;;  %v3048_v39 = vadd.f32 %v3040_v40, %v2724_v4 }
 0x64f   : > { %v6054_v38 = vadd.f32 %v3095_v12, %v3051_v46 }
 0x650   : > { %4914 = vpow2.f32 %v4063_v62  ;;  %v3055_v35 = vpop.permute.xlu0 %3054 }
 0x651   : > { %v3089_v36 = vmul.f32 %v6036_v47, %v3055_v35  ;;  %v4067_v18 = vmul.f32 -1.442695, %v6054_v38 }
 0x653   : > { %v3097_v63 = vadd.f32 %v3089_v36, %v3045_v37 }
 0x654   : > { %v3059_v50 = vpop.permute.xlu0 %3058 }
 0x655   : > { %v4061_v61 = vmul.f32 -1.442695, %v3097_v63  ;;  %v3090_v59 = vmul.f32 %v6036_v47, %v3059_v50  ;;  %v3044_v50 = vmul.f32 %v6040_v54, %v3031_v9 }
 0x657   : > { %4916 = vpow2.f32 %v4061_v61  ;;  %v6056_v10 = vadd.f32 %v3090_v59, %v3046_v60 }
 0x659   : > { %v4062_v58 = vmul.f32 -1.442695, %v6056_v10  ;;  %v3016_v32 = vpop.permute.xlu0 %3015 }
 0x65a   : > { %v4915_v33 = vpop.eup %4914  ;;  %v3041_v2 = vmul.f32 %v6040_v54, %v3016_v32 }
 0x65b   : > { %v3131_v53 = vadd.f32 1.0, %v4915_v33  ;;  %4918 = vpow2.f32 %v4062_v58 }
 0x65c   : > { %v3049_v7 = vadd.f32 %v3041_v2, %v2725_v13 }
 0x65d   : > { %4920 = vrcp.f32 %v3131_v53  ;;  %v3021_v23 = vpop.permute.xlu0 %3020 }
 0x65e   : > { %4922 = vpow2.f32 %v4067_v18  ;;  %v3042_v31 = vmul.f32 %v6040_v54, %v3021_v23 }
 0x660   : > { %v3050_v59 = vadd.f32 %v3042_v31, %v2726_v26 }
 0x661   : > { %v4917_v34 = vpop.eup %4916 }
 0x662   : > { %v3129_v30 = vadd.f32 1.0, %v4917_v34  ;;  %v3067_v41 = vpop.permute.xlu0 %3066  ;;  %v4091_v34 = vld [vmem:[%s6308_s8 + $0x10] sm:$0xff] }
 0x663   : > { %v3092_v55 = vmul.f32 %v6036_v47, %v3067_v41 }
 0x664   : > { %4924 = vrcp.f32 %v3129_v30 }
 0x665   : > { %v4919_v62 = vpop.eup %4918  ;;  %v6065_v49 = vadd.f32 %v3092_v55, %v3048_v39 }
 0x666   : > { %v3130_v11 = vadd.f32 1.0, %v4919_v62  ;;  %v3071_v35 = vpop.permute.xlu0 %3070 }
 0x667   : > { %v4921_v37 = vpop.eup %4920  ;;  %v4064_v52 = vmul.f32 -1.442695, %v6065_v49  ;;  %v3093_v36 = vmul.f32 %v6036_v47, %v3071_v35 }
 0x668   : > { %v4923_v1 = vpop.eup %4922  ;;  %v3155_v12 = vmul.f32 %v4921_v37, %v3099_v5  ;;  %4926 = vrcp.f32 %v3130_v11  ;;  %v2728_v5 = vadd.f32 %v6027_v21, %v6031_v15  ;;  %v4092_v21 = vld [vmem:[%s6308_s8 + $0x18] sm:$0xff] }
 0x669   : > { %4928 = vpow2.f32 %v4064_v52  ;;  %v6072_v57 = vadd.f32 %v3093_v36, %v3049_v7  ;;  %v3135_v61 = vadd.f32 1.0, %v4923_v1  ;;  %v4631_v39 = vpack.c.bf16 %v4092_v21, %v4091_v34 }
 0x66a   : > { %v3484_v46 = vsel %vm1484_vm3, %v3155_v12, 0.0  ;;  %v3075_v60 = vpop.permute.xlu0 %3074  ;;  %v3052_v53 = vadd.f32 %v3044_v50, %v2728_v5 }
 0x66b   : > { %v4065_v58 = vmul.f32 -1.442695, %v6072_v57  ;;  %v3094_v32 = vmul.f32 %v6036_v47, %v3075_v60  ;;  %v3485_v33 = vrot.slane %v3484_v46, 4 }
 0x66d   : > { %4930 = vpow2.f32 %v4065_v58  ;;  %v6080_v51 = vadd.f32 %v3094_v32, %v3050_v59  ;;  %v3486_v15 = vadd.f32 %v3485_v33, %v3484_v46 }
 0x66e   : > { %v4925_v18 = vpop.eup %4924  ;;  %v3083_v23 = vpop.permute.xlu0 %3082  ;;  %4932 = vrcp.f32 %v3135_v61 }
 0x66f   : > { %v3153_v40 = vmul.f32 %v4925_v18, %v3097_v63  ;;  %v4066_v54 = vmul.f32 -1.442695, %v6080_v51  ;;  %v3096_v9 = vmul.f32 %v6036_v47, %v3083_v23  ;;  %v3487_v11 = vrot.slane %v3486_v15, 2 }
 0x671   : > { %v3470_v4 = vsel %vm1484_vm3, %v3153_v40, 0.0  ;;  %4934 = vpow2.f32 %v4066_v54  ;;  %v6091_v30 = vadd.f32 %v3096_v9, %v3052_v53  ;;  %4452 = vmatprep.mubr.msk.f32.mxu1 %vm1484_vm3, %v3153_v40  ;;  %v3488_v26 = vadd.f32 %v3487_v11, %v3486_v15 }
 0x672   : > { %v4927_v63 = vpop.eup %4926  ;;  %v3471_v41 = vrot.slane %v3470_v4, 4 }
 0x673   : > { %v4929_v47 = vpop.eup %4928  ;;  %v3154_v2 = vmul.f32 %v4927_v63, %v6056_v10  ;;  %v4068_v55 = vmul.f32 -1.442695, %v6091_v30  ;;  %v3489_v32 = vrot.slane %v3488_v26, 1 }
 0x674   : > { %v3472_v62 = vadd.f32 %v3471_v41, %v3470_v4  ;;  %v3132_v13 = vadd.f32 1.0, %v4929_v47 }
 0x675   : > { %v3477_v35 = vsel %vm1484_vm3, %v3154_v2, 0.0  ;;  %4936 = vpow2.f32 %v4068_v55  ;;  %4453 = vmatmul.mubr.msk.f32.vlgmr.msra.gmra.mrb[22].mxu1 %vm1484_vm3, %v3154_v2  ;;  %v3490_v54 = vadd.f32 %v3489_v32, %v3488_v26 }
 0x676   : > { %v3473_v37 = vrot.slane %v3472_v62, 2  ;;  %v3478_v7 = vrot.slane %v3477_v35, 4  ;;  %4938 = vrcp.f32 %v3132_v13  ;;  %4455 = vmatprep.mubr.msk.f32.mxu1 %vm1484_vm3, %v3155_v12  ;;  %4632 = vmatpush3.bf16.msra.mxu1 %v4631_v39 }
 0x677   : > { %v4931_v31 = vpop.eup %4930  ;;  %4633 = vmatprep.subr.bf16.mxu1 %v6348_v6 }
 0x678   : > { %v3474_v10 = vadd.f32 %v3473_v37, %v3472_v62  ;;  %v3479_v52 = vadd.f32 %v3478_v7, %v3477_v35  ;;  %v3133_v36 = vadd.f32 1.0, %v4931_v31  ;;  %v4933_v1 = vpop.eup %4932 }
 0x679   : > { %v3159_v60 = vmul.f32 %v4933_v1, %v6054_v38 }
 0x67a   : > { %v3480_v46 = vrot.slane %v3479_v52, 2  ;;  %4940 = vrcp.f32 %v3133_v36  ;;  %v3475_v61 = vrot.slane %v3474_v10, 1 }
 0x67b   : > { %v4935_v50 = vpop.eup %4934  ;;  %v3512_v18 = vsel %vm1484_vm3, %v3159_v60, 0.0 }
 0x67c   : > { %v3481_v59 = vadd.f32 %v3480_v46, %v3479_v52  ;;  %v3134_v58 = vadd.f32 1.0, %v4935_v50  ;;  %v3476_v53 = vadd.f32 %v3475_v61, %v3474_v10  ;;  %v3513_v38 = vrot.slane %v3512_v18, 4 }
 0x67e   : > { %v3482_v5 = vrot.slane %v3481_v59, 1  ;;  %4942 = vrcp.f32 %v3134_v58  ;;  %v3534_v4 = vpop.xlane.xlu1 %3533  ;;  %v3514_v55 = vadd.f32 %v3513_v38, %v3512_v18 }
 0x67f   : > { %v4937_v12 = vpop.eup %4936  ;;  %v3535_v2 = vmul.f32 0.03125, %v3534_v4 }
 0x680   : > { %v4939_v33 = vpop.eup %4938  ;;  %v3483_v23 = vadd.f32 %v3482_v5, %v3481_v59  ;;  %v3136_v40 = vadd.f32 1.0, %v4937_v12  ;;  %v3515_v10 = vrot.slane %v3514_v55, 2 }
 0x681   : > { %v3156_v9 = vmul.f32 %v4939_v33, %v6065_v49  ;;  %v3536_v31 = vadd.f32 1e-05, %v3535_v2 }
 0x682   : > { %v3565_v34 = vsel %vm1897_vm4, %v3483_v23, %v3476_v53  ;;  %4944 = vrcp.f32 %v3136_v40 }
 0x683   : > { %v3566_v21 = vsel %vm1899_vm5, %v3490_v54, %v3565_v34  ;;  %v3491_v15 = vsel %vm1484_vm3, %v3156_v9, 0.0  ;;  %4456 = vmatmul.mubr.msk.f32.gmra.mrb[24].mxu1 %vm1484_vm3, %v3156_v9  ;;  %4946 = vrsqrt.f32 %v3536_v31 }
 0x684   : > { %v4941_v63 = vpop.eup %4940  ;;  %v3492_v41 = vrot.slane %v3491_v15, 4 }
 0x685   : > { %v3157_v39 = vmul.f32 %v4941_v63, %v6072_v57 }
 0x686   : > { %v3493_v47 = vadd.f32 %v3492_v41, %v3491_v15  ;;  %v4088_v15 = vld [vmem:[%s6307_s7 + $0x28] sm:$0xff] }
 0x687   : > { %v3498_v49 = vsel %vm1484_vm3, %v3157_v39, 0.0  ;;  %4458 = vmatprep.mubr.msk.f32.mxu1 %vm1484_vm3, %v3157_v39 }
 0x688   : > { %v4943_v62 = vpop.eup %4942  ;;  %v3494_v13 = vrot.slane %v3493_v47, 2  ;;  %v3499_v11 = vrot.slane %v3498_v49, 4 }
 0x689   : > { %v3158_v35 = vmul.f32 %v4943_v62, %v6080_v51  ;;  %v3516_v51 = vadd.f32 %v3515_v10, %v3514_v55  ;;  %v4090_v62 = vld [vmem:[%s6307_s7 + $0x38] sm:$0xff] }
 0x68a   : > { %v3495_v37 = vadd.f32 %v3494_v13, %v3493_v47  ;;  %v3500_v7 = vadd.f32 %v3499_v11, %v3498_v49  ;;  %v4089_v49 = vld [vmem:[%s6307_s7 + $0x30] sm:$0xff]  ;;  %v6350_v13 = vsub.s32 7, %v5209_v16 }
 0x68b   : > { %v3505_v52 = vsel %vm1484_vm3, %v3158_v35, 0.0  ;;  %4459 = vmatmul.mubr.msk.f32.gmra.mrb[26].mxu1 %vm1484_vm3, %v3158_v35  ;;  %v3517_v53 = vrot.slane %v3516_v51, 1 }
 0x68c   : > { %v4945_v57 = vpop.eup %4944  ;;  %v3496_v36 = vrot.slane %v3495_v37, 1  ;;  %v3501_v1 = vrot.slane %v3500_v7, 2  ;;  %v3506_v26 = vrot.slane %v3505_v52, 4  ;;  %4461 = vmatprep.mubr.msk.f32.mxu1 %vm1484_vm3, %v3159_v60  ;;  %v3542_v11 = vrot.slane %v5928_v42, %v6350_v13 }
 0x68d   : > { %v3160_v46 = vmul.f32 %v4945_v57, %v6091_v30  ;;  %v3518_v38 = vadd.f32 %v3517_v53, %v3516_v51  ;;  %v4947_v4 = vpop.eup %4946 }
 0x68e   : > { %v3497_v50 = vadd.f32 %v3496_v36, %v3495_v37  ;;  %v3502_v61 = vadd.f32 %v3501_v1, %v3500_v7  ;;  %v3507_v59 = vadd.f32 %v3506_v26, %v3505_v52  ;;  %v3538_v55 = vmul.f32 %v4947_v4, %v6013_v44  ;;  %v6147_v7 = vld [vmem:[%s6310_s10 + $0x18] sm:$0xff]  ;;  %v4097_v52 = vld [vmem:[%s6309_s9 + $0x48] sm:$0xff]  ;;  %v4100_v26 = vld [vmem:[%s6309_s9 + $0x60] sm:$0xff] }
 0x68f   : > { %v3519_v58 = vsel %vm1484_vm3, %v3160_v46, 0.0  ;;  %4462 = vmatmul.mubr.msk.f32.gmra.mrb[28].mxu1 %vm1484_vm3, %v3160_v46  ;;  %v4637_v37 = vpack.c.bf16 %v4090_v62, %v4089_v49  ;;  %v3547_v42 = vrot.slane %v6147_v7, %v5249_v29  ;;  %v2157_v10 = vrot.slane %v6147_v7, 3  ;;  %v4098_v29 = vld [vmem:[%s6309_s9 + $0x50] sm:$0xff]  ;;  %v4099_v36 = vld [vmem:[%s6309_s9 + $0x58] sm:$0xff]  ;;  %v4101_v46 = vld [vmem:[%s6309_s9 + $0x68] sm:$0xff] }
 0x690   : > { %v3567_v32 = vsel %vm1901_vm6, %v3497_v50, %v3566_v21  ;;  %v3503_v5 = vrot.slane %v3502_v61, 1  ;;  %v3508_v12 = vrot.slane %v3507_v59, 2  ;;  %v3520_v33 = vrot.slane %v3519_v58, 4  ;;  %4468 = vmatprep.mubr.msk.f32.mxu1 %vm5055_vm0, %v6345_v43  ;;  %v4087_v21 = vld [vmem:[%s6307_s7 + $0x20] sm:$0xff] }
 0x691   : > { %v4634_v2 = vpack.c.bf16 %v4088_v15, %v4087_v21  ;;  %v3543_v44 = vmul.f32 %v3542_v11, %v3538_v55  ;;  %2158 = vrot.lane.b32.xlu0 %v2157_v10, %s6351_s0  ;;  %v4643_v1 = vpack.c.bf16 %v4099_v36, %v4098_v29  ;;  %v4646_v50 = vpack.c.bf16 %v4101_v46, %v4100_v26  ;;  %s3961_s0 = sshll.u32 %s416_s28, 3 }
 0x692   : > { %v3504_v60 = vadd.f32 %v3503_v5, %v3502_v61  ;;  %v3509_v18 = vadd.f32 %v3508_v12, %v3507_v59  ;;  %v3521_v30 = vadd.f32 %v3520_v33, %v3519_v58  ;;  %v4102_v61 = vld [vmem:[%s6309_s9 + $0x70] sm:$0xff]  ;;  %v4103_v59 = vld [vmem:[%s6309_s9 + $0x78] sm:$0xff]  ;;  %s418_s23 = scalar_lea.vmem [#allocation2], %s3961_s0 }
 0x693   : > { %v3548_v31 = vadd.f32 %v3547_v42, %v3543_v44  ;;  %v4649_v51 = vpack.c.bf16 %v4103_v59, %v4102_v61  ;;  %v4989_v58 = vld [vmem:[%s6310_s10 + $0x10] sm:$0xff]  ;;  %s3859_s15 = sshll.u32 %s418_s23, 4  ;;  %s6259_s15 = int_to_ptr.vmem [resolvable:$true] %s3859_s15 }
 0x694   : > { %v3510_v23 = vrot.slane %v3509_v18, 1  ;;  %v3522_v40 = vrot.slane %v3521_v30, 2  ;;  %v3568_v54 = vsel %vm1903_vm7, %v3504_v60, %v3567_v32  ;;  %v6352_v32 = vsub.s32 5, %v5209_v16  ;;  %s4990_s25 = scalar_lea.vmem %s6259_s15, 128 }
 0x695   : > { %p4991_p11 = scmp.ne.s32.totalorder %s6259_s15, %s4990_s25 }
 0x696   : > { %v3511_v9 = vadd.f32 %v3510_v23, %v3509_v18  ;;  %v3523_v34 = vadd.f32 %v3522_v40, %v3521_v30  ;;  %v3167_v5 = vrot.slane %v4989_v58, %v6352_v32 }
 0x697   : > { %p4992_p12 = pnand %p4991_p11, %p5167_p5 }
 0x698   : > { %v3524_v63 = vrot.slane %v3523_v34, 1  ;;  %v3569_v41 = vsel %vm1905_vm8, %v3511_v9, %v3568_v54 }
 0x699   : > { %v3570_v39 = vsel %vm1907_vm9, %v3518_v38, %v3569_v41  ;;  %p4993_p13 = pneg %p4992_p12 }
 0x69a   : > { %v3525_v47 = vadd.f32 %v3524_v63, %v3523_v34 }
 0x69c   : > { %v3571_v35 = vsel %vm1909_vm10, %v3525_v47, %v3570_v39 }
 0x69d   : > { %4469 = vmatmul.mubr.msk.f32.vlgmr.msra.gmra.mrb[30].mxu1 %vm1484_vm3, %v3571_v35  ;;  %v6353_v35 = vsub.s32 6, %v5209_v16 }
 0x69e   : > { %4635 = vmatpush3.bf16.msra.mxu1 %v4634_v2  ;;  %4479 = vmatprep.mubr.msk.f32.mxu1 %vm5055_vm0, %v6345_v43  ;;  %v4096_v43 = vld [vmem:[%s6309_s9 + $0x40] sm:$0xff] }
 0x69f   : > { %4636 = vmatprep.subr.bf16.mxu1 %v6348_v6  ;;  %v4640_v57 = vpack.c.bf16 %v4097_v52, %v4096_v43 }
 0x6a1   : > { %4641 = vmatpush3.bf16.msra.mxu0 %v4640_v57 }
 0x6a2   : > { %4638 = vmatpush3.bf16.msra.mxu1 %v4637_v37  ;;  %4642 = vmatprep.subr.bf16.mxu0 %v6348_v6  ;;  %v6190_v37 = vrot.slane %v4989_v58, %v6353_v35 }
 0x6a5   : > { %4480 = vmatmul.mubr.msk.f32.vlgmr.msra.gmra.mrb[32].mxu1 %vm580_vm1, %v3548_v31  ;;  %4644 = vmatpush3.bf16.msra.mxu0 %v4643_v1 }
 0x6a6   : > { %4645 = vmatprep.subr.bf16.mxu0 %v6348_v6 }
 0x6a9   : > { %4647 = vmatpush3.bf16.msra.mxu0 %v4646_v50 }
 0x6aa   : > { %4648 = vmatprep.subr.bf16.mxu0 %v6348_v6 }
 0x6ad   : > { %4650 = vmatpush3.bf16.msra.mxu0 %v4649_v51 }
 0x703   : > { %v2159_v12 = vpop.permute.xlu0 %2158 }
 0x704   : > { %4653 = vpush %v2159_v12 }
 0x735   : > { %s4654_s18 = spop %4653 }
 0x748   : > { %v4454_v33 = vpop.f32.mrb[22].mxu1 }
 0x749   : > { %v3264_v60 = vadd.f32 %v4454_v33, %v3167_v5  ;;  %v3258_v18 = vpop.f32.mrb[23].mxu1 }
 0x74a   : > { %v3259_v30 = vadd.f32 %v3258_v18, %v3167_v5 }
 0x74b   : > { %v4080_v53 = vmul.f32 -1.442695, %v3264_v60 }
 0x74c   : > { %v4079_v23 = vmul.f32 -1.442695, %v3259_v30 }
 0x74d   : > { %4948 = vpow2.f32 %v4080_v53 }
 0x74e   : > { %4950 = vpow2.f32 %v4079_v23 }
 0x756   : > { %v4457_v40 = vpop.f32.mrb[24].mxu1 }
 0x757   : > { %v4949_v6 = vpop.eup %4948  ;;  %v3274_v54 = vadd.f32 %v4457_v40, %v3167_v5  ;;  %v3268_v9 = vpop.f32.mrb[25].mxu1 }
 0x758   : > { %v4951_v34 = vpop.eup %4950  ;;  %v3322_v38 = vadd.f32 1.0, %v4949_v6  ;;  %v3269_v21 = vadd.f32 %v3268_v9, %v3167_v5 }
 0x759   : > { %v3321_v15 = vadd.f32 1.0, %v4951_v34  ;;  %v4082_v4 = vmul.f32 -1.442695, %v3274_v54  ;;  %v3720_v34 = vrot.slane %v6147_v7, %v5419_v28 }
 0x75a   : > { %4952 = vrcp.f32 %v3322_v38  ;;  %v4081_v63 = vmul.f32 -1.442695, %v3269_v21 }
 0x75b   : > { %4954 = vrcp.f32 %v3321_v15 }
 0x75c   : > { %4956 = vpow2.f32 %v4082_v4 }
 0x75d   : > { %4958 = vpow2.f32 %v4081_v63 }
 0x75e   : > { %v4460_v41 = vpop.f32.mrb[26].mxu1 }
 0x75f   : > { %v3284_v39 = vadd.f32 %v4460_v41, %v3167_v5  ;;  %v3278_v47 = vpop.f32.mrb[27].mxu1 }
 0x760   : > { %v3279_v2 = vadd.f32 %v3278_v47, %v3167_v5 }
 0x761   : > { %v4084_v55 = vmul.f32 -1.442695, %v3284_v39 }
 0x762   : > { %v4083_v49 = vmul.f32 -1.442695, %v3279_v2  ;;  %v4463_v62 = vpop.f32.mrb[28].mxu1 }
 0x763   : > { %4960 = vpow2.f32 %v4084_v55  ;;  %v6186_v13 = vadd.f32 %v4463_v62, %v3167_v5  ;;  %v3288_v11 = vpop.f32.mrb[29].mxu1 }
 0x764   : > { %v4953_v44 = vpop.eup %4952  ;;  %4962 = vpow2.f32 %v4083_v49  ;;  %v3289_v42 = vadd.f32 %v3288_v11, %v3167_v5 }
 0x765   : > { %v4955_v31 = vpop.eup %4954  ;;  %v3346_v10 = vmul.f32 %v4953_v44, %v3264_v60  ;;  %v4086_v43 = vmul.f32 -1.442695, %v6186_v13 }
 0x766   : > { %v4957_v52 = vpop.eup %4956  ;;  %v3345_v57 = vmul.f32 %v4955_v31, %v3259_v30  ;;  %v4085_v29 = vmul.f32 -1.442695, %v3289_v42 }
 0x767   : > { %v4959_v36 = vpop.eup %4958  ;;  %v3324_v1 = vadd.f32 1.0, %v4957_v52  ;;  %4964 = vpow2.f32 %v4086_v43  ;;  %v3358_v26 = vmul.f32 %v6190_v37, %v3346_v10 }
 0x768   : > { %v3323_v46 = vadd.f32 1.0, %v4959_v36  ;;  %4966 = vpow2.f32 %v4085_v29  ;;  %v3357_v50 = vmul.f32 %v6190_v37, %v3345_v57 }
 0x769   : > { %4968 = vrcp.f32 %v3324_v1  ;;  %v3368_v16 = vsel %vm1682_vm11, %v3358_v26, 0.0 }
 0x76a   : > { %4970 = vrcp.f32 %v3323_v46  ;;  %3369 = vadd.xlane.f32.xlu0 %v3368_v16  ;;  %v3365_v59 = vsel %vm1682_vm11, %v3357_v50, 0.0 }
 0x76d   : > { %v4961_v61 = vpop.eup %4960 }
 0x76e   : > { %v4963_v51 = vpop.eup %4962  ;;  %v3326_v58 = vadd.f32 1.0, %v4961_v61  ;;  %3366 = vadd.xlane.f32.xlu0 %v3365_v59 }
 0x76f   : > { %v3325_v32 = vadd.f32 1.0, %v4963_v51 }
 0x770   : > { %4972 = vrcp.f32 %v3326_v58  ;;  %v3640_v5 = vpop.f32.mrb[30].mxu1 }
 0x771   : > { %v4965_v12 = vpop.eup %4964  ;;  %4974 = vrcp.f32 %v3325_v32  ;;  %v4470_v33 = vpop.f32.mrb[31].mxu1 }
 0x772   : > { %v4967_v60 = vpop.eup %4966  ;;  %v3328_v18 = vadd.f32 1.0, %v4965_v12 }
 0x773   : > { %v4969_v30 = vpop.eup %4968  ;;  %v3327_v53 = vadd.f32 1.0, %v4967_v60 }
 0x774   : > { %v4971_v23 = vpop.eup %4970  ;;  %v3348_v40 = vmul.f32 %v4969_v30, %v3274_v54  ;;  %4976 = vrcp.f32 %v3328_v18 }
 0x775   : > { %v3347_v6 = vmul.f32 %v4971_v23, %v3269_v21  ;;  %4978 = vrcp.f32 %v3327_v53 }
 0x776   : > { %v3360_v9 = vmul.f32 %v6190_v37, %v3348_v40 }
 0x777   : > { %v3359_v4 = vmul.f32 %v6190_v37, %v3347_v6 }
 0x778   : > { %v3713_v38 = vpop.f32.mrb[32].mxu1  ;;  %v3374_v15 = vsel %vm1682_vm11, %v3360_v9, 0.0 }
 0x779   : > { %v3714_v63 = vadd.f32 %v3713_v38, %v3640_v5  ;;  %3375 = vadd.xlane.f32.xlu1 %v3374_v15  ;;  %v4481_v41 = vpop.f32.mrb[33].mxu1  ;;  %v3371_v21 = vsel %vm1682_vm11, %v3359_v4, 0.0 }
 0x77a   : > { %v4973_v47 = vpop.eup %4972 }
 0x77b   : > { %v4975_v55 = vpop.eup %4974  ;;  %v3350_v49 = vmul.f32 %v4973_v47, %v3284_v39  ;;  %v3721_v54 = vadd.f32 %v3720_v34, %v3714_v63 }
 0x77c   : > { %v3349_v62 = vmul.f32 %v4975_v55, %v3279_v2 }
 0x77d   : > { %v4095_v11 = vmul.f32 -1.442695, %v3721_v54  ;;  %3372 = vadd.xlane.f32.xlu1 %v3371_v21  ;;  %v3362_v35 = vmul.f32 %v6190_v37, %v3350_v49 }
 0x77e   : > { %v4977_v28 = vpop.eup %4976  ;;  %v3361_v44 = vmul.f32 %v6190_v37, %v3349_v62 }
 0x77f   : > { %v4979_v31 = vpop.eup %4978  ;;  %v3352_v10 = vmul.f32 %v4977_v28, %v6186_v13  ;;  %4980 = vpow2.f32 %v4095_v11  ;;  %v3380_v43 = vsel %vm1682_vm11, %v3362_v35, 0.0 }
 0x780   : > { %v3351_v52 = vmul.f32 %v4979_v31, %v3289_v42  ;;  %v3377_v39 = vsel %vm1682_vm11, %v3361_v44, 0.0  ;;  %v3389_v42 = vstv %s4654_s18  ;;  %s5063_s18 = smov [#allocation2]  }
 0x781   : > { %3381 = vadd.xlane.f32.xlu1 %v3380_v43  ;;  %3378 = vadd.xlane.f32.xlu0 %v3377_v39  ;;  %v3364_v2 = vmul.f32 %v6190_v37, %v3352_v10  ;;  %s4994_s26 = sshll.u32 %s5063_s18, 4  ;;  %s4995_s26 = int_to_ptr.vmem [resolvable:$false] %s4994_s26 }
 0x782   : > { %v3363_v57 = vmul.f32 %v6190_v37, %v3351_v52  ;;  %s4996_s19 = scalar_lea.vmem %s4995_s26, 256  ;;  %p4997_p0 = scmp.lt.s32.totalorder %s6259_s15, %s4995_s26 }
 0x783   : > { %v3386_v29 = vsel %vm1682_vm11, %v3364_v2, 0.0  ;;  %p4998_p1 = scmp.lt.s32.totalorder %s4996_s19, %s4990_s25 }
 0x784   : > { %v3383_v36 = vsel %vm1682_vm11, %v3363_v57, 0.0 }
 0x785   : > { %3387 = vadd.xlane.f32.xlu1 %v3386_v29  ;;  %3384 = vadd.xlane.f32.xlu0 %v3383_v36  ;;  %p4999_p2 = por %p4998_p1, %p4997_p0 }
 0x787   : > { %p5000_p3 = pnand %p4999_p2, %p4993_p13 }
 0x789   : > { %v4981_v1 = vpop.eup %4980 }
 0x78a   : > { %v3725_v13 = vadd.f32 1.0, %v4981_v1 }
 0x78c   : > { %4982 = vrcp.f32 %v3725_v13 }
 0x796   : > { %v4983_v26 = vpop.eup %4982 }
 0x797   : > { %v3728_v46 = vmul.f32 %v4983_v26, %v3721_v54 }
 0x799   : > { %4499 = vmatmul.mubr.msk.f32.vlgmr.msra.gmra.mrb[20].mxu0 %vm1682_vm11, %v3728_v46 }
 0x7f7   : > { %v3370_v16 = vpop.xlane.xlu0 %3369 }
 0x7f8   : > { %v3391_v50 = vadd.f32 %v3389_v42, %v3370_v16 }
 0x7fa   : > { %v3399_v61 = vmul.f32 %v3391_v50, %v5772_v3 }
 0x7fb   : > { %v3367_v37 = vpop.xlane.xlu0 %3366 }
 0x7fc   : > { %v3390_v59 = vadd.f32 %v3389_v42, %v3367_v37  ;;  %v3413_v51 = vsel %vm551_vm2, %v3399_v61, 0.0 }
 0x7fd   : > { %v3414_v32 = vrot.slane %v3413_v51, 4 }
 0x7fe   : > { %v3398_v58 = vmul.f32 %v3390_v59, %v5774_v0 }
 0x7ff   : > { %v3415_v33 = vadd.f32 %v3414_v32, %v3413_v51 }
 0x800   : > { %v3406_v5 = vsel %vm551_vm2, %v3398_v58, 0.0 }
 0x801   : > { %v3407_v12 = vrot.slane %v3406_v5, 4  ;;  %v3416_v53 = vrot.slane %v3415_v33, 2 }
 0x803   : > { %v3408_v30 = vadd.f32 %v3407_v12, %v3406_v5  ;;  %v3417_v38 = vadd.f32 %v3416_v53, %v3415_v33 }
 0x805   : > { %v3409_v9 = vrot.slane %v3408_v30, 2 }
 0x806   : > { %v3376_v60 = vpop.xlane.xlu1 %3375 }
 0x807   : > { %v3393_v18 = vadd.f32 %v3389_v42, %v3376_v60  ;;  %v3410_v49 = vadd.f32 %v3409_v9, %v3408_v30 }
 0x809   : > { %v3401_v23 = vmul.f32 %v3393_v18, %v5776_v17  ;;  %v3418_v17 = vrot.slane %v3417_v38, 1  ;;  %v3411_v39 = vrot.slane %v3410_v49, 1 }
 0x80a   : > { %v3373_v40 = vpop.xlane.xlu1 %3372 }
 0x80b   : > { %v3427_v3 = vsel %vm551_vm2, %v3401_v23, 0.0  ;;  %v3392_v6 = vadd.f32 %v3389_v42, %v3373_v40  ;;  %v3419_v36 = vadd.f32 %v3418_v17, %v3417_v38  ;;  %v3412_v61 = vadd.f32 %v3411_v39, %v3410_v49  ;;  %v6355_v49 = vld [vmem:[#allocation8_spill] sm:$0xff] }
 0x80c   : > { %v3428_v34 = vrot.slane %v3427_v3, 4 }
 0x80d   : > { %v3400_v0 = vmul.f32 %v3392_v6, %v5778_v56  ;;  %v3463_v51 = vadd.f32 %v3419_v36, %v5733_v48  ;;  %v3462_v18 = vadd.f32 %v3412_v61, %v5735_v20 }
 0x80e   : > { %v3429_v15 = vadd.f32 %v3428_v34, %v3427_v3  ;;  %v3382_v4 = vpop.xlane.xlu1 %3381  ;;  %v3379_v63 = vpop.xlane.xlu0 %3378 }
 0x80f   : > { %v3420_v41 = vsel %vm551_vm2, %v3400_v0, 0.0  ;;  %v3395_v47 = vadd.f32 %v3389_v42, %v3382_v4  ;;  %v3394_v55 = vadd.f32 %v3389_v42, %v3379_v63  ;;  %v3825_v40 = vrot.slane %v3463_v51, 7  ;;  %v6354_v63 = vld [vmem:[#allocation7_spill] sm:$0xff] }
 0x810   : > { %v3430_v54 = vrot.slane %v3429_v15, 2  ;;  %v3421_v62 = vrot.slane %v3420_v41, 4 }
 0x811   : > { %v3403_v21 = vmul.f32 %v3395_v47, %v5788_v22  ;;  %v3402_v11 = vmul.f32 %v3394_v55, %v5790_v8  ;;  %v3826_v4 = vsel %vm1897_vm4, %v3825_v40, %v3462_v18 }
 0x812   : > { %v3431_v35 = vadd.f32 %v3430_v54, %v3429_v15  ;;  %v3422_v28 = vadd.f32 %v3421_v62, %v3420_v41  ;;  %v3388_v44 = vpop.xlane.xlu1 %3387  ;;  %v3385_v31 = vpop.xlane.xlu0 %3384 }
 0x813   : > { %v3441_v56 = vsel %vm551_vm2, %v3403_v21, 0.0  ;;  %v3434_v10 = vsel %vm551_vm2, %v3402_v11, 0.0  ;;  %v3397_v43 = vadd.f32 %v3389_v42, %v3388_v44  ;;  %v3396_v52 = vadd.f32 %v3389_v42, %v3385_v31  ;;  %v6357_v44 = vld [vmem:[#allocation10_spill] sm:$0xff] }
 0x814   : > { %v3423_v2 = vrot.slane %v3422_v28, 2  ;;  %v3442_v57 = vrot.slane %v3441_v56, 4  ;;  %v3435_v29 = vrot.slane %v3434_v10, 4  ;;  %v3432_v8 = vrot.slane %v3431_v35, 1 }
 0x815   : > { %v3405_v1 = vmul.f32 %v3397_v43, %v5802_v19  ;;  %v3404_v22 = vmul.f32 %v3396_v52, %v5804_v14 }
 0x816   : > { %v3424_v13 = vadd.f32 %v3423_v2, %v3422_v28  ;;  %v3443_v26 = vadd.f32 %v3442_v57, %v3441_v56  ;;  %v3436_v46 = vadd.f32 %v3435_v29, %v3434_v10  ;;  %v3433_v5 = vadd.f32 %v3432_v8, %v3431_v35  ;;  %v6356_v35 = vld [vmem:[#allocation9_spill] sm:$0xff] }
 0x817   : > { %v3455_v16 = vsel %vm551_vm2, %v3405_v1, 0.0  ;;  %v3448_v50 = vsel %vm551_vm2, %v3404_v22, 0.0  ;;  %v3741_v57 = vrot.slane %v6147_v7, %v5502_v27 }
 0x818   : > { %v3425_v37 = vrot.slane %v3424_v13, 1  ;;  %v3444_v42 = vrot.slane %v3443_v26, 2  ;;  %v3437_v59 = vrot.slane %v3436_v46, 2  ;;  %v3456_v58 = vrot.slane %v3455_v16, 4 }
 0x819   : > { %v3449_v32 = vrot.slane %v3448_v50, 4  ;;  %v3465_v9 = vadd.f32 %v3433_v5, %v5740_v25 }
 0x81a   : > { %v3426_v19 = vadd.f32 %v3425_v37, %v3424_v13  ;;  %v3445_v12 = vadd.f32 %v3444_v42, %v3443_v26  ;;  %v3438_v14 = vadd.f32 %v3437_v59, %v3436_v46  ;;  %v3457_v33 = vadd.f32 %v3456_v58, %v3455_v16 }
 0x81b   : > { %v3450_v60 = vadd.f32 %v3449_v32, %v3448_v50  ;;  %v3829_v55 = vrot.slane %v3465_v9, 5 }
 0x81c   : > { %v3464_v30 = vadd.f32 %v3426_v19, %v5737_v24  ;;  %v3446_v53 = vrot.slane %v3445_v12, 1  ;;  %v3439_v23 = vrot.slane %v3438_v14, 1  ;;  %v3458_v3 = vrot.slane %v3457_v33, 2 }
 0x81d   : > { %v3451_v6 = vrot.slane %v3450_v60, 2 }
 0x81e   : > { %v3827_v48 = vrot.slane %v3464_v30, 6  ;;  %v3447_v34 = vadd.f32 %v3446_v53, %v3445_v12  ;;  %v3440_v38 = vadd.f32 %v3439_v23, %v3438_v14  ;;  %v3459_v0 = vadd.f32 %v3458_v3, %v3457_v33 }
 0x81f   : > { %v3452_v15 = vadd.f32 %v3451_v6, %v3450_v60 }
 0x820   : > { %v3466_v41 = vadd.f32 %v3440_v38, %v6354_v63  ;;  %v3828_v20 = vsel %vm1899_vm5, %v3827_v48, %v3826_v4  ;;  %v3460_v24 = vrot.slane %v3459_v0, 1  ;;  %v3467_v54 = vadd.f32 %v3447_v34, %v6355_v49 }
 0x821   : > { %v3453_v47 = vrot.slane %v3452_v15, 1  ;;  %v3830_v21 = vsel %vm1901_vm6, %v3829_v55, %v3828_v20 }
 0x822   : > { %v3831_v62 = vrot.slane %v3466_v41, 4  ;;  %v3461_v25 = vadd.f32 %v3460_v24, %v3459_v0  ;;  %v3833_v56 = vrot.slane %v3467_v54, 3 }
 0x823   : > { %v3454_v17 = vadd.f32 %v3453_v47, %v3452_v15 }
 0x824   : > { %v3832_v11 = vsel %vm1903_vm7, %v3831_v62, %v3830_v21  ;;  %v3469_v28 = vadd.f32 %v3461_v25, %v6356_v35 }
 0x825   : > { %v3468_v31 = vadd.f32 %v3454_v17, %v6357_v44  ;;  %v3834_v52 = vsel %vm1905_vm8, %v3833_v56, %v3832_v11 }
 0x826   : > { %v3837_v43 = vrot.slane %v3469_v28, 1 }
 0x827   : > { %v3835_v10 = vrot.slane %v3468_v31, 2 }
 0x829   : > { %v3836_v39 = vsel %vm1907_vm9, %v3835_v10, %v3834_v52 }
 0x82a   : > { %v3838_v2 = vsel %vm1909_vm10, %v3837_v43, %v3836_v39 }
 0x82b   : > { %3840 = vst.msk [vmem:[%s436_s20] sm:$0xff] %vm551_vm2, %v3838_v2 }
 0x86c   : > { %v3811_v29 = vpop.f32.mrb[20].mxu0 }
 0x86d   : > { %v3812_v36 = vadd.f32 %v3811_v29, %v3741_v57  ;;  %v4500_v1 = vpop.f32.mrb[21].mxu0 }
 0x86f   : > { %v3815_v22 = vadd.f32 %v3812_v36, %v5837_v45 }
 0x871   : > { %3816 = vst.msk [vmem:[%s418_s23] sm:$0xff] %vm580_vm1, %v3815_v22 }
 0x872   : > { %5003 = shalt.err (!%p5000_p3)
}
 0x873   : > { %s5004_s20 = scalar_lea.hbm %s6257_s17, 128  ;;  %s5008_s29 = scalar_lea.hbm %s6311_s11, 256 }
 0x874   : > { %p5005_p4 = scmp.ne.s32.totalorder %s6257_s17, %s5004_s20  ;;  %p5009_p9 = scmp.lt.u32.totalorder %s6257_s17, %s6311_s11 }
 0x875   : > { %p5010_p10 = scmp.lt.u32.totalorder %s5008_s29, %s5004_s20  ;;  %p5012_p12 = scmp.lt.u32.totalorder %s5004_s20, %s6257_s17 }
 0x876   : > { %p5006_p7 = pnand %p5005_p4, %p5167_p5 }
 0x877   : > { %p5011_p11 = por %p5010_p10, %p5009_p9 }
 0x878   : > { %p5007_p8 = pneg %p5006_p7 }
 0x879   : > { %p5013_p13 = por %p5012_p12, %p5011_p11 }
 0x87b   : > { %p5014_p0 = pnand %p5013_p13, %p5007_p8 }
 0x87d   : > { %5017 = shalt.err (!%p5014_p0)
}
 0x87e   : > { %4655 = dma.vmem_to_hbm [thread:$0]  (%p5167_p5), %s6259_s15, 128, %s6257_s17, %s3842_s16  }
 0x87f PF: > { %p4661_p1 = scmp.ge.s32.totalorder %s5052_s24, 2  ;;  %s3874_s1 = sand.u32 1, %s5040_s21  }
 0x880   : > { %s3875_s25 = scalar_lea.sflag [#allocation3], %s3874_s1 }
 0x881   : > { %p4658_p2 = pnand %p4661_p1, %p5171_p6 }
 0x883   : > { %5035 = dma.done.wait (!%p4658_p2), %s3875_s25, 128  }
 0x884   : > { %5037 = vsyncadd (!%p4658_p2), %s3875_s25, 4294967168  ;;  %s6358_s18 = sld [smem:[#allocation5_spill]]  ;;  %s6359_s23 = sld [smem:[#allocation6_spill]] }
 0x885   : > { %p23_p3 = scmp.ge.s32.totalorder %s5154_s27, 4   ;;  %s6360_s21 = smov %s5044_s22 }
 0x886   : > { %s6362_s24 = smov %s5154_s27 }
 0x887   :  { %25 = sbr.rel (!%p23_p3) target bundleno = 6 (0x6), region = 123 }
 0x88a   : > { %s6361_s22 = smov %s6358_s18 }
 0x88e   :  { %3887 = vsyncpa [#allocation3], 1 }
 0x88f   :  { %3889 = vsyncpa [#allocation3 + $0x1], 1 }

</bundles_post_ra>
